<compile_context>
chip_gen: v7x
topology: tpu7x:2x2x1
jax: 0.10.0
libtpu: 0.0.40
codegen_flags: <defaults>
</compile_context>

<pallas_src>
import functools

import jax
import jax.numpy as jnp
from jax.experimental import pallas as pl
from jax.experimental.pallas import tpu as pltpu


_LANE = 128      # lane width: last-dim padding target
_SUBLANE = 8     # f32 sublane count: batch padding target


def _round_up(x, m):
    return (x + m - 1) // m * m


def _pad_to(x, shape):
    """Zero-pad `x` up to `shape` (same rank)."""
    out = jnp.zeros(shape, x.dtype)
    return out.at[tuple(slice(0, s) for s in x.shape)].set(x)


def _vmem_limit_bytes():
    """Per-generation VMEM budget (v7x has 64 MiB/TC; v5e/v6e have 128 MiB)."""
    try:
        kind = jax.devices()[0].device_kind.lower()
    except Exception:  # pragma: no cover - defensive
        kind = ""
    if "v7" in kind:
        return 48 * 1024 * 1024
    return 96 * 1024 * 1024


def _choose_vocab_tiling(V, Fdim, vmem_limit_bytes):
    """Pick padded vocab Vp and tile width tV (multiple of 256, >=1024 if it fits)."""
    Vp_min = _round_up(V, 256)
    if Vp_min < 1024:
        return Vp_min, Vp_min            # single lane-dense tile
    tV = 2048
    # wf tile is bf16 and double-buffered; keep it within ~1/3 of the budget.
    while tV > 256 and Fdim * tV * 2 * 2 > vmem_limit_bytes // 3:
        tV //= 2
    return _round_up(Vp_min, tV), tV


# --------------------------------------------------------------------------- #
# kernel: one decode step.  grid = (Vp // tV,) over output-vocab tiles.
# --------------------------------------------------------------------------- #
def decoder_step_kernel(emb_ref, hid_ref, enc_ref, encterm_ref,
                        wah_ref, v_ref,
                        wx_ref, wh_ref, bx_ref, bh_ref,
                        wf_ref, fb_ref,
                        pred_ref, hout_ref,
                        fcin_ref):
    j = pl.program_id(0)
    Hp = hid_ref.shape[1]
    Ep = emb_ref.shape[1]
    Cp = enc_ref.shape[2]

    # ---- attention + GRU: computed once, fused-fc input cached in VMEM ----
    @pl.when(j == 0)
    def _():
        emb = emb_ref[...]                                   # [Bp, Ep] f32
        hid = hid_ref[...]                                   # [Bp, Hp] f32
        enc = enc_ref[...].astype(jnp.float32)               # [Bp, S, Cp]
        encterm = encterm_ref[...].astype(jnp.float32)       # [Bp, S, Hp]

        # attention:  softmax_s( v . tanh(enc_term_s + W_h h) )
        hid_term = jnp.dot(hid.astype(jnp.bfloat16), wah_ref[...],
                           preferred_element_type=jnp.float32)        # [Bp, Hp]
        energy = jnp.tanh(encterm + hid_term[:, None, :])             # [Bp, S, Hp]
        # keep these as VPU/XLU reductions (not N=1 mat-vecs)
        scores = jnp.sum(energy * v_ref[...][None], axis=2)           # [Bp, S]
        m = jnp.max(scores, axis=1, keepdims=True)
        e = jnp.exp(scores - m)
        a = e / jnp.sum(e, axis=1, keepdims=True)                     # [Bp, S]
        weighted = jnp.sum(a[:, :, None] * enc, axis=1)               # [Bp, Cp]

        # fused single GRU step; x = cat(embedded, weighted) expressed as
        # two matmuls on row-blocks of wx (no concat temporaries).
        emb_b = emb.astype(jnp.bfloat16)
        wgt_b = weighted.astype(jnp.bfloat16)
        hid_b = hid.astype(jnp.bfloat16)
        gi = (jnp.dot(emb_b, wx_ref[0:Ep, :],
                      preferred_element_type=jnp.float32)
              + jnp.dot(wgt_b, wx_ref[Ep:Ep + Cp, :],
                        preferred_element_type=jnp.float32)
              + bx_ref[...])                                          # [Bp, 3Hp]
        gh = (jnp.dot(hid_b, wh_ref[...],
                      preferred_element_type=jnp.float32)
              + bh_ref[...])                                          # [Bp, 3Hp]
        r = jax.nn.sigmoid(gi[:, 0:Hp] + gh[:, 0:Hp])
        z = jax.nn.sigmoid(gi[:, Hp:2 * Hp] + gh[:, Hp:2 * Hp])
        n = jnp.tanh(gi[:, 2 * Hp:3 * Hp] + r * gh[:, 2 * Hp:3 * Hp])
        h_new = (1.0 - z) * n + z * hid                               # [Bp, Hp]

        hout_ref[...] = h_new
        # fused fc input = cat(output, weighted, embedded), written as
        # lane-aligned slice stores into the bf16 scratch (no concatenate).
        fcin_ref[:, 0:Hp] = h_new.astype(jnp.bfloat16)
        fcin_ref[:, Hp:Hp + Cp] = wgt_b
        fcin_ref[:, Hp + Cp:] = emb_b

    # ---- fused, V-tiled output projection (every grid step, bf16 weights) ----
    pred_ref[...] = (jnp.dot(fcin_ref[...], wf_ref[...],
                             preferred_element_type=jnp.float32)
                     + fb_ref[...])


# --------------------------------------------------------------------------- #
# offline weight packing: fuse GRU gates / fc weights, pad lane-dense, bf16.
# Call ONCE per model (not per token).
# --------------------------------------------------------------------------- #
def pack_params(params, weight_dtype=jnp.bfloat16):
    V, E = params["embedding"].shape
    C, H = params["wa_e"].shape
    Ep, Cp, Hp = (_round_up(d, _LANE) for d in (E, C, H))
    Fdim = Hp + Cp + Ep
    vmem_limit = _vmem_limit_bytes()
    Vp, tV = _choose_vocab_tiling(V, Fdim, vmem_limit)

    wa_h = _pad_to(params["wa_h"], (Hp, Hp)).astype(weight_dtype)
    v = _pad_to(params["v"], (1, Hp))                       # f32: VPU reduction operand

    # GRU: Wx [Ep+Cp, 3Hp] (rows: emb then weighted), Wh [Hp, 3Hp]; (r,z,n) blocks.
    wx = jnp.zeros((Ep + Cp, 3 * Hp), jnp.float32)
    wh = jnp.zeros((Hp, 3 * Hp), jnp.float32)
    bx = jnp.zeros((1, 3 * Hp), jnp.float32)
    bh = jnp.zeros((1, 3 * Hp), jnp.float32)
    for g in range(3):
        c0 = g * Hp
        wx = wx.at[0:E, c0:c0 + H].set(params["wi_e"][g])
        wx = wx.at[Ep:Ep + C, c0:c0 + H].set(params["wi_w"][g])
        wh = wh.at[0:H, c0:c0 + H].set(params["wh"][g])
        bx = bx.at[:, c0:c0 + H].set(params["bi"][g])
        bh = bh.at[:, c0:c0 + H].set(params["bh"][g])
    wx = wx.astype(weight_dtype)
    wh = wh.astype(weight_dtype)

    # fc: rows ordered (output, weighted, embedded); columns padded to Vp.
    wf = jnp.zeros((Fdim, Vp), jnp.float32)
    wf = wf.at[0:H, 0:V].set(params["fh"])
    wf = wf.at[Hp:Hp + C, 0:V].set(params["fw"])
    wf = wf.at[Hp + Cp:Hp + Cp + E, 0:V].set(params["fe"])
    wf = wf.astype(weight_dtype)
    fb = _pad_to(params["fb"], (1, Vp))

    return dict(dims=(V, E, C, H), pdims=(Vp, Ep, Cp, Hp),
                tV=tV, vmem_limit=vmem_limit,
                wa_h=wa_h, v=v, wx=wx, wh=wh, bx=bx, bh=bh, wf=wf, fb=fb)


def precompute_encoder(params, packed, encoder_outputs, Bp,
                       act_dtype=jnp.bfloat16):
    """Step-invariant encoder work: done ONCE per source sequence."""
    _, Ep, Cp, Hp = packed["pdims"]
    enc_bsc = jnp.transpose(encoder_outputs, (1, 0, 2)).astype(jnp.float32)  # [B,S,C]
    enc_term = (jnp.einsum("bsc,ch->bsh", enc_bsc, params["wa_e"],
                           preferred_element_type=jnp.float32)
                + params["ba"][0])                                            # [B,S,H]
    S = enc_bsc.shape[1]
    enc_p = _pad_to(enc_bsc, (Bp, S, Cp)).astype(act_dtype)
    encterm_p = _pad_to(enc_term, (Bp, S, Hp)).astype(act_dtype)
    return enc_p, encterm_p


# --------------------------------------------------------------------------- #
# per-token step (the only per-token pallas_call)
# --------------------------------------------------------------------------- #
def decoder_step(packed, emb_p, hid_p, enc_p, encterm_p, *, single_buffer=True):
    Bp, S, Cp = enc_p.shape
    Hp = hid_p.shape[1]
    Ep = emb_p.shape[1]
    Fdim, Vp = packed["wf"].shape
    tV = packed["tV"]
    grid = (Vp // tV,)

    def const_spec(shape):
        idx = lambda j: (0,) * len(shape)
        if single_buffer:
            # fetched once; single-buffer to halve resident VMEM footprint
            return pl.BlockSpec(shape, idx, pipeline_mode=pl.Buffered(1))
        return pl.BlockSpec(shape, idx)

    in_specs = [
        const_spec((Bp, Ep)),               # emb
        const_spec((Bp, Hp)),               # hidden
        const_spec((Bp, S, Cp)),            # encoder outputs [B,S,C] (bf16/f32)
        const_spec((Bp, S, Hp)),            # precomputed enc @ W_e + b
        const_spec((Hp, Hp)),               # W_attn_hidden (bf16)
        const_spec((1, Hp)),                # v (f32)
        const_spec((Ep + Cp, 3 * Hp)),      # fused GRU Wx (bf16)
        const_spec((Hp, 3 * Hp)),           # fused GRU Wh (bf16)
        const_spec((1, 3 * Hp)),            # fused GRU bx (f32)
        const_spec((1, 3 * Hp)),            # fused GRU bh (f32)
        pl.BlockSpec((Fdim, tV), lambda j: (0, j)),   # fc weights, V-tiled (bf16)
        pl.BlockSpec((1, tV), lambda j: (0, j)),      # fc bias, V-tiled
    ]
    out_specs = (
        pl.BlockSpec((Bp, tV), lambda j: (0, j)),     # predictions, V-tiled (lane-dense)
        pl.BlockSpec((Bp, Hp), lambda j: (0, 0)),     # new hidden (resident, written j==0)
    )

    pred_p, h_p = pl.pallas_call(
        decoder_step_kernel,
        out_shape=(jax.ShapeDtypeStruct((Bp, Vp), jnp.float32),
                   jax.ShapeDtypeStruct((Bp, Hp), jnp.float32)),
        grid_spec=pltpu.PrefetchScalarGridSpec(
            num_scalar_prefetch=0,
            grid=grid,
            in_specs=in_specs,
            out_specs=out_specs,
            scratch_shapes=[pltpu.VMEM((Bp, Fdim), jnp.bfloat16)]),
        compiler_params=pltpu.CompilerParams(
            dimension_semantics=("arbitrary",),          # fc tiles consume j==0 scratch
            vmem_limit_bytes=packed["vmem_limit"]),
    )(emb_p, hid_p, enc_p, encterm_p,
      packed["wa_h"], packed["v"],
      packed["wx"], packed["wh"], packed["bx"], packed["bh"],
      packed["wf"], packed["fb"])
    return pred_p, h_p


def decoder_forward(params, trg_last, hidden, encoder_outputs, *, fast=True):
    """Single decode step, matching Decoder.forward(trg_last, hidden, encoder_outputs).

    trg_last [B] int32, hidden [B, H], encoder_outputs [S, B, C] (torch layout).
    In a real decode loop, pack_params / precompute_encoder are the once-per-
    model / once-per-sequence stages; only the block below runs per token.
    """
    packed = pack_params(params)
    V, E, C, H = packed["dims"]
    Vp, Ep, Cp, Hp = packed["pdims"]

    B = trg_last.shape[0]
    Bp = _round_up(B, _SUBLANE)

    act_dtype = jnp.bfloat16 if fast else jnp.float32
    enc_p, encterm_p = precompute_encoder(params, packed, encoder_outputs, Bp,
                                          act_dtype=act_dtype)

    # ---- per-token path ----
    # glue: embedding gather.  dropout == identity (eval mode).
    emb = jnp.take(params["embedding"], trg_last, axis=0).astype(jnp.float32)  # [B, E]
    emb_p = _pad_to(emb, (Bp, Ep))
    hid_p = _pad_to(hidden.astype(jnp.float32), (Bp, Hp))

    pred_p, h_p = decoder_step(packed, emb_p, hid_p, enc_p, encterm_p,
                               single_buffer=fast)
    return pred_p[:B, :V], h_p[:B, :H]


# --------------------------------------------------------------------------- #
# pure-JAX reference (mirrors the PyTorch forward) + parameter construction
# --------------------------------------------------------------------------- #
def reference(params, trg_last, hidden, encoder_outputs):
    emb = jnp.take(params["embedding"], trg_last, axis=0)
    enc_b = jnp.transpose(encoder_outputs, (1, 0, 2))                 # [B, S, C]
    B, H = hidden.shape
    S = enc_b.shape[1]
    hid_rep = jnp.broadcast_to(hidden[:, None, :], (B, S, H))
    cat = jnp.concatenate([hid_rep, enc_b], axis=2)                   # cat(hidden, enc)
    W_attn = jnp.concatenate([params["wa_h"], params["wa_e"]], axis=0)
    energy = jnp.tanh(cat @ W_attn + params["ba"][0])
    scores = jnp.einsum("bsh,h->bs", energy, params["v"][0])
    a = jax.nn.softmax(scores, axis=1)
    weighted = jnp.einsum("bs,bsc->bc", a, enc_b)
    x = jnp.concatenate([emb, weighted], axis=1)                      # cat(embedded, weighted)
    Wi = jnp.concatenate([params["wi_e"], params["wi_w"]], axis=1)    # [3, E+C, H]
    gi = jnp.einsum("bi,gio->gbo", x, Wi) + params["bi"]
    gh = jnp.einsum("bh,gho->gbo", hidden, params["wh"]) + params["bh"]
    r = jax.nn.sigmoid(gi[0] + gh[0])
    z = jax.nn.sigmoid(gi[1] + gh[1])
    n = jnp.tanh(gi[2] + r * gh[2])
    h_new = (1.0 - z) * n + z * hidden
    out_cat = jnp.concatenate([h_new, weighted, emb], axis=1)         # cat(output, weighted, emb)
    Wf = jnp.concatenate([params["fh"], params["fw"], params["fe"]], axis=0)
    pred = out_cat @ Wf + params["fb"][0]
    return pred, h_new


def make_params(key, output_dim, emb_dim, enc_hid_dim, dec_hid_dim):
    C = 2 * enc_hid_dim
    E, H, V = emb_dim, dec_hid_dim, output_dim
    ks = jax.random.split(key, 16)
    s = 0.1
    return {
        "embedding": jax.random.normal(ks[0], (V, E), jnp.float32) * s,
        "wa_h": jax.random.normal(ks[1], (H, H), jnp.float32) * s,
        "wa_e": jax.random.normal(ks[2], (C, H), jnp.float32) * s,
        "ba":   jax.random.normal(ks[3], (1, H), jnp.float32) * s,
        "v":    jax.random.normal(ks[4], (1, H), jnp.float32) * s,
        "wi_e": jax.random.normal(ks[5], (3, E, H), jnp.float32) * s,
        "wi_w": jax.random.normal(ks[6], (3, C, H), jnp.float32) * s,
        "wh":   jax.random.normal(ks[7], (3, H, H), jnp.float32) * s,
        "bi":   jax.random.normal(ks[8], (3, 1, H), jnp.float32) * s,
        "bh":   jax.random.normal(ks[9], (3, 1, H), jnp.float32) * s,
        "fh": jax.random.normal(ks[10], (H, V), jnp.float32) * s,
        "fw": jax.random.normal(ks[11], (C, V), jnp.float32) * s,
        "fe": jax.random.normal(ks[12], (E, V), jnp.float32) * s,
        "fb": jax.random.normal(ks[13], (1, V), jnp.float32) * s,
    }


if __name__ == "__main__":
    # small deterministic config
    output_dim, emb_dim, enc_hid_dim, dec_hid_dim = 64, 32, 16, 32
    B, S = 4, 8
    C = 2 * enc_hid_dim

    key = jax.random.PRNGKey(0)
    kp, k1, k2, k3 = jax.random.split(key, 4)
    params = make_params(kp, output_dim, emb_dim, enc_hid_dim, dec_hid_dim)

    trg_last = jax.random.randint(k1, (B,), 0, output_dim, dtype=jnp.int32)     # [B]
    hidden = jax.random.normal(k2, (B, dec_hid_dim), jnp.float32)               # [B, H]
    encoder_outputs = jax.random.normal(k3, (S, B, C), jnp.float32)             # [S, B, C]

    def run(fast):
        fwd = jax.jit(functools.partial(decoder_forward, fast=fast))
        out = fwd(params, trg_last, hidden, encoder_outputs)
        jax.block_until_ready(out)
        return out

    try:
        pred, h_new = run(True)
    except Exception:
        # Conservative fallback: f32 encoder residents + default double-buffering.
        pred, h_new = run(False)

    pred_ref, h_ref = reference(params, trg_last, hidden, encoder_outputs)
    assert pred.shape == (B, output_dim) and h_new.shape == (B, dec_hid_dim)
    # bf16 weight/activation storage loosens the match vs. the f32 reference.
    assert jnp.allclose(pred, pred_ref, atol=5e-2, rtol=5e-2)
    assert jnp.allclose(h_new, h_ref, atol=5e-2, rtol=5e-2)
    print("KERNEL_OK")
</pallas_src>

<mosaic_0001>
module attributes {stable_mosaic.version = 11 : i64} {
  func.func @decoder_step_kernel(%arg0: i32, %arg1: memref<8x128xf32, #tpu.memory_space<vmem>>, %arg2: memref<8x128xf32, #tpu.memory_space<vmem>>, %arg3: memref<8x8x128xbf16, #tpu.memory_space<vmem>>, %arg4: memref<8x8x128xbf16, #tpu.memory_space<vmem>>, %arg5: memref<128x128xbf16, #tpu.memory_space<vmem>>, %arg6: memref<1x128xf32, #tpu.memory_space<vmem>>, %arg7: memref<256x384xbf16, #tpu.memory_space<vmem>>, %arg8: memref<128x384xbf16, #tpu.memory_space<vmem>>, %arg9: memref<1x384xf32, #tpu.memory_space<vmem>>, %arg10: memref<1x384xf32, #tpu.memory_space<vmem>>, %arg11: memref<384x256xbf16, #tpu.memory_space<vmem>>, %arg12: memref<1x256xf32, #tpu.memory_space<vmem>>, %arg13: memref<8x256xf32, #tpu.memory_space<vmem>>, %arg14: memref<8x128xf32, #tpu.memory_space<vmem>>, %arg15: memref<8x384xbf16, #tpu.memory_space<vmem>>) attributes {dimension_semantics = [#tpu.dimension_semantics<arbitrary>], iteration_bounds = array<i64: 1>, scalar_prefetch = 0 : i64, scratch_operands = 1 : i64, tpu.core_type = #tpu.core_type<tc>, window_params = [{pipeline_mode = #tpu.pipeline_mode<synchronous>, transform_indices = @transform_0, window_bounds = array<i64: 8, 128>}, {pipeline_mode = #tpu.pipeline_mode<synchronous>, transform_indices = @transform_1, window_bounds = array<i64: 8, 128>}, {pipeline_mode = #tpu.pipeline_mode<synchronous>, transform_indices = @transform_2, window_bounds = array<i64: 8, 8, 128>}, {pipeline_mode = #tpu.pipeline_mode<synchronous>, transform_indices = @transform_3, window_bounds = array<i64: 8, 8, 128>}, {pipeline_mode = #tpu.pipeline_mode<synchronous>, transform_indices = @transform_4, window_bounds = array<i64: 128, 128>}, {pipeline_mode = #tpu.pipeline_mode<synchronous>, transform_indices = @transform_5, window_bounds = array<i64: 1, 128>}, {pipeline_mode = #tpu.pipeline_mode<synchronous>, transform_indices = @transform_6, window_bounds = array<i64: 256, 384>}, {pipeline_mode = #tpu.pipeline_mode<synchronous>, transform_indices = @transform_7, window_bounds = array<i64: 128, 384>}, {pipeline_mode = #tpu.pipeline_mode<synchronous>, transform_indices = @transform_8, window_bounds = array<i64: 1, 384>}, {pipeline_mode = #tpu.pipeline_mode<synchronous>, transform_indices = @transform_9, window_bounds = array<i64: 1, 384>}, {transform_indices = @transform_10, window_bounds = array<i64: 384, 256>}, {transform_indices = @transform_11, window_bounds = array<i64: 1, 256>}, {transform_indices = @transform_12, window_bounds = array<i64: 8, 256>}, {pipeline_mode = #tpu.pipeline_mode<synchronous>, transform_indices = @transform_13, window_bounds = array<i64: 8, 128>}]} {
    %c0_i32 = arith.constant 0 : i32
    %0 = arith.cmpi eq, %arg0, %c0_i32 : i32
    %1 = arith.extui %0 : i1 to i32
    %c0_i32_0 = arith.constant 0 : i32
    %2 = arith.cmpi ne, %1, %c0_i32_0 : i32
    scf.if %2 {
      %c0_8 = arith.constant 0 : index
      %c0_9 = arith.constant 0 : index
      %10 = vector.load %arg1[%c0_8, %c0_9] : memref<8x128xf32, #tpu.memory_space<vmem>>, vector<8x128xf32>
      %c0_10 = arith.constant 0 : index
      %c0_11 = arith.constant 0 : index
      %11 = vector.load %arg2[%c0_10, %c0_11] : memref<8x128xf32, #tpu.memory_space<vmem>>, vector<8x128xf32>
      %c0_12 = arith.constant 0 : index
      %c0_13 = arith.constant 0 : index
      %c0_14 = arith.constant 0 : index
      %12 = vector.load %arg3[%c0_12, %c0_13, %c0_14] : memref<8x8x128xbf16, #tpu.memory_space<vmem>>, vector<8x8x128xbf16>
      %13 = arith.extf %12 : vector<8x8x128xbf16> to vector<8x8x128xf32>
      %c0_15 = arith.constant 0 : index
      %c0_16 = arith.constant 0 : index
      %c0_17 = arith.constant 0 : index
      %14 = vector.load %arg4[%c0_15, %c0_16, %c0_17] : memref<8x8x128xbf16, #tpu.memory_space<vmem>>, vector<8x8x128xbf16>
      %15 = arith.extf %14 : vector<8x8x128xbf16> to vector<8x8x128xf32>
      %16 = arith.truncf %11 : vector<8x128xf32> to vector<8x128xbf16>
      %c0_18 = arith.constant 0 : index
      %c0_19 = arith.constant 0 : index
      %17 = vector.load %arg5[%c0_18, %c0_19] : memref<128x128xbf16, #tpu.memory_space<vmem>>, vector<128x128xbf16>
      %cst_20 = arith.constant dense<0.000000e+00> : vector<8x128xf32>
      %18 = tpu.matmul %16, %17, %cst_20 {dimension_numbers = #tpu.dot_dimension_numbers<[1], [0], [0], [1], [0, 0, 1, 1], [], []>} : vector<8x128xbf16>, vector<128x128xbf16>, vector<8x128xf32> -> vector<8x128xf32>
      %19 = vector.shape_cast %18 : vector<8x128xf32> to vector<8x1x128xf32>
      %20 = vector.broadcast %19 : vector<8x1x128xf32> to vector<8x8x128xf32>
      %21 = arith.addf %15, %20 : vector<8x8x128xf32>
      %22 = math.tanh %21 : vector<8x8x128xf32>
      %c0_21 = arith.constant 0 : index
      %c0_22 = arith.constant 0 : index
      %23 = vector.load %arg6[%c0_21, %c0_22] : memref<1x128xf32, #tpu.memory_space<vmem>>, vector<1x128xf32>
      %24 = vector.shape_cast %23 : vector<1x128xf32> to vector<1x1x128xf32>
      %25 = vector.broadcast %24 : vector<1x1x128xf32> to vector<8x8x128xf32>
      %26 = arith.mulf %22, %25 : vector<8x8x128xf32>
      %cst_23 = arith.constant dense<0.000000e+00> : vector<8x8xf32>
      %27 = vector.multi_reduction <add>, %26, %cst_23 [2] : vector<8x8x128xf32> to vector<8x8xf32>
      %cst_24 = arith.constant dense<0xFF800000> : vector<8xf32>
      %28 = vector.multi_reduction <maximumf>, %27, %cst_24 [1] : vector<8x8xf32> to vector<8xf32>
      %29 = vector.shape_cast %28 : vector<8xf32> to vector<8x1xf32>
      %30 = vector.broadcast %29 : vector<8x1xf32> to vector<8x8xf32>
      %31 = arith.subf %27, %30 : vector<8x8xf32>
      %32 = math.exp %31 : vector<8x8xf32>
      %cst_25 = arith.constant dense<0.000000e+00> : vector<8xf32>
      %33 = vector.multi_reduction <add>, %32, %cst_25 [1] : vector<8x8xf32> to vector<8xf32>
      %34 = vector.shape_cast %33 : vector<8xf32> to vector<8x1xf32>
      %35 = vector.broadcast %34 : vector<8x1xf32> to vector<8x8xf32>
      %36 = arith.divf %32, %35 : vector<8x8xf32>
      %37 = vector.shape_cast %36 : vector<8x8xf32> to vector<8x8x1xf32>
      %38 = vector.broadcast %37 : vector<8x8x1xf32> to vector<8x8x128xf32>
      %39 = arith.mulf %38, %13 : vector<8x8x128xf32>
      %cst_26 = arith.constant dense<0.000000e+00> : vector<8x128xf32>
      %40 = vector.multi_reduction <add>, %39, %cst_26 [1] : vector<8x8x128xf32> to vector<8x128xf32>
      %41 = arith.truncf %10 : vector<8x128xf32> to vector<8x128xbf16>
      %42 = arith.truncf %40 : vector<8x128xf32> to vector<8x128xbf16>
      %43 = arith.truncf %11 : vector<8x128xf32> to vector<8x128xbf16>
      %c0_27 = arith.constant 0 : index
      %c0_28 = arith.constant 0 : index
      %44 = vector.load %arg7[%c0_27, %c0_28] : memref<256x384xbf16, #tpu.memory_space<vmem>>, vector<128x384xbf16>
      %cst_29 = arith.constant dense<0.000000e+00> : vector<8x384xf32>
      %45 = tpu.matmul %41, %44, %cst_29 {dimension_numbers = #tpu.dot_dimension_numbers<[1], [0], [0], [1], [0, 0, 1, 1], [], []>} : vector<8x128xbf16>, vector<128x384xbf16>, vector<8x384xf32> -> vector<8x384xf32>
      %c128 = arith.constant 128 : index
      %c0_30 = arith.constant 0 : index
      %46 = vector.load %arg7[%c128, %c0_30] : memref<256x384xbf16, #tpu.memory_space<vmem>>, vector<128x384xbf16>
      %cst_31 = arith.constant dense<0.000000e+00> : vector<8x384xf32>
      %47 = tpu.matmul %42, %46, %cst_31 {dimension_numbers = #tpu.dot_dimension_numbers<[1], [0], [0], [1], [0, 0, 1, 1], [], []>} : vector<8x128xbf16>, vector<128x384xbf16>, vector<8x384xf32> -> vector<8x384xf32>
      %48 = arith.addf %45, %47 : vector<8x384xf32>
      %c0_32 = arith.constant 0 : index
      %c0_33 = arith.constant 0 : index
      %49 = vector.load %arg9[%c0_32, %c0_33] : memref<1x384xf32, #tpu.memory_space<vmem>>, vector<1x384xf32>
      %50 = vector.broadcast %49 : vector<1x384xf32> to vector<8x384xf32>
      %51 = arith.addf %48, %50 : vector<8x384xf32>
      %c0_34 = arith.constant 0 : index
      %c0_35 = arith.constant 0 : index
      %52 = vector.load %arg8[%c0_34, %c0_35] : memref<128x384xbf16, #tpu.memory_space<vmem>>, vector<128x384xbf16>
      %cst_36 = arith.constant dense<0.000000e+00> : vector<8x384xf32>
      %53 = tpu.matmul %43, %52, %cst_36 {dimension_numbers = #tpu.dot_dimension_numbers<[1], [0], [0], [1], [0, 0, 1, 1], [], []>} : vector<8x128xbf16>, vector<128x384xbf16>, vector<8x384xf32> -> vector<8x384xf32>
      %c0_37 = arith.constant 0 : index
      %c0_38 = arith.constant 0 : index
      %54 = vector.load %arg10[%c0_37, %c0_38] : memref<1x384xf32, #tpu.memory_space<vmem>>, vector<1x384xf32>
      %55 = vector.broadcast %54 : vector<1x384xf32> to vector<8x384xf32>
      %56 = arith.addf %53, %55 : vector<8x384xf32>
      %57 = vector.extract_strided_slice %51 {offsets = [0, 0], sizes = [8, 128], strides = [1, 1]} : vector<8x384xf32> to vector<8x128xf32>
      %58 = vector.extract_strided_slice %56 {offsets = [0, 0], sizes = [8, 128], strides = [1, 1]} : vector<8x384xf32> to vector<8x128xf32>
      %59 = arith.addf %57, %58 : vector<8x128xf32>
      %60 = arith.negf %59 : vector<8x128xf32>
      %61 = math.exp %60 : vector<8x128xf32>
      %cst_39 = arith.constant 1.000000e+00 : f32
      %62 = vector.broadcast %cst_39 : f32 to vector<8x128xf32>
      %63 = arith.addf %62, %61 : vector<8x128xf32>
      %64 = arith.divf %62, %63 : vector<8x128xf32>
      %65 = vector.extract_strided_slice %51 {offsets = [0, 128], sizes = [8, 128], strides = [1, 1]} : vector<8x384xf32> to vector<8x128xf32>
      %66 = vector.extract_strided_slice %56 {offsets = [0, 128], sizes = [8, 128], strides = [1, 1]} : vector<8x384xf32> to vector<8x128xf32>
      %67 = arith.addf %65, %66 : vector<8x128xf32>
      %68 = arith.negf %67 : vector<8x128xf32>
      %69 = math.exp %68 : vector<8x128xf32>
      %cst_40 = arith.constant 1.000000e+00 : f32
      %70 = vector.broadcast %cst_40 : f32 to vector<8x128xf32>
      %71 = arith.addf %70, %69 : vector<8x128xf32>
      %72 = arith.divf %70, %71 : vector<8x128xf32>
      %73 = vector.extract_strided_slice %51 {offsets = [0, 256], sizes = [8, 128], strides = [1, 1]} : vector<8x384xf32> to vector<8x128xf32>
      %74 = vector.extract_strided_slice %56 {offsets = [0, 256], sizes = [8, 128], strides = [1, 1]} : vector<8x384xf32> to vector<8x128xf32>
      %75 = arith.mulf %64, %74 : vector<8x128xf32>
      %76 = arith.addf %73, %75 : vector<8x128xf32>
      %77 = math.tanh %76 : vector<8x128xf32>
      %cst_41 = arith.constant 1.000000e+00 : f32
      %78 = vector.broadcast %cst_41 : f32 to vector<8x128xf32>
      %79 = arith.subf %78, %72 : vector<8x128xf32>
      %80 = arith.mulf %79, %77 : vector<8x128xf32>
      %81 = arith.mulf %72, %11 : vector<8x128xf32>
      %82 = arith.addf %80, %81 : vector<8x128xf32>
      %c0_42 = arith.constant 0 : index
      %c0_43 = arith.constant 0 : index
      %83 = vector.load %arg14[%c0_42, %c0_43] : memref<8x128xf32, #tpu.memory_space<vmem>>, vector<8x128xf32>
      tpu.vector_store %arg14[%c0_42, %c0_43], %82 {strides = array<i32>} : memref<8x128xf32, #tpu.memory_space<vmem>>, vector<8x128xf32>,
      %84 = arith.truncf %82 : vector<8x128xf32> to vector<8x128xbf16>
      %c0_44 = arith.constant 0 : index
      %c0_45 = arith.constant 0 : index
      %85 = vector.load %arg15[%c0_44, %c0_45] : memref<8x384xbf16, #tpu.memory_space<vmem>>, vector<8x128xbf16>
      tpu.vector_store %arg15[%c0_44, %c0_45], %84 {strides = array<i32>} : memref<8x384xbf16, #tpu.memory_space<vmem>>, vector<8x128xbf16>,
      %c0_46 = arith.constant 0 : index
      %c128_47 = arith.constant 128 : index
      %86 = vector.load %arg15[%c0_46, %c128_47] : memref<8x384xbf16, #tpu.memory_space<vmem>>, vector<8x128xbf16>
      tpu.vector_store %arg15[%c0_46, %c128_47], %42 {strides = array<i32>} : memref<8x384xbf16, #tpu.memory_space<vmem>>, vector<8x128xbf16>,
      %c0_48 = arith.constant 0 : index
      %c256 = arith.constant 256 : index
      %87 = vector.load %arg15[%c0_48, %c256] : memref<8x384xbf16, #tpu.memory_space<vmem>>, vector<8x128xbf16>
      tpu.vector_store %arg15[%c0_48, %c256], %41 {strides = array<i32>} : memref<8x384xbf16, #tpu.memory_space<vmem>>, vector<8x128xbf16>,
    } else {
    }
    %c0 = arith.constant 0 : index
    %c0_1 = arith.constant 0 : index
    %3 = vector.load %arg15[%c0, %c0_1] : memref<8x384xbf16, #tpu.memory_space<vmem>>, vector<8x384xbf16>
    %c0_2 = arith.constant 0 : index
    %c0_3 = arith.constant 0 : index
    %4 = vector.load %arg11[%c0_2, %c0_3] : memref<384x256xbf16, #tpu.memory_space<vmem>>, vector<384x256xbf16>
    %cst = arith.constant dense<0.000000e+00> : vector<8x256xf32>
    %5 = tpu.matmul %3, %4, %cst {dimension_numbers = #tpu.dot_dimension_numbers<[1], [0], [0], [1], [0, 0, 1, 1], [], []>} : vector<8x384xbf16>, vector<384x256xbf16>, vector<8x256xf32> -> vector<8x256xf32>
    %c0_4 = arith.constant 0 : index
    %c0_5 = arith.constant 0 : index
    %6 = vector.load %arg12[%c0_4, %c0_5] : memref<1x256xf32, #tpu.memory_space<vmem>>, vector<1x256xf32>
    %7 = vector.broadcast %6 : vector<1x256xf32> to vector<8x256xf32>
    %8 = arith.addf %5, %7 : vector<8x256xf32>
    %c0_6 = arith.constant 0 : index
    %c0_7 = arith.constant 0 : index
    %9 = vector.load %arg13[%c0_6, %c0_7] : memref<8x256xf32, #tpu.memory_space<vmem>>, vector<8x256xf32>
    tpu.vector_store %arg13[%c0_6, %c0_7], %8 {strides = array<i32>} : memref<8x256xf32, #tpu.memory_space<vmem>>, vector<8x256xf32>,
    return
  }
  func.func @transform_0(%arg0: i32) -> (i32, i32) {
    %c0_i32 = arith.constant 0 : i32
    %c0_i32_0 = arith.constant 0 : i32
    %c0_i32_1 = arith.constant 0 : i32
    return %c0_i32, %c0_i32_0 : i32, i32
  }
  func.func @transform_1(%arg0: i32) -> (i32, i32) {
    %c0_i32 = arith.constant 0 : i32
    %c0_i32_0 = arith.constant 0 : i32
    %c0_i32_1 = arith.constant 0 : i32
    return %c0_i32, %c0_i32_0 : i32, i32
  }
  func.func @transform_2(%arg0: i32) -> (i32, i32, i32) {
    %c0_i32 = arith.constant 0 : i32
    %c0_i32_0 = arith.constant 0 : i32
    %c0_i32_1 = arith.constant 0 : i32
    %c0_i32_2 = arith.constant 0 : i32
    return %c0_i32, %c0_i32_0, %c0_i32_1 : i32, i32, i32
  }
  func.func @transform_3(%arg0: i32) -> (i32, i32, i32) {
    %c0_i32 = arith.constant 0 : i32
    %c0_i32_0 = arith.constant 0 : i32
    %c0_i32_1 = arith.constant 0 : i32
    %c0_i32_2 = arith.constant 0 : i32
    return %c0_i32, %c0_i32_0, %c0_i32_1 : i32, i32, i32
  }
  func.func @transform_4(%arg0: i32) -> (i32, i32) {
    %c0_i32 = arith.constant 0 : i32
    %c0_i32_0 = arith.constant 0 : i32
    %c0_i32_1 = arith.constant 0 : i32
    return %c0_i32, %c0_i32_0 : i32, i32
  }
  func.func @transform_5(%arg0: i32) -> (i32, i32) {
    %c0_i32 = arith.constant 0 : i32
    %c0_i32_0 = arith.constant 0 : i32
    %c0_i32_1 = arith.constant 0 : i32
    return %c0_i32, %c0_i32_0 : i32, i32
  }
  func.func @transform_6(%arg0: i32) -> (i32, i32) {
    %c0_i32 = arith.constant 0 : i32
    %c0_i32_0 = arith.constant 0 : i32
    %c0_i32_1 = arith.constant 0 : i32
    return %c0_i32, %c0_i32_0 : i32, i32
  }
  func.func @transform_7(%arg0: i32) -> (i32, i32) {
    %c0_i32 = arith.constant 0 : i32
    %c0_i32_0 = arith.constant 0 : i32
    %c0_i32_1 = arith.constant 0 : i32
    return %c0_i32, %c0_i32_0 : i32, i32
  }
  func.func @transform_8(%arg0: i32) -> (i32, i32) {
    %c0_i32 = arith.constant 0 : i32
    %c0_i32_0 = arith.constant 0 : i32
    %c0_i32_1 = arith.constant 0 : i32
    return %c0_i32, %c0_i32_0 : i32, i32
  }
  func.func @transform_9(%arg0: i32) -> (i32, i32) {
    %c0_i32 = arith.constant 0 : i32
    %c0_i32_0 = arith.constant 0 : i32
    %c0_i32_1 = arith.constant 0 : i32
    return %c0_i32, %c0_i32_0 : i32, i32
  }
  func.func @transform_10(%arg0: i32) -> (i32, i32) {
    %c0_i32 = arith.constant 0 : i32
    %c0_i32_0 = arith.constant 0 : i32
    return %c0_i32, %arg0 : i32, i32
  }
  func.func @transform_11(%arg0: i32) -> (i32, i32) {
    %c0_i32 = arith.constant 0 : i32
    %c0_i32_0 = arith.constant 0 : i32
    return %c0_i32, %arg0 : i32, i32
  }
  func.func @transform_12(%arg0: i32) -> (i32, i32) {
    %c0_i32 = arith.constant 0 : i32
    %c0_i32_0 = arith.constant 0 : i32
    return %c0_i32, %arg0 : i32, i32
  }
  func.func @transform_13(%arg0: i32) -> (i32, i32) {
    %c0_i32 = arith.constant 0 : i32
    %c0_i32_0 = arith.constant 0 : i32
    %c0_i32_1 = arith.constant 0 : i32
    return %c0_i32, %c0_i32_0 : i32, i32
  }
}

module attributes {stable_mosaic.version = 11 : i64} {
  func.func @decoder_step_kernel(%arg0: i32, %arg1: memref<8x128xf32, #tpu.memory_space<vmem>>, %arg2: memref<8x128xf32, #tpu.memory_space<vmem>>, %arg3: memref<8x8x128xf32, #tpu.memory_space<vmem>>, %arg4: memref<8x8x128xf32, #tpu.memory_space<vmem>>, %arg5: memref<128x128xbf16, #tpu.memory_space<vmem>>, %arg6: memref<1x128xf32, #tpu.memory_space<vmem>>, %arg7: memref<256x384xbf16, #tpu.memory_space<vmem>>, %arg8: memref<128x384xbf16, #tpu.memory_space<vmem>>, %arg9: memref<1x384xf32, #tpu.memory_space<vmem>>, %arg10: memref<1x384xf32, #tpu.memory_space<vmem>>, %arg11: memref<384x256xbf16, #tpu.memory_space<vmem>>, %arg12: memref<1x256xf32, #tpu.memory_space<vmem>>, %arg13: memref<8x256xf32, #tpu.memory_space<vmem>>, %arg14: memref<8x128xf32, #tpu.memory_space<vmem>>, %arg15: memref<8x384xbf16, #tpu.memory_space<vmem>>) attributes {dimension_semantics = [#tpu.dimension_semantics<arbitrary>], iteration_bounds = array<i64: 1>, scalar_prefetch = 0 : i64, scratch_operands = 1 : i64, tpu.core_type = #tpu.core_type<tc>, window_params = [{pipeline_mode = #tpu.pipeline_mode<synchronous>, transform_indices = @transform_0, window_bounds = array<i64: 8, 128>}, {pipeline_mode = #tpu.pipeline_mode<synchronous>, transform_indices = @transform_1, window_bounds = array<i64: 8, 128>}, {pipeline_mode = #tpu.pipeline_mode<synchronous>, transform_indices = @transform_2, window_bounds = array<i64: 8, 8, 128>}, {pipeline_mode = #tpu.pipeline_mode<synchronous>, transform_indices = @transform_3, window_bounds = array<i64: 8, 8, 128>}, {pipeline_mode = #tpu.pipeline_mode<synchronous>, transform_indices = @transform_4, window_bounds = array<i64: 128, 128>}, {pipeline_mode = #tpu.pipeline_mode<synchronous>, transform_indices = @transform_5, window_bounds = array<i64: 1, 128>}, {pipeline_mode = #tpu.pipeline_mode<synchronous>, transform_indices = @transform_6, window_bounds = array<i64: 256, 384>}, {pipeline_mode = #tpu.pipeline_mode<synchronous>, transform_indices = @transform_7, window_bounds = array<i64: 128, 384>}, {pipeline_mode = #tpu.pipeline_mode<synchronous>, transform_indices = @transform_8, window_bounds = array<i64: 1, 384>}, {pipeline_mode = #tpu.pipeline_mode<synchronous>, transform_indices = @transform_9, window_bounds = array<i64: 1, 384>}, {transform_indices = @transform_10, window_bounds = array<i64: 384, 256>}, {transform_indices = @transform_11, window_bounds = array<i64: 1, 256>}, {transform_indices = @transform_12, window_bounds = array<i64: 8, 256>}, {pipeline_mode = #tpu.pipeline_mode<synchronous>, transform_indices = @transform_13, window_bounds = array<i64: 8, 128>}]} {
    %c0_i32 = arith.constant 0 : i32
    %0 = arith.cmpi eq, %arg0, %c0_i32 : i32
    %1 = arith.extui %0 : i1 to i32
    %c0_i32_0 = arith.constant 0 : i32
    %2 = arith.cmpi ne, %1, %c0_i32_0 : i32
    scf.if %2 {
      %c0_8 = arith.constant 0 : index
      %c0_9 = arith.constant 0 : index
      %10 = vector.load %arg1[%c0_8, %c0_9] : memref<8x128xf32, #tpu.memory_space<vmem>>, vector<8x128xf32>
      %c0_10 = arith.constant 0 : index
      %c0_11 = arith.constant 0 : index
      %11 = vector.load %arg2[%c0_10, %c0_11] : memref<8x128xf32, #tpu.memory_space<vmem>>, vector<8x128xf32>
      %c0_12 = arith.constant 0 : index
      %c0_13 = arith.constant 0 : index
      %c0_14 = arith.constant 0 : index
      %12 = vector.load %arg3[%c0_12, %c0_13, %c0_14] : memref<8x8x128xf32, #tpu.memory_space<vmem>>, vector<8x8x128xf32>
      %c0_15 = arith.constant 0 : index
      %c0_16 = arith.constant 0 : index
      %c0_17 = arith.constant 0 : index
      %13 = vector.load %arg4[%c0_15, %c0_16, %c0_17] : memref<8x8x128xf32, #tpu.memory_space<vmem>>, vector<8x8x128xf32>
      %14 = arith.truncf %11 : vector<8x128xf32> to vector<8x128xbf16>
      %c0_18 = arith.constant 0 : index
      %c0_19 = arith.constant 0 : index
      %15 = vector.load %arg5[%c0_18, %c0_19] : memref<128x128xbf16, #tpu.memory_space<vmem>>, vector<128x128xbf16>
      %cst_20 = arith.constant dense<0.000000e+00> : vector<8x128xf32>
      %16 = tpu.matmul %14, %15, %cst_20 {dimension_numbers = #tpu.dot_dimension_numbers<[1], [0], [0], [1], [0, 0, 1, 1], [], []>} : vector<8x128xbf16>, vector<128x128xbf16>, vector<8x128xf32> -> vector<8x128xf32>
      %17 = vector.shape_cast %16 : vector<8x128xf32> to vector<8x1x128xf32>
      %18 = vector.broadcast %17 : vector<8x1x128xf32> to vector<8x8x128xf32>
      %19 = arith.addf %13, %18 : vector<8x8x128xf32>
      %20 = math.tanh %19 : vector<8x8x128xf32>
      %c0_21 = arith.constant 0 : index
      %c0_22 = arith.constant 0 : index
      %21 = vector.load %arg6[%c0_21, %c0_22] : memref<1x128xf32, #tpu.memory_space<vmem>>, vector<1x128xf32>
      %22 = vector.shape_cast %21 : vector<1x128xf32> to vector<1x1x128xf32>
      %23 = vector.broadcast %22 : vector<1x1x128xf32> to vector<8x8x128xf32>
      %24 = arith.mulf %20, %23 : vector<8x8x128xf32>
      %cst_23 = arith.constant dense<0.000000e+00> : vector<8x8xf32>
      %25 = vector.multi_reduction <add>, %24, %cst_23 [2] : vector<8x8x128xf32> to vector<8x8xf32>
      %cst_24 = arith.constant dense<0xFF800000> : vector<8xf32>
      %26 = vector.multi_reduction <maximumf>, %25, %cst_24 [1] : vector<8x8xf32> to vector<8xf32>
      %27 = vector.shape_cast %26 : vector<8xf32> to vector<8x1xf32>
      %28 = vector.broadcast %27 : vector<8x1xf32> to vector<8x8xf32>
      %29 = arith.subf %25, %28 : vector<8x8xf32>
      %30 = math.exp %29 : vector<8x8xf32>
      %cst_25 = arith.constant dense<0.000000e+00> : vector<8xf32>
      %31 = vector.multi_reduction <add>, %30, %cst_25 [1] : vector<8x8xf32> to vector<8xf32>
      %32 = vector.shape_cast %31 : vector<8xf32> to vector<8x1xf32>
      %33 = vector.broadcast %32 : vector<8x1xf32> to vector<8x8xf32>
      %34 = arith.divf %30, %33 : vector<8x8xf32>
      %35 = vector.shape_cast %34 : vector<8x8xf32> to vector<8x8x1xf32>
      %36 = vector.broadcast %35 : vector<8x8x1xf32> to vector<8x8x128xf32>
      %37 = arith.mulf %36, %12 : vector<8x8x128xf32>
      %cst_26 = arith.constant dense<0.000000e+00> : vector<8x128xf32>
      %38 = vector.multi_reduction <add>, %37, %cst_26 [1] : vector<8x8x128xf32> to vector<8x128xf32>
      %39 = arith.truncf %10 : vector<8x128xf32> to vector<8x128xbf16>
      %40 = arith.truncf %38 : vector<8x128xf32> to vector<8x128xbf16>
      %41 = arith.truncf %11 : vector<8x128xf32> to vector<8x128xbf16>
      %c0_27 = arith.constant 0 : index
      %c0_28 = arith.constant 0 : index
      %42 = vector.load %arg7[%c0_27, %c0_28] : memref<256x384xbf16, #tpu.memory_space<vmem>>, vector<128x384xbf16>
      %cst_29 = arith.constant dense<0.000000e+00> : vector<8x384xf32>
      %43 = tpu.matmul %39, %42, %cst_29 {dimension_numbers = #tpu.dot_dimension_numbers<[1], [0], [0], [1], [0, 0, 1, 1], [], []>} : vector<8x128xbf16>, vector<128x384xbf16>, vector<8x384xf32> -> vector<8x384xf32>
      %c128 = arith.constant 128 : index
      %c0_30 = arith.constant 0 : index
      %44 = vector.load %arg7[%c128, %c0_30] : memref<256x384xbf16, #tpu.memory_space<vmem>>, vector<128x384xbf16>
      %cst_31 = arith.constant dense<0.000000e+00> : vector<8x384xf32>
      %45 = tpu.matmul %40, %44, %cst_31 {dimension_numbers = #tpu.dot_dimension_numbers<[1], [0], [0], [1], [0, 0, 1, 1], [], []>} : vector<8x128xbf16>, vector<128x384xbf16>, vector<8x384xf32> -> vector<8x384xf32>
      %46 = arith.addf %43, %45 : vector<8x384xf32>
      %c0_32 = arith.constant 0 : index
      %c0_33 = arith.constant 0 : index
      %47 = vector.load %arg9[%c0_32, %c0_33] : memref<1x384xf32, #tpu.memory_space<vmem>>, vector<1x384xf32>
      %48 = vector.broadcast %47 : vector<1x384xf32> to vector<8x384xf32>
      %49 = arith.addf %46, %48 : vector<8x384xf32>
      %c0_34 = arith.constant 0 : index
      %c0_35 = arith.constant 0 : index
      %50 = vector.load %arg8[%c0_34, %c0_35] : memref<128x384xbf16, #tpu.memory_space<vmem>>, vector<128x384xbf16>
      %cst_36 = arith.constant dense<0.000000e+00> : vector<8x384xf32>
      %51 = tpu.matmul %41, %50, %cst_36 {dimension_numbers = #tpu.dot_dimension_numbers<[1], [0], [0], [1], [0, 0, 1, 1], [], []>} : vector<8x128xbf16>, vector<128x384xbf16>, vector<8x384xf32> -> vector<8x384xf32>
      %c0_37 = arith.constant 0 : index
      %c0_38 = arith.constant 0 : index
      %52 = vector.load %arg10[%c0_37, %c0_38] : memref<1x384xf32, #tpu.memory_space<vmem>>, vector<1x384xf32>
      %53 = vector.broadcast %52 : vector<1x384xf32> to vector<8x384xf32>
      %54 = arith.addf %51, %53 : vector<8x384xf32>
      %55 = vector.extract_strided_slice %49 {offsets = [0, 0], sizes = [8, 128], strides = [1, 1]} : vector<8x384xf32> to vector<8x128xf32>
      %56 = vector.extract_strided_slice %54 {offsets = [0, 0], sizes = [8, 128], strides = [1, 1]} : vector<8x384xf32> to vector<8x128xf32>
      %57 = arith.addf %55, %56 : vector<8x128xf32>
      %58 = arith.negf %57 : vector<8x128xf32>
      %59 = math.exp %58 : vector<8x128xf32>
      %cst_39 = arith.constant 1.000000e+00 : f32
      %60 = vector.broadcast %cst_39 : f32 to vector<8x128xf32>
      %61 = arith.addf %60, %59 : vector<8x128xf32>
      %62 = arith.divf %60, %61 : vector<8x128xf32>
      %63 = vector.extract_strided_slice %49 {offsets = [0, 128], sizes = [8, 128], strides = [1, 1]} : vector<8x384xf32> to vector<8x128xf32>
      %64 = vector.extract_strided_slice %54 {offsets = [0, 128], sizes = [8, 128], strides = [1, 1]} : vector<8x384xf32> to vector<8x128xf32>
      %65 = arith.addf %63, %64 : vector<8x128xf32>
      %66 = arith.negf %65 : vector<8x128xf32>
      %67 = math.exp %66 : vector<8x128xf32>
      %cst_40 = arith.constant 1.000000e+00 : f32
      %68 = vector.broadcast %cst_40 : f32 to vector<8x128xf32>
      %69 = arith.addf %68, %67 : vector<8x128xf32>
      %70 = arith.divf %68, %69 : vector<8x128xf32>
      %71 = vector.extract_strided_slice %49 {offsets = [0, 256], sizes = [8, 128], strides = [1, 1]} : vector<8x384xf32> to vector<8x128xf32>
      %72 = vector.extract_strided_slice %54 {offsets = [0, 256], sizes = [8, 128], strides = [1, 1]} : vector<8x384xf32> to vector<8x128xf32>
      %73 = arith.mulf %62, %72 : vector<8x128xf32>
      %74 = arith.addf %71, %73 : vector<8x128xf32>
      %75 = math.tanh %74 : vector<8x128xf32>
      %cst_41 = arith.constant 1.000000e+00 : f32
      %76 = vector.broadcast %cst_41 : f32 to vector<8x128xf32>
      %77 = arith.subf %76, %70 : vector<8x128xf32>
      %78 = arith.mulf %77, %75 : vector<8x128xf32>
      %79 = arith.mulf %70, %11 : vector<8x128xf32>
      %80 = arith.addf %78, %79 : vector<8x128xf32>
      %c0_42 = arith.constant 0 : index
      %c0_43 = arith.constant 0 : index
      %81 = vector.load %arg14[%c0_42, %c0_43] : memref<8x128xf32, #tpu.memory_space<vmem>>, vector<8x128xf32>
      tpu.vector_store %arg14[%c0_42, %c0_43], %80 {strides = array<i32>} : memref<8x128xf32, #tpu.memory_space<vmem>>, vector<8x128xf32>,
      %82 = arith.truncf %80 : vector<8x128xf32> to vector<8x128xbf16>
      %c0_44 = arith.constant 0 : index
      %c0_45 = arith.constant 0 : index
      %83 = vector.load %arg15[%c0_44, %c0_45] : memref<8x384xbf16, #tpu.memory_space<vmem>>, vector<8x128xbf16>
      tpu.vector_store %arg15[%c0_44, %c0_45], %82 {strides = array<i32>} : memref<8x384xbf16, #tpu.memory_space<vmem>>, vector<8x128xbf16>,
      %c0_46 = arith.constant 0 : index
      %c128_47 = arith.constant 128 : index
      %84 = vector.load %arg15[%c0_46, %c128_47] : memref<8x384xbf16, #tpu.memory_space<vmem>>, vector<8x128xbf16>
      tpu.vector_store %arg15[%c0_46, %c128_47], %40 {strides = array<i32>} : memref<8x384xbf16, #tpu.memory_space<vmem>>, vector<8x128xbf16>,
      %c0_48 = arith.constant 0 : index
      %c256 = arith.constant 256 : index
      %85 = vector.load %arg15[%c0_48, %c256] : memref<8x384xbf16, #tpu.memory_space<vmem>>, vector<8x128xbf16>
      tpu.vector_store %arg15[%c0_48, %c256], %39 {strides = array<i32>} : memref<8x384xbf16, #tpu.memory_space<vmem>>, vector<8x128xbf16>,
    } else {
    }
    %c0 = arith.constant 0 : index
    %c0_1 = arith.constant 0 : index
    %3 = vector.load %arg15[%c0, %c0_1] : memref<8x384xbf16, #tpu.memory_space<vmem>>, vector<8x384xbf16>
    %c0_2 = arith.constant 0 : index
    %c0_3 = arith.constant 0 : index
    %4 = vector.load %arg11[%c0_2, %c0_3] : memref<384x256xbf16, #tpu.memory_space<vmem>>, vector<384x256xbf16>
    %cst = arith.constant dense<0.000000e+00> : vector<8x256xf32>
    %5 = tpu.matmul %3, %4, %cst {dimension_numbers = #tpu.dot_dimension_numbers<[1], [0], [0], [1], [0, 0, 1, 1], [], []>} : vector<8x384xbf16>, vector<384x256xbf16>, vector<8x256xf32> -> vector<8x256xf32>
    %c0_4 = arith.constant 0 : index
    %c0_5 = arith.constant 0 : index
    %6 = vector.load %arg12[%c0_4, %c0_5] : memref<1x256xf32, #tpu.memory_space<vmem>>, vector<1x256xf32>
    %7 = vector.broadcast %6 : vector<1x256xf32> to vector<8x256xf32>
    %8 = arith.addf %5, %7 : vector<8x256xf32>
    %c0_6 = arith.constant 0 : index
    %c0_7 = arith.constant 0 : index
    %9 = vector.load %arg13[%c0_6, %c0_7] : memref<8x256xf32, #tpu.memory_space<vmem>>, vector<8x256xf32>
    tpu.vector_store %arg13[%c0_6, %c0_7], %8 {strides = array<i32>} : memref<8x256xf32, #tpu.memory_space<vmem>>, vector<8x256xf32>,
    return
  }
  func.func @transform_0(%arg0: i32) -> (i32, i32) {
    %c0_i32 = arith.constant 0 : i32
    %c0_i32_0 = arith.constant 0 : i32
    %c0_i32_1 = arith.constant 0 : i32
    return %c0_i32, %c0_i32_0 : i32, i32
  }
  func.func @transform_1(%arg0: i32) -> (i32, i32) {
    %c0_i32 = arith.constant 0 : i32
    %c0_i32_0 = arith.constant 0 : i32
    %c0_i32_1 = arith.constant 0 : i32
    return %c0_i32, %c0_i32_0 : i32, i32
  }
  func.func @transform_2(%arg0: i32) -> (i32, i32, i32) {
    %c0_i32 = arith.constant 0 : i32
    %c0_i32_0 = arith.constant 0 : i32
    %c0_i32_1 = arith.constant 0 : i32
    %c0_i32_2 = arith.constant 0 : i32
    return %c0_i32, %c0_i32_0, %c0_i32_1 : i32, i32, i32
  }
  func.func @transform_3(%arg0: i32) -> (i32, i32, i32) {
    %c0_i32 = arith.constant 0 : i32
    %c0_i32_0 = arith.constant 0 : i32
    %c0_i32_1 = arith.constant 0 : i32
    %c0_i32_2 = arith.constant 0 : i32
    return %c0_i32, %c0_i32_0, %c0_i32_1 : i32, i32, i32
  }
  func.func @transform_4(%arg0: i32) -> (i32, i32) {
    %c0_i32 = arith.constant 0 : i32
    %c0_i32_0 = arith.constant 0 : i32
    %c0_i32_1 = arith.constant 0 : i32
    return %c0_i32, %c0_i32_0 : i32, i32
  }
  func.func @transform_5(%arg0: i32) -> (i32, i32) {
    %c0_i32 = arith.constant 0 : i32
    %c0_i32_0 = arith.constant 0 : i32
    %c0_i32_1 = arith.constant 0 : i32
    return %c0_i32, %c0_i32_0 : i32, i32
  }
  func.func @transform_6(%arg0: i32) -> (i32, i32) {
    %c0_i32 = arith.constant 0 : i32
    %c0_i32_0 = arith.constant 0 : i32
    %c0_i32_1 = arith.constant 0 : i32
    return %c0_i32, %c0_i32_0 : i32, i32
  }
  func.func @transform_7(%arg0: i32) -> (i32, i32) {
    %c0_i32 = arith.constant 0 : i32
    %c0_i32_0 = arith.constant 0 : i32
    %c0_i32_1 = arith.constant 0 : i32
    return %c0_i32, %c0_i32_0 : i32, i32
  }
  func.func @transform_8(%arg0: i32) -> (i32, i32) {
    %c0_i32 = arith.constant 0 : i32
    %c0_i32_0 = arith.constant 0 : i32
    %c0_i32_1 = arith.constant 0 : i32
    return %c0_i32, %c0_i32_0 : i32, i32
  }
  func.func @transform_9(%arg0: i32) -> (i32, i32) {
    %c0_i32 = arith.constant 0 : i32
    %c0_i32_0 = arith.constant 0 : i32
    %c0_i32_1 = arith.constant 0 : i32
    return %c0_i32, %c0_i32_0 : i32, i32
  }
  func.func @transform_10(%arg0: i32) -> (i32, i32) {
    %c0_i32 = arith.constant 0 : i32
    %c0_i32_0 = arith.constant 0 : i32
    return %c0_i32, %arg0 : i32, i32
  }
  func.func @transform_11(%arg0: i32) -> (i32, i32) {
    %c0_i32 = arith.constant 0 : i32
    %c0_i32_0 = arith.constant 0 : i32
    return %c0_i32, %arg0 : i32, i32
  }
  func.func @transform_12(%arg0: i32) -> (i32, i32) {
    %c0_i32 = arith.constant 0 : i32
    %c0_i32_0 = arith.constant 0 : i32
    return %c0_i32, %arg0 : i32, i32
  }
  func.func @transform_13(%arg0: i32) -> (i32, i32) {
    %c0_i32 = arith.constant 0 : i32
    %c0_i32_0 = arith.constant 0 : i32
    %c0_i32_1 = arith.constant 0 : i32
    return %c0_i32, %c0_i32_0 : i32, i32
  }
}

</mosaic_0001>

<bundles_post_ra>
// kernel: decoder_forward.1
= control target key start
LH: loop header
LB: loop body
LE: loop exit
PB: predicated region body
PF: predicated region fallthrough
CT: control target
= control target key end

     0   :  { %19 = vsyncpa [#allocation4], 0  ;;  %s3492_s0 = inlined_call_operand.hbm [shape: f32[8,128], index: 0, kind: input, shape index: {}]   ;;  %s3493_s1 = inlined_call_operand.hbm [shape: f32[8,128], index: 1, kind: input, shape index: {}]   ;;  %s3494_s2 = inlined_call_operand.hbm [shape: bf16[8,8,128], index: 2, kind: input, shape index: {}]   ;;  %s3495_s3 = inlined_call_operand.hbm [shape: bf16[8,8,128], index: 3, kind: input, shape index: {}]   ;;  %s3496_s4 = inlined_call_operand.hbm [shape: bf16[128,128], index: 4, kind: input, shape index: {}]   ;;  %s3497_s5 = inlined_call_operand.hbm [shape: f32[1,128], index: 5, kind: input, shape index: {}]   ;;  %s3498_s6 = inlined_call_operand.hbm [shape: bf16[256,384], index: 6, kind: input, shape index: {}]   ;;  %s3499_s7 = inlined_call_operand.hbm [shape: bf16[128,384], index: 7, kind: input, shape index: {}]   ;;  %s3500_s8 = inlined_call_operand.hbm [shape: f32[1,384], index: 8, kind: input, shape index: {}]   ;;  %s3501_s9 = inlined_call_operand.hbm [shape: f32[1,384], index: 9, kind: input, shape index: {}]   ;;  %s3502_s10 = inlined_call_operand.hbm [shape: bf16[384,256], index: 10, kind: input, shape index: {}]   ;;  %s3503_s11 = inlined_call_operand.hbm [shape: f32[1,256], index: 11, kind: input, shape index: {}]   ;;  %s3504_s12 = inlined_call_operand.hbm [shape: f32[8,256], index: 12, kind: output, shape index: {0}]   ;;  %s3505_s13 = inlined_call_operand.hbm [shape: f32[8,128], index: 13, kind: output, shape index: {1}]  }
   0x1   :  { %20 = vsyncpa [#allocation7], 0 }
   0x2   :  { %21 = vsyncpa [#allocation10], 0 }
   0x3   :  { %22 = vsyncpa [#allocation13], 0 }
   0x4   :  { %23 = vsyncpa [#allocation16], 0 }
   0x5   :  { %24 = vsyncpa [#allocation19], 0 }
   0x6   :  { %25 = vsyncpa [#allocation22], 0 }
   0x7   :  { %26 = vsyncpa [#allocation5], 0 }
   0x8   :  { %27 = vsyncpa [#allocation25], 0  ;;  %s3018_s25 = smov [#allocation6]   ;;  %s2692_s29 = scalar_lea.hbm %s3493_s1, 128 }
   0x9   :  { %s44_s26 = sshll.u32 %s3018_s25, 4  ;;  %p2693_p0 = scmp.ne.s32.totalorder %s3493_s1, %s2692_s29  ;;  %s45_s26 = int_to_ptr.vmem [resolvable:$true] %s44_s26 }
   0xa   :  { %p2696_p1 = scmp.lt.u32.totalorder %s2692_s29, %s3493_s1 }
   0xc   :  { %p2698_p2 = pnand %p2696_p1, %p2693_p0 }
   0xe   :  { %2701 = shalt.err (!%p2698_p2)
}
   0xf   :  { %s2702_s17 = scalar_lea.vmem %s45_s26, 128  ;;  %p2707_p4 = scmp.lt.s32.totalorder %s45_s26, %s45_s26 }
  0x10   :  { %p2703_p3 = scmp.ne.s32.totalorder %s45_s26, %s2702_s17  ;;  %p2708_p5 = scmp.lt.s32.totalorder %s2702_s17, %s2702_s17 }
  0x12   :  { %p2709_p6 = por %p2708_p5, %p2707_p4 }
  0x14   :  { %p2710_p7 = pnand %p2709_p6, %p2703_p3 }
  0x16   :  { %2713 = shalt.err (!%p2710_p7)
}
  0x17   :  { %47 = dma.hbm_to_vmem [thread:$0]  %s3493_s1, 128, %s45_s26, [#allocation7]  }
  0x18   :  { %s3019_s20 = smov [#allocation9]   ;;  %s3020_s22 = smov [#allocation12]  }
  0x19   :  { %s65_s21 = sshll.u32 %s3019_s20, 4  ;;  %s90_s23 = sshll.u32 %s3020_s22, 4  ;;  %s66_s21 = int_to_ptr.vmem [resolvable:$true] %s65_s21  ;;  %s91_s23 = int_to_ptr.vmem [resolvable:$true] %s90_s23 }
  0x1a   :  { %s2714_s27 = scalar_lea.hbm %s3495_s3, 512 }
  0x1b   :  { %p2715_p8 = scmp.ne.s32.totalorder %s3495_s3, %s2714_s27  ;;  %p2718_p9 = scmp.lt.u32.totalorder %s2714_s27, %s3495_s3 }
  0x1d   :  { %p2720_p10 = pnand %p2718_p9, %p2715_p8 }
  0x1f   :  { %2723 = shalt.err (!%p2720_p10)
}
  0x20   :  { %s2724_s1 = scalar_lea.vmem %s66_s21, 512  ;;  %p2729_p12 = scmp.lt.s32.totalorder %s66_s21, %s66_s21 }
  0x21   :  { %p2725_p11 = scmp.ne.s32.totalorder %s66_s21, %s2724_s1  ;;  %p2730_p13 = scmp.lt.s32.totalorder %s2724_s1, %s2724_s1 }
  0x23   :  { %p2731_p0 = por %p2730_p13, %p2729_p12 }
  0x25   :  { %p2732_p1 = pnand %p2731_p0, %p2725_p11 }
  0x27   :  { %2735 = shalt.err (!%p2732_p1)
}
  0x28   :  { %s3021_s26 = smov 64   ;;  %s3022_s15 = smov 4  }
  0x29   :  { %71 = dma.hbm_to_vmem [thread:$0]  %s3495_s3, 512, %s66_s21, [#allocation10], %s3021_s26, %s3021_s26, %s3022_s15  }
  0x2a   :  { %s2736_s20 = scalar_lea.hbm %s3497_s5, 16 }
  0x2b   :  { %p2737_p2 = scmp.ne.s32.totalorder %s3497_s5, %s2736_s20  ;;  %p2740_p3 = scmp.lt.u32.totalorder %s2736_s20, %s3497_s5 }
  0x2d   :  { %p2742_p4 = pnand %p2740_p3, %p2737_p2 }
  0x2f   :  { %2745 = shalt.err (!%p2742_p4)
}
  0x30   :  { %s2746_s28 = scalar_lea.vmem %s91_s23, 16  ;;  %s2750_s29 = scalar_lea.vmem %s91_s23, 32 }
  0x31   :  { %p2747_p5 = scmp.ne.s32.totalorder %s91_s23, %s2746_s28  ;;  %p2751_p6 = scmp.lt.s32.totalorder %s91_s23, %s91_s23 }
  0x32   :  { %p2752_p7 = scmp.lt.s32.totalorder %s2750_s29, %s2746_s28 }
  0x34   :  { %p2753_p8 = por %p2752_p7, %p2751_p6 }
  0x36   :  { %p2754_p9 = pnand %p2753_p8, %p2747_p5 }
  0x38   :  { %2757 = shalt.err (!%p2754_p9)
}
  0x39   :  { %93 = dma.hbm_to_vmem [thread:$0]  %s3497_s5, 16, %s91_s23, [#allocation13]  }
  0x3a   :  { %s3023_s30 = smov [#allocation15]   ;;  %s3024_s1 = smov [#allocation18]  }
  0x3b   :  { %s111_s14 = sshll.u32 %s3023_s30, 4  ;;  %s134_s16 = sshll.u32 %s3024_s1, 4  ;;  %s112_s14 = int_to_ptr.vmem [resolvable:$true] %s111_s14  ;;  %s135_s16 = int_to_ptr.vmem [resolvable:$true] %s134_s16 }
  0x3c   :  { %s2758_s19 = scalar_lea.hbm %s3499_s7, 3072 }
  0x3d   :  { %p2759_p10 = scmp.ne.s32.totalorder %s3499_s7, %s2758_s19  ;;  %p2762_p11 = scmp.lt.u32.totalorder %s2758_s19, %s3499_s7 }
  0x3f   :  { %p2764_p12 = pnand %p2762_p11, %p2759_p10 }
  0x41   :  { %2767 = shalt.err (!%p2764_p12)
}
  0x42   :  { %s2768_s5 = scalar_lea.vmem %s112_s14, 3072  ;;  %p2773_p0 = scmp.lt.s32.totalorder %s112_s14, %s112_s14 }
  0x43   :  { %p2769_p13 = scmp.ne.s32.totalorder %s112_s14, %s2768_s5  ;;  %p2774_p1 = scmp.lt.s32.totalorder %s2768_s5, %s2768_s5 }
  0x45   :  { %p2775_p2 = por %p2774_p1, %p2773_p0 }
  0x47   :  { %p2776_p3 = pnand %p2775_p2, %p2769_p13 }
  0x49   :  { %2779 = shalt.err (!%p2776_p3)
}
  0x4a   :  { %s3025_s23 = smov 192   ;;  %s3026_s27 = smov 12  }
  0x4b   :  { %117 = dma.hbm_to_vmem [thread:$0]  %s3499_s7, 3072, %s112_s14, [#allocation16], %s3025_s23, %s3025_s23, %s3026_s27  }
  0x4c   :  { %s2780_s30 = scalar_lea.hbm %s3501_s9, 48 }
  0x4d   :  { %p2781_p4 = scmp.ne.s32.totalorder %s3501_s9, %s2780_s30  ;;  %p2784_p5 = scmp.lt.u32.totalorder %s2780_s30, %s3501_s9 }
  0x4f   :  { %p2786_p6 = pnand %p2784_p5, %p2781_p4 }
  0x51   :  { %2789 = shalt.err (!%p2786_p6)
}
  0x52   :  { %s2790_s20 = scalar_lea.vmem %s135_s16, 48  ;;  %s2794_s22 = scalar_lea.vmem %s135_s16, 64 }
  0x53   :  { %p2791_p7 = scmp.ne.s32.totalorder %s135_s16, %s2790_s20  ;;  %p2795_p8 = scmp.lt.s32.totalorder %s135_s16, %s135_s16 }
  0x54   :  { %p2796_p9 = scmp.lt.s32.totalorder %s2794_s22, %s2790_s20 }
  0x56   :  { %p2797_p10 = por %p2796_p9, %p2795_p8 }
  0x58   :  { %p2798_p11 = pnand %p2797_p10, %p2791_p7 }
  0x5a   :  { %2801 = shalt.err (!%p2798_p11)
}
  0x5b   :  { %137 = dma.hbm_to_vmem [thread:$0]  %s3501_s9, 48, %s135_s16, [#allocation19]  }
  0x5c   :  { %s3027_s24 = smov [#allocation3]   ;;  %s3028_s5 = smov [#allocation8]  }
  0x5d   :  { %s34_s25 = sshll.u32 %s3027_s24, 4  ;;  %s53_s28 = sshll.u32 %s3028_s5, 4  ;;  %s35_s25 = int_to_ptr.vmem [resolvable:$true] %s34_s25  ;;  %s54_s28 = int_to_ptr.vmem [resolvable:$true] %s53_s28 }
  0x5e   :  { %s2802_s21 = scalar_lea.hbm %s3492_s0, 128 }
  0x5f   :  { %p2803_p12 = scmp.ne.s32.totalorder %s3492_s0, %s2802_s21  ;;  %p2806_p13 = scmp.lt.u32.totalorder %s2802_s21, %s3492_s0 }
  0x61   :  { %p2808_p0 = pnand %p2806_p13, %p2803_p12 }
  0x63   :  { %2811 = shalt.err (!%p2808_p0)
}
  0x64   :  { %s2812_s9 = scalar_lea.vmem %s35_s25, 128  ;;  %p2817_p2 = scmp.lt.s32.totalorder %s35_s25, %s35_s25 }
  0x65   :  { %p2813_p1 = scmp.ne.s32.totalorder %s35_s25, %s2812_s9  ;;  %p2818_p3 = scmp.lt.s32.totalorder %s2812_s9, %s2812_s9 }
  0x67   :  { %p2819_p4 = por %p2818_p3, %p2817_p2 }
  0x69   :  { %p2820_p5 = pnand %p2819_p4, %p2813_p1 }
  0x6b   :  { %2823 = shalt.err (!%p2820_p5)
}
  0x6c   :  { %37 = dma.hbm_to_vmem [thread:$0]  %s3492_s0, 128, %s35_s25, [#allocation4]  }
  0x6d   :  { %s2824_s7 = scalar_lea.hbm %s3494_s2, 512 }
  0x6e   :  { %p2825_p6 = scmp.ne.s32.totalorder %s3494_s2, %s2824_s7  ;;  %p2828_p7 = scmp.lt.u32.totalorder %s2824_s7, %s3494_s2 }
  0x70   :  { %p2830_p8 = pnand %p2828_p7, %p2825_p6 }
  0x72   :  { %2833 = shalt.err (!%p2830_p8)
}
  0x73   :  { %s2834_s3 = scalar_lea.vmem %s54_s28, 512  ;;  %p2839_p10 = scmp.lt.s32.totalorder %s54_s28, %s54_s28 }
  0x74   :  { %p2835_p9 = scmp.ne.s32.totalorder %s54_s28, %s2834_s3  ;;  %p2840_p11 = scmp.lt.s32.totalorder %s2834_s3, %s2834_s3 }
  0x76   :  { %p2841_p12 = por %p2840_p11, %p2839_p10 }
  0x78   :  { %p2842_p13 = pnand %p2841_p12, %p2835_p9 }
  0x7a   :  { %2845 = shalt.err (!%p2842_p13)
}
  0x7b   :  { %59 = dma.hbm_to_vmem [thread:$0]  %s3494_s2, 512, %s54_s28, [#allocation7], %s3021_s26, %s3021_s26, %s3022_s15  }
  0x7c   :  { %s3029_s21 = smov [#allocation11]   ;;  %s3030_s1 = smov [#allocation14]  }
  0x7d   :  { %s77_s30 = sshll.u32 %s3029_s21, 4  ;;  %s99_s17 = sshll.u32 %s3030_s1, 4  ;;  %s78_s30 = int_to_ptr.vmem [resolvable:$true] %s77_s30  ;;  %s100_s17 = int_to_ptr.vmem [resolvable:$true] %s99_s17 }
  0x7e   :  { %s2846_s16 = scalar_lea.hbm %s3496_s4, 1024 }
  0x7f   :  { %p2847_p0 = scmp.ne.s32.totalorder %s3496_s4, %s2846_s16  ;;  %p2850_p1 = scmp.lt.u32.totalorder %s2846_s16, %s3496_s4 }
  0x81   :  { %p2852_p2 = pnand %p2850_p1, %p2847_p0 }
  0x83   :  { %2855 = shalt.err (!%p2852_p2)
}
  0x84   :  { %s2856_s2 = scalar_lea.vmem %s78_s30, 1024  ;;  %p2861_p4 = scmp.lt.s32.totalorder %s78_s30, %s78_s30 }
  0x85   :  { %p2857_p3 = scmp.ne.s32.totalorder %s78_s30, %s2856_s2  ;;  %p2862_p5 = scmp.lt.s32.totalorder %s2856_s2, %s2856_s2 }
  0x87   :  { %p2863_p6 = por %p2862_p5, %p2861_p4 }
  0x89   :  { %p2864_p7 = pnand %p2863_p6, %p2857_p3 }
  0x8b   :  { %2867 = shalt.err (!%p2864_p7)
}
  0x8c   :  { %83 = dma.hbm_to_vmem [thread:$0]  %s3496_s4, 1024, %s78_s30, [#allocation10], %s3021_s26, %s3021_s26, %s3022_s15  }
  0x8d   :  { %s2868_s29 = scalar_lea.hbm %s3498_s6, 6144 }
  0x8e   :  { %p2869_p8 = scmp.ne.s32.totalorder %s3498_s6, %s2868_s29  ;;  %p2872_p9 = scmp.lt.u32.totalorder %s2868_s29, %s3498_s6 }
  0x90   :  { %p2874_p10 = pnand %p2872_p9, %p2869_p8 }
  0x92   :  { %2877 = shalt.err (!%p2874_p10)
}
  0x93   :  { %s2878_s1 = scalar_lea.vmem %s100_s17, 6144  ;;  %p2883_p12 = scmp.lt.s32.totalorder %s100_s17, %s100_s17 }
  0x94   :  { %p2879_p11 = scmp.ne.s32.totalorder %s100_s17, %s2878_s1  ;;  %p2884_p13 = scmp.lt.s32.totalorder %s2878_s1, %s2878_s1 }
  0x96   :  { %p2885_p0 = por %p2884_p13, %p2883_p12 }
  0x98   :  { %p2886_p1 = pnand %p2885_p0, %p2879_p11 }
  0x9a   :  { %2889 = shalt.err (!%p2886_p1)
}
  0x9b   :  { %105 = dma.hbm_to_vmem [thread:$0]  %s3498_s6, 6144, %s100_s17, [#allocation13], %s3025_s23, %s3025_s23, %s3026_s27  }
  0x9c   :  { %s3031_s15 = smov [#allocation17]   ;;  %s3032_s18 = smov [#allocation20]  }
  0x9d   :  { %s124_s30 = sshll.u32 %s3031_s15, 4  ;;  %s143_s9 = sshll.u32 %s3032_s18, 4  ;;  %s125_s30 = int_to_ptr.vmem [resolvable:$true] %s124_s30  ;;  %s144_s9 = int_to_ptr.vmem [resolvable:$true] %s143_s9 }
  0x9e   :  { %s2890_s20 = scalar_lea.hbm %s3500_s8, 48 }
  0x9f   :  { %p2891_p2 = scmp.ne.s32.totalorder %s3500_s8, %s2890_s20  ;;  %p2894_p3 = scmp.lt.u32.totalorder %s2890_s20, %s3500_s8 }
  0xa1   :  { %p2896_p4 = pnand %p2894_p3, %p2891_p2 }
  0xa3   :  { %2899 = shalt.err (!%p2896_p4)
}
  0xa4   :  { %s2900_s6 = scalar_lea.vmem %s125_s30, 48  ;;  %s2904_s23 = scalar_lea.vmem %s125_s30, 64 }
  0xa5   :  { %p2901_p5 = scmp.ne.s32.totalorder %s125_s30, %s2900_s6  ;;  %p2905_p6 = scmp.lt.s32.totalorder %s125_s30, %s125_s30 }
  0xa6   :  { %p2906_p7 = scmp.lt.s32.totalorder %s2904_s23, %s2900_s6 }
  0xa8   :  { %p2907_p8 = por %p2906_p7, %p2905_p6 }
  0xaa   :  { %p2908_p9 = pnand %p2907_p8, %p2901_p5 }
  0xac   :  { %2911 = shalt.err (!%p2908_p9)
}
  0xad   :  { %127 = dma.hbm_to_vmem [thread:$0]  %s3500_s8, 48, %s125_s30, [#allocation16]  }
  0xae   :  { %s2912_s5 = scalar_lea.hbm %s3502_s10, 6144 }
  0xaf   :  { %p2913_p10 = scmp.ne.s32.totalorder %s3502_s10, %s2912_s5  ;;  %p2916_p11 = scmp.lt.u32.totalorder %s2912_s5, %s3502_s10 }
  0xb1   :  { %p2918_p12 = pnand %p2916_p11, %p2913_p10 }
  0xb3   :  { %2921 = shalt.err (!%p2918_p12)
}
  0xb4   :  { %s2922_s21 = scalar_lea.vmem %s144_s9, 6144  ;;  %p2927_p0 = scmp.lt.s32.totalorder %s144_s9, %s144_s9 }
  0xb5   :  { %p2923_p13 = scmp.ne.s32.totalorder %s144_s9, %s2922_s21  ;;  %p2928_p1 = scmp.lt.s32.totalorder %s2922_s21, %s2922_s21 }
  0xb7   :  { %p2929_p2 = por %p2928_p1, %p2927_p0 }
  0xb9   :  { %p2930_p3 = pnand %p2929_p2, %p2923_p13 }
  0xbb   :  { %2933 = shalt.err (!%p2930_p3)
}
  0xbc   :  { %s3033_s8 = smov 128   ;;  %s3034_s1 = smov 8  }
  0xbd   :  { %149 = dma.hbm_to_vmem [thread:$0]  %s3502_s10, 6144, %s144_s9, [#allocation19], %s3033_s8, %s3033_s8, %s3034_s1  }
  0xbe   :  { %s3035_s15 = smov [#allocation21]   ;;  %s2934_s19 = scalar_lea.hbm %s3503_s11, 32 }
  0xbf   :  { %s156_s30 = sshll.u32 %s3035_s15, 4  ;;  %p2935_p4 = scmp.ne.s32.totalorder %s3503_s11, %s2934_s19  ;;  %s157_s30 = int_to_ptr.vmem [resolvable:$true] %s156_s30 }
  0xc0   :  { %p2938_p5 = scmp.lt.u32.totalorder %s2934_s19, %s3503_s11 }
  0xc2   :  { %p2940_p6 = pnand %p2938_p5, %p2935_p4 }
  0xc4   :  { %2943 = shalt.err (!%p2940_p6)
}
  0xc5   :  { %s2944_s28 = scalar_lea.vmem %s157_s30, 32  ;;  %p2949_p8 = scmp.lt.s32.totalorder %s157_s30, %s157_s30 }
  0xc6   :  { %p2945_p7 = scmp.ne.s32.totalorder %s157_s30, %s2944_s28  ;;  %p2950_p9 = scmp.lt.s32.totalorder %s2944_s28, %s2944_s28 }
  0xc8   :  { %p2951_p10 = por %p2950_p9, %p2949_p8 }
  0xca   :  { %p2952_p11 = pnand %p2951_p10, %p2945_p7 }
  0xcc   :  { %2955 = shalt.err (!%p2952_p11)
}
  0xcd   :  { %159 = dma.hbm_to_vmem [thread:$0]  %s3503_s11, 32, %s157_s30, [#allocation22]  }
  0xce   :  { %3000 = dma.done.wait [#allocation4], 128  }
  0xcf   :  { %3001 = vsyncadd [#allocation4], 4294967168 }
  0xd0   :  { %3002 = dma.done.wait [#allocation7], 640  }
  0xd1   :  { %3003 = vsyncadd [#allocation7], 4294966656 }
  0xd2   :  { %3004 = dma.done.wait [#allocation10], 1536  }
  0xd3   :  { %3005 = vsyncadd [#allocation10], 4294965760 }
  0xd4   :  { %3006 = dma.done.wait [#allocation13], 6160  }
  0xd5   :  { %3007 = vsyncadd [#allocation13], 4294961136 }
  0xd6   :  { %3008 = dma.done.wait [#allocation16], 3120  }
  0xd7   :  { %3009 = vsyncadd [#allocation16], 4294964176 }
  0xd8   :  { %3010 = dma.done.wait [#allocation19], 6192  }
  0xd9   :  { %3011 = vsyncadd [#allocation19], 4294961104 }
  0xda   :  { %3012 = dma.done.wait [#allocation22], 32  }
  0xdb   :  { %3013 = vsyncadd [#allocation22], 4294967264  ;;  %v3036_v0 = vmov 0.0   ;;  %vm3037_vm0 = vmmov 0   ;;  %v2454_v1 = vld [vmem:[#allocation11] sm:$0xff]   ;;  %v2455_v2 = vld [vmem:[#allocation11 + $0x8] sm:$0xff]   ;;  %v345_v13 = vlaneseq }
  0xdc   :  { %2332 = vmatprep.subr.bf16.mxu0 %v3036_v0  ;;  %2348 = vmatprep.mubr.msk.bf16.mxu0 %vm3037_vm0, %v3036_v0  ;;  %v2456_v3 = vld [vmem:[#allocation11 + $0x10] sm:$0xff]   ;;  %v2457_v4 = vld [vmem:[#allocation11 + $0x18] sm:$0xff]   ;;  %v2458_v5 = vld [vmem:[#allocation11 + $0x20] sm:$0xff]   ;;  %v3038_v11 = vmov 1966171168   ;;  %vm519_vm1 = vcmask 1041409  }
  0xdd   :  { %2333 = vmatpush3.bf16.msra.mxu0 %v2454_v1  ;;  %v2459_v6 = vld [vmem:[#allocation11 + $0x28] sm:$0xff]   ;;  %v2460_v7 = vld [vmem:[#allocation11 + $0x30] sm:$0xff]   ;;  %v2461_v8 = vld [vmem:[#allocation11 + $0x38] sm:$0xff]   ;;  %v343_v12 = vunpack.c.l.s4 %v3038_v11  ;;  %v3285_v15 = vshrl.u32 %v345_v13, 7  ;;  %vm521_vm2 = vcmask 1042434   ;;  %vm523_vm3 = vcmask 1043459  }
  0xde   :  { %2334 = vmatprep.subr.bf16.mxu0 %v3036_v0  ;;  %v202_v9 = vld [vmem:[#allocation6] sm:$0xff]  ;;  %v2275_v18 = vld [vmem:[#allocation9] sm:$0xff]   ;;  %v2293_v24 = vld [vmem:[#allocation9 + $0x8] sm:$0xff]   ;;  %vm525_vm4 = vcmask 1044484   ;;  %vm527_vm5 = vcmask 1045509   ;;  %vm529_vm6 = vcmask 1046534  }
  0xdf   :  { %v3281_v10 = vpack.c.bf16 %v202_v9, %v202_v9  ;;  %v344_v14 = vunpack.c.0.s8 %v343_v12  ;;  %v3289_v22 = vsub.s32 0, %v3285_v15  ;;  %v2276_v29 = vunpack.c.l.bf16 %v2275_v18  ;;  %v2294_v30 = vld [vmem:[#allocation9 + $0x10] sm:$0xff]   ;;  %v2295_v47 = vld [vmem:[#allocation9 + $0x18] sm:$0xff]   ;;  %v2116_v62 = vld [vmem:[#allocation12] ss:$0 sm:$0xff]  ;;  %s3040_s11 = smov [#allocation24]  }
  0xe0   :  { %v2277_v35 = vunpack.c.h.bf16 %v2275_v18  ;;  %v2280_v36 = vunpack.c.l.bf16 %v2293_v24  ;;  %v2281_v37 = vunpack.c.h.bf16 %v2293_v24  ;;  %v2284_v39 = vunpack.c.l.bf16 %v2294_v30  ;;  %s2089_s6 = sshll.u32 %s3040_s11, 4  ;;  %s2090_s6 = int_to_ptr.vmem [resolvable:$true] %s2089_s6 }
  0xe1   :  { %2335 = vmatpush3.bf16.msra.mxu0 %v2455_v2  ;;  %v347_v16 = vsub.s32 %v344_v14, %v3285_v15  ;;  %v2285_v51 = vunpack.c.h.bf16 %v2294_v30  ;;  %v2288_v55 = vunpack.c.l.bf16 %v2295_v47  ;;  %v2289_v60 = vunpack.c.h.bf16 %v2295_v47  ;;  %s2956_s23 = scalar_lea.vmem %s2090_s6, 128  ;;  %p2961_p13 = scmp.lt.s32.totalorder %s2090_s6, %s2090_s6 }
  0xe2   :  { %2336 = vmatprep.subr.bf16.mxu0 %v3036_v0  ;;  %vm531_vm7 = vcmask 1047559   ;;  %vm534_vm8 = vcmask 64512   ;;  %v3324_v47 = vsub.s32 1, %v3285_v15  ;;  %p2957_p12 = scmp.ne.s32.totalorder %s2090_s6, %s2956_s23  ;;  %p2962_p0 = scmp.lt.s32.totalorder %s2956_s23, %s2956_s23 }
  0xe4   :  { %p2963_p1 = por %p2962_p0, %p2961_p13 }
  0xe5   :  { %2337 = vmatpush3.bf16.msra.mxu0 %v2456_v3 }
  0xe6   :  { %2338 = vmatprep.subr.bf16.mxu0 %v3036_v0  ;;  %p2964_p2 = pnand %p2963_p1, %p2957_p12 }
  0xe9   :  { %2339 = vmatpush3.bf16.msra.mxu0 %v2457_v4 }
  0xea   :  { %2340 = vmatprep.subr.bf16.mxu0 %v3036_v0 }
  0xed   :  { %2341 = vmatpush3.bf16.msra.mxu0 %v2458_v5 }
  0xee   :  { %2342 = vmatprep.subr.bf16.mxu0 %v3036_v0 }
  0xf1   :  { %2343 = vmatpush3.bf16.msra.mxu0 %v2459_v6 }
  0xf2   :  { %2344 = vmatprep.subr.bf16.mxu0 %v3036_v0 }
  0xf5   :  { %2345 = vmatpush3.bf16.msra.mxu0 %v2460_v7 }
  0xf6   :  { %2346 = vmatprep.subr.bf16.mxu0 %v3036_v0 }
  0xf9   :  { %2347 = vmatpush3.bf16.msra.mxu0 %v2461_v8 }
  0xfc   :  { %2349 = vmatmul.mubr.bf16.vlgmr.msra.gmra.mrb[0].mxu0 %v3281_v10 }
 0x1cf   :  { %v334_v17 = vpop.f32.mrb[0].mxu0 }
 0x1d0   :  { %v341_v19 = vcombine.high %v334_v17, %v334_v17  ;;  %v348_v20 = vrot.slane %v334_v17, %v347_v16  ;;  %v2350_v21 = vpop.f32.mrb[1].mxu0 }
 0x1d1   :  { %v337_v23 = vpop.f32.mrb[2].mxu0 }
 0x1d2   :  { %v355_v25 = vrot.slane %v341_v19, %v347_v16  ;;  %v356_v26 = vcombine.high %v348_v20, %v348_v20  ;;  %v364_v27 = vrot.slane %v348_v20, %v347_v16  ;;  %v2351_v28 = vpop.f32.mrb[3].mxu0  ;;  %v486_v20 = vand.u32 127, %v345_v13 }
 0x1d4   :  { %v357_v31 = vcombine.high %v355_v25, %v355_v25  ;;  %v371_v32 = vrot.slane %v355_v25, %v347_v16  ;;  %v378_v33 = vrot.slane %v356_v26, %v347_v16  ;;  %v386_v34 = vcombine.high %v364_v27, %v364_v27 }
 0x1d5   :  { %v393_v38 = vrot.slane %v364_v27, %v3289_v22  ;;  %v3301_v23 = vsub.s32 %v486_v20, %v3285_v15 }
 0x1d6   :  { %v385_v40 = vrot.slane %v357_v31, %v347_v16  ;;  %v388_v41 = vcombine.high %v378_v33, %v378_v33  ;;  %v397_v42 = vrot.slane %v378_v33, %v3289_v22  ;;  %v387_v43 = vcombine.high %v371_v32, %v371_v32 }
 0x1d7   :  { %v401_v44 = vrot.slane %v386_v34, %v3289_v22  ;;  %v409_v45 = vrot.slane %v371_v32, %v3289_v22  ;;  %v430_v46 = vadd.f32 %v2276_v29, %v393_v38 }
 0x1d8   :  { %v405_v48 = vrot.slane %v388_v41, %v3289_v22  ;;  %v431_v49 = vadd.f32 %v2277_v35, %v397_v42  ;;  %v389_v52 = vcombine.high %v385_v40, %v385_v40  ;;  %v413_v53 = vrot.slane %v385_v40, %v3289_v22 }
 0x1d9   :  { %v432_v50 = vadd.f32 %v2280_v36, %v401_v44  ;;  %2633 = vtanh.f32 %v430_v46  ;;  %v417_v56 = vrot.slane %v387_v43, %v3289_v22  ;;  %v434_v57 = vadd.f32 %v2284_v39, %v409_v45 }
 0x1da   :  { %v433_v54 = vadd.f32 %v2281_v37, %v405_v48  ;;  %2635 = vtanh.f32 %v431_v49  ;;  %v421_v58 = vrot.slane %v389_v52, %v3289_v22  ;;  %v435_v59 = vadd.f32 %v2285_v51, %v413_v53 }
 0x1db   :  { %2637 = vtanh.f32 %v432_v50  ;;  %v436_v61 = vadd.f32 %v2288_v55, %v417_v56  ;;  %v3039_v46 = vmov 0   ;;  %v3327_v48 = vsub.s32 2, %v3285_v15 }
 0x1dc   :  { %2639 = vtanh.f32 %v433_v54  ;;  %v437_v63 = vadd.f32 %v2289_v60, %v421_v58  ;;  %2453 = vset.pattern.permute.xlu0 %v3039_v46  ;;  %2452 = vset.pattern.permute.xlu1 %v3039_v46  ;;  %v553_v49 = vsub.s32 3, %v3285_v15  ;;  %v557_v54 = vsub.s32 4, %v3285_v15 }
 0x1dd   :  { %2641 = vtanh.f32 %v434_v57  ;;  %1298 = vmatprep.mubr.bf16.mxu1 %v3039_v46  ;;  %1089 = vmatprep.mubr.bf16.mxu0 %v3039_v46 }
 0x1de   :  { %2643 = vtanh.f32 %v435_v59 }
 0x1df   :  { %2645 = vtanh.f32 %v436_v61  ;;  %v561_v61 = vsub.s32 5, %v3285_v15 }
 0x1e0   :  { %2647 = vtanh.f32 %v437_v63 }
 0x1e3   :  { %v2634_v1 = vpop.eup %2633 }
 0x1e4   :  { %v453_v2 = vmul.f32 %v2634_v1, %v2116_v62  ;;  %v2636_v3 = vpop.eup %2635 }
 0x1e5   :  { %v2638_v4 = vpop.eup %2637  ;;  %v454_v7 = vmul.f32 %v2636_v3, %v2116_v62 }
 0x1e6   :  { %461 = vadd.xlane.f32.xlu0 %v453_v2  ;;  %v455_v5 = vmul.f32 %v2638_v4, %v2116_v62  ;;  %v2640_v6 = vpop.eup %2639  ;;  %v565_v2 = vsub.s32 6, %v3285_v15 }
 0x1e7   :  { %v2642_v8 = vpop.eup %2641  ;;  %v456_v9 = vmul.f32 %v2640_v6, %v2116_v62  ;;  %v569_v6 = vsub.s32 7, %v3285_v15 }
 0x1e8   :  { %465 = vadd.xlane.f32.xlu1 %v455_v5  ;;  %v2644_v11 = vpop.eup %2643  ;;  %v457_v12 = vmul.f32 %v2642_v8, %v2116_v62 }
 0x1e9   :  { %v2646_v14 = vpop.eup %2645  ;;  %v458_v16 = vmul.f32 %v2644_v11, %v2116_v62 }
 0x1ea   :  { %463 = vadd.xlane.f32.xlu0 %v454_v7  ;;  %v2648_v17 = vpop.eup %2647  ;;  %v459_v18 = vmul.f32 %v2646_v14, %v2116_v62 }
 0x1eb   :  { %v460_v19 = vmul.f32 %v2648_v17, %v2116_v62 }
 0x1ec   :  { %467 = vadd.xlane.f32.xlu1 %v456_v9 }
 0x1ee   :  { %469 = vadd.xlane.f32.xlu0 %v457_v12 }
 0x1f0   :  { %471 = vadd.xlane.f32.xlu1 %v458_v16 }
 0x1f2   :  { %473 = vadd.xlane.f32.xlu0 %v459_v18 }
 0x1f4   :  { %475 = vadd.xlane.f32.xlu1 %v460_v19 }
 0x273   :  { %v462_v21 = vpop.xlane.xlu0 %461 }
 0x274   :  { %v490_v26 = vrot.slane %v462_v21, %v3301_v23 }
 0x275   :  { %v466_v24 = vpop.xlane.xlu1 %465 }
 0x276   :  { %v498_v28 = vrot.slane %v466_v24, %v3301_v23 }
 0x277   :  { %v464_v25 = vpop.xlane.xlu0 %463 }
 0x278   :  { %v494_v27 = vrot.slane %v464_v25, %v3301_v23 }
 0x279   :  { %v468_v30 = vpop.xlane.xlu1 %467 }
 0x27a   :  { %v520_v29 = vsel %vm519_vm1, %v494_v27, %v490_v26  ;;  %v502_v31 = vrot.slane %v468_v30, %v3301_v23 }
 0x27b   :  { %v522_v13 = vsel %vm521_vm2, %v498_v28, %v520_v29  ;;  %v470_v32 = vpop.xlane.xlu0 %469 }
 0x27c   :  { %v506_v33 = vrot.slane %v470_v32, %v3301_v23  ;;  %v524_v34 = vsel %vm523_vm3, %v502_v31, %v522_v13 }
 0x27d   :  { %v472_v36 = vpop.xlane.xlu1 %471 }
 0x27e   :  { %v526_v35 = vsel %vm525_vm4, %v506_v33, %v524_v34  ;;  %v510_v37 = vrot.slane %v472_v36, %v3301_v23 }
 0x27f   :  { %v474_v38 = vpop.xlane.xlu0 %473 }
 0x280   :  { %v514_v39 = vrot.slane %v474_v38, %v3301_v23  ;;  %v528_v40 = vsel %vm527_vm5, %v510_v37, %v526_v35 }
 0x281   :  { %v476_v41 = vpop.xlane.xlu1 %475 }
 0x282   :  { %v530_v42 = vsel %vm529_vm6, %v514_v39, %v528_v40  ;;  %v518_v43 = vrot.slane %v476_v41, %v3301_v23 }
 0x284   :  { %v532_v44 = vsel %vm531_vm7, %v518_v43, %v530_v42 }
 0x285   :  { %v535_v45 = vsel %vm534_vm8, %v532_v44, -inf }
 0x286   :  { %536 = vmax.xlane.f32.xlu0 %v535_v45 }
 0x313   :  { %v537_v50 = vpop.xlane.xlu0 %536 }
 0x314   :  { %v542_v51 = vrot.slane %v537_v50, %v3289_v22  ;;  %v546_v52 = vrot.slane %v537_v50, %v3324_v47  ;;  %v550_v53 = vrot.slane %v537_v50, %v3327_v48  ;;  %v554_v55 = vrot.slane %v537_v50, %v553_v49 }
 0x315   :  { %v558_v62 = vrot.slane %v537_v50, %v557_v54  ;;  %v562_v3 = vrot.slane %v537_v50, %v561_v61  ;;  %v566_v7 = vrot.slane %v537_v50, %v565_v2  ;;  %v570_v14 = vrot.slane %v537_v50, %v569_v6 }
 0x316   :  { %v579_v56 = vsub.f32 %v462_v21, %v542_v51  ;;  %v580_v57 = vsub.f32 %v464_v25, %v546_v52  ;;  %v581_v58 = vsub.f32 %v466_v24, %v550_v53  ;;  %v582_v63 = vsub.f32 %v468_v30, %v554_v55 }
 0x317   :  { %v583_v4 = vsub.f32 %v470_v32, %v558_v62  ;;  %v584_v8 = vsub.f32 %v472_v36, %v562_v3  ;;  %v585_v16 = vsub.f32 %v474_v38, %v566_v7  ;;  %v586_v19 = vsub.f32 %v476_v41, %v570_v14  ;;  %v2468_v62 = vld [vmem:[#allocation14 + $0x34] ss:$12 sps:$4 sm:$0xff]  }
 0x318   :  { %v587_v59 = vmul.f32 1.442695, %v579_v56  ;;  %v589_v60 = vmul.f32 1.442695, %v580_v57  ;;  %v591_v1 = vmul.f32 1.442695, %v581_v58 }
 0x319   :  { %v593_v5 = vmul.f32 1.442695, %v582_v63  ;;  %v595_v9 = vmul.f32 1.442695, %v583_v4  ;;  %v597_v17 = vmul.f32 1.442695, %v584_v8 }
 0x31a   :  { %2649 = vpow2.f32 %v587_v59  ;;  %v599_v20 = vmul.f32 1.442695, %v585_v16  ;;  %v601_v24 = vmul.f32 1.442695, %v586_v19  ;;  %v2462_v57 = vld [vmem:[#allocation14 + $0x4] ss:$12 sps:$4 sm:$0xff]  }
 0x31b   :  { %2651 = vpow2.f32 %v589_v60  ;;  %v2464_v58 = vld [vmem:[#allocation14] ss:$12 sps:$4 sm:$0xff]   ;;  %v2465_v59 = vld [vmem:[#allocation14 + $0x1c] ss:$12 sps:$4 sm:$0xff]   ;;  %1266 = vmatprep.subr.bf16.mxu1 %v2462_v57  ;;  %v2467_v60 = vld [vmem:[#allocation14 + $0x18] ss:$12 sps:$4 sm:$0xff]  }
 0x31c   :  { %2653 = vpow2.f32 %v591_v1  ;;  %1267 = vmatpush1.bf16.msra.mxu1 %v2464_v58  ;;  %v2470_v63 = vld [vmem:[#allocation14 + $0x30] ss:$12 sps:$4 sm:$0xff]   ;;  %v2507_v57 = vld [vmem:[#allocation14 + $0x120] ss:$12 sps:$4 sm:$0xff]  }
 0x31d   :  { %2655 = vpow2.f32 %v593_v5  ;;  %1268 = vmatprep.subr.bf16.mxu1 %v2465_v59  ;;  %v2512_v58 = vld [vmem:[#allocation15 + $0x4c] ss:$12 sps:$4 sm:$0xff]   ;;  %v2510_v59 = vld [vmem:[#allocation15 + $0x48] ss:$12 sps:$4 sm:$0xff]  }
 0x31e   :  { %2657 = vpow2.f32 %v595_v9 }
 0x31f   :  { %2659 = vpow2.f32 %v597_v17 }
 0x320   :  { %2661 = vpow2.f32 %v599_v20  ;;  %1269 = vmatpush1.bf16.msra.mxu1 %v2467_v60  ;;  %v2515_v60 = vld [vmem:[#allocation14 + $0x13c] ss:$12 sps:$4 sm:$0xff]  }
 0x321   :  { %2663 = vpow2.f32 %v601_v24  ;;  %1270 = vmatprep.subr.bf16.mxu1 %v2468_v62  ;;  %v2471_v24 = vld [vmem:[#allocation14 + $0x4c] ss:$12 sps:$4 sm:$0xff]  }
 0x322   :  { %v2513_v62 = vld [vmem:[#allocation14 + $0x138] ss:$12 sps:$4 sm:$0xff]  }
 0x324   :  { %v3345_v11 = vpop.eup %2649  ;;  %1271 = vmatpush1.bf16.msra.mxu1 %v2470_v63  ;;  %v2518_v63 = vld [vmem:[#allocation15 + $0x64] ss:$12 sps:$4 sm:$0xff]  }
 0x325   :  { %v3347_v12 = vpop.eup %2651  ;;  %612 = vperm.xlu1 %2452, %v3345_v11   ;;  %1272 = vmatprep.subr.bf16.mxu1 %v2471_v24 }
 0x326   :  { %615 = vperm.xlu0 %2453, %v3347_v12   ;;  %v3353_v18 = vpop.eup %2653 }
 0x327   :  { %v3356_v21 = vpop.eup %2655 }
 0x328   :  { %v3359_v25 = vpop.eup %2657 }
 0x329   :  { %618 = vperm.xlu1 %2452, %v3353_v18   ;;  %v3362_v26 = vpop.eup %2659 }
 0x32a   :  { %v3365_v27 = vpop.eup %2661 }
 0x32b   :  { %v3368_v28 = vpop.eup %2663 }
 0x32d   :  { %621 = vperm.xlu1 %2452, %v3356_v21  }
 0x331   :  { %624 = vperm.xlu1 %2452, %v3359_v25  }
 0x335   :  { %627 = vperm.xlu1 %2452, %v3362_v26  }
 0x339   :  { %630 = vperm.xlu1 %2452, %v3365_v27  }
 0x33d   :  { %633 = vperm.xlu1 %2452, %v3368_v28  }
 0x3a4   :  { %v613_v29 = vpop.permute.xlu1 %612 }
 0x3a5   :  { %v616_v32 = vpop.permute.xlu0 %615  ;;  %v638_v35 = vrot.slane %v613_v29, %v3301_v23  ;;  %v2473_v29 = vld [vmem:[#allocation14 + $0x48] ss:$12 sps:$4 sm:$0xff]  }
 0x3a6   :  { %v642_v34 = vrot.slane %v616_v32, %v3301_v23  ;;  %1273 = vmatpush1.bf16.msra.mxu1 %v2473_v29  ;;  %v2479_v32 = vld [vmem:[#allocation14 + $0x78] ss:$12 sps:$4 sm:$0xff]  }
 0x3a8   :  { %v619_v30 = vpop.permute.xlu1 %618  ;;  %v667_v40 = vsel %vm519_vm1, %v642_v34, %v638_v35  ;;  %v2485_v34 = vld [vmem:[#allocation14 + $0xc4] ss:$12 sps:$4 sm:$0xff]  }
 0x3a9   :  { %v646_v36 = vrot.slane %v619_v30, %v3301_v23  ;;  %1057 = vmatprep.subr.bf16.mxu0 %v2485_v34 }
 0x3ab   :  { %v668_v42 = vsel %vm521_vm2, %v646_v36, %v667_v40  ;;  %v2483_v36 = vld [vmem:[#allocation14 + $0xc0] ss:$12 sps:$4 sm:$0xff]   ;;  %v2489_v40 = vld [vmem:[#allocation14 + $0xd8] ss:$12 sps:$4 sm:$0xff]  }
 0x3ac   :  { %v622_v13 = vpop.permute.xlu1 %621  ;;  %1058 = vmatpush1.bf16.msra.mxu0 %v2483_v36 }
 0x3ad   :  { %v650_v37 = vrot.slane %v622_v13, %v3301_v23  ;;  %v2476_v13 = vld [vmem:[#allocation14 + $0x60] ss:$12 sps:$4 sm:$0xff]  }
 0x3af   :  { %v669_v44 = vsel %vm523_vm3, %v650_v37, %v668_v42  ;;  %v2486_v37 = vld [vmem:[#allocation14 + $0xac] ss:$12 sps:$4 sm:$0xff]  }
 0x3b0   :  { %v625_v31 = vpop.permute.xlu1 %624  ;;  %v201_v42 = vld [vmem:[#allocation3] sm:$0xff] }
 0x3b1   :  { %v654_v38 = vrot.slane %v625_v31, %v3301_v23 }
 0x3b3   :  { %v670_v45 = vsel %vm525_vm4, %v654_v38, %v669_v44  ;;  %v2488_v38 = vld [vmem:[#allocation14 + $0xa8] ss:$12 sps:$4 sm:$0xff]   ;;  %v3408_v44 = vpack.c.bf16 %v201_v42, %v201_v42 }
 0x3b4   :  { %v628_v33 = vpop.permute.xlu1 %627 }
 0x3b5   :  { %v658_v41 = vrot.slane %v628_v33, %v3301_v23  ;;  %1675 = vst [vmem:[#allocation2 + $0x8] sm:$0xf] %v3408_v44 }
 0x3b7   :  { %v671_v51 = vsel %vm527_vm5, %v658_v41, %v670_v45  ;;  %v2494_v41 = vld [vmem:[#allocation15 + $0x4] ss:$12 sps:$4 sm:$0xff]  }
 0x3b8   :  { %v631_v39 = vpop.permute.xlu1 %630  ;;  %v2495_v45 = vld [vmem:[#allocation14 + $0xf0] ss:$12 sps:$4 sm:$0xff]  }
 0x3b9   :  { %v662_v43 = vrot.slane %v631_v39, %v3301_v23  ;;  %v2491_v39 = vld [vmem:[#allocation14 + $0xdc] ss:$12 sps:$4 sm:$0xff]  }
 0x3ba   :  { %1059 = vmatprep.subr.bf16.mxu0 %v2491_v39 }
 0x3bb   :  { %v672_v53 = vsel %vm529_vm6, %v662_v43, %v671_v51  ;;  %v2492_v43 = vld [vmem:[#allocation15] ss:$12 sps:$4 sm:$0xff]   ;;  %1060 = vmatpush1.bf16.msra.mxu0 %v2489_v40 }
 0x3bc   :  { %v634_v50 = vpop.permute.xlu1 %633  ;;  %v2503_v51 = vld [vmem:[#allocation14 + $0x10c] ss:$12 sps:$4 sm:$0xff]  }
 0x3bd   :  { %v666_v52 = vrot.slane %v634_v50, %v3301_v23  ;;  %v2500_v50 = vld [vmem:[#allocation15 + $0x1c] ss:$12 sps:$4 sm:$0xff]  }
 0x3bf   :  { %v673_v55 = vsel %vm531_vm7, %v666_v52, %v672_v53  ;;  %v2501_v52 = vld [vmem:[#allocation14 + $0x108] ss:$12 sps:$4 sm:$0xff]  }
 0x3c0   :  { %v675_v56 = vsel %vm534_vm8, %v673_v55, 0.0  ;;  %v2506_v53 = vld [vmem:[#allocation15 + $0x34] ss:$12 sps:$4 sm:$0xff]   ;;  %v2504_v55 = vld [vmem:[#allocation15 + $0x30] ss:$12 sps:$4 sm:$0xff]  }
 0x3c1   :  { %676 = vadd.xlane.f32.xlu1 %v675_v56  ;;  %v2509_v56 = vld [vmem:[#allocation14 + $0x124] ss:$12 sps:$4 sm:$0xff]  }
 0x44e   :  { %v677_v23 = vpop.xlane.xlu1 %676 }
 0x44f   :  { %v682_v1 = vrot.slane %v677_v23, %v3289_v22  ;;  %v686_v3 = vrot.slane %v677_v23, %v3324_v47  ;;  %v690_v4 = vrot.slane %v677_v23, %v3327_v48  ;;  %v694_v5 = vrot.slane %v677_v23, %v553_v49 }
 0x450   :  { %v698_v8 = vrot.slane %v677_v23, %v557_v54  ;;  %v702_v16 = vrot.slane %v677_v23, %v561_v61  ;;  %v706_v49 = vrot.slane %v677_v23, %v565_v2 }
 0x451   :  { %2665 = vrcp.f32 %v682_v1  ;;  %v2519_v1 = vld [vmem:[#allocation14 + $0x150] ss:$12 sps:$4 sm:$0xff]  }
 0x452   :  { %2667 = vrcp.f32 %v686_v3  ;;  %v2521_v3 = vld [vmem:[#allocation14 + $0x154] ss:$12 sps:$4 sm:$0xff]  }
 0x453   :  { %2669 = vrcp.f32 %v690_v4  ;;  %v2524_v4 = vld [vmem:[#allocation15 + $0x7c] ss:$12 sps:$4 sm:$0xff]  }
 0x454   :  { %2671 = vrcp.f32 %v694_v5  ;;  %v2527_v5 = vld [vmem:[#allocation14 + $0x16c] ss:$12 sps:$4 sm:$0xff]  }
 0x455   :  { %2673 = vrcp.f32 %v698_v8  ;;  %v2530_v8 = vld [vmem:[#allocation15 + $0x94] ss:$12 sps:$4 sm:$0xff]  }
 0x456   :  { %2675 = vrcp.f32 %v702_v16  ;;  %v2534_v16 = vld [vmem:[#allocation15 + $0xac] ss:$12 sps:$4 sm:$0xff]  }
 0x457   :  { %2677 = vrcp.f32 %v706_v49 }
 0x45b   :  { %v2666_v7 = vpop.eup %2665 }
 0x45c   :  { %v720_v9 = vmul.f32 %v2666_v7, %v3345_v11  ;;  %v2668_v14 = vpop.eup %2667  ;;  %v710_v11 = vrot.slane %v677_v23, %v569_v6  ;;  %v2480_v6 = vld [vmem:[#allocation14 + $0x94] ss:$12 sps:$4 sm:$0xff]   ;;  %v2522_v7 = vld [vmem:[#allocation15 + $0x78] ss:$12 sps:$4 sm:$0xff]  }
 0x45d   :  { %v722_v17 = vmul.f32 %v2668_v14, %v3347_v12  ;;  %v2670_v19 = vpop.eup %2669  ;;  %v2474_v12 = vld [vmem:[#allocation14 + $0x64] ss:$12 sps:$4 sm:$0xff]   ;;  %v2516_v23 = vld [vmem:[#allocation15 + $0x60] ss:$12 sps:$4 sm:$0xff]  }
 0x45e   :  { %737 = vperm.xlu0 %2453, %v720_v9   ;;  %v724_v20 = vmul.f32 %v2670_v19, %v3353_v18  ;;  %v2672_v54 = vpop.eup %2671  ;;  %1274 = vmatprep.subr.bf16.mxu1 %v2474_v12  ;;  %2679 = vrcp.f32 %v710_v11  ;;  %v2477_v18 = vld [vmem:[#allocation14 + $0x7c] ss:$12 sps:$4 sm:$0xff]  }
 0x45f   :  { %v726_v61 = vmul.f32 %v2672_v54, %v3356_v21  ;;  %v2674_v30 = vpop.eup %2673  ;;  %1275 = vmatpush1.bf16.msra.mxu1 %v2476_v13  ;;  %v2482_v21 = vld [vmem:[#allocation14 + $0x90] ss:$12 sps:$4 sm:$0xff]   ;;  %v2525_v9 = vld [vmem:[#allocation14 + $0x168] ss:$12 sps:$4 sm:$0xff]  }
 0x460   :  { %v728_v2 = vmul.f32 %v2674_v30, %v3359_v25  ;;  %v2676_v31 = vpop.eup %2675  ;;  %1276 = vmatprep.subr.bf16.mxu1 %v2477_v18  ;;  %v2528_v14 = vld [vmem:[#allocation15 + $0x90] ss:$12 sps:$4 sm:$0xff]   ;;  %v2290_v54 = vld [vmem:[#allocation8 + $0x8] sm:$0xff]  }
 0x461   :  { %v730_v15 = vmul.f32 %v2676_v31, %v3362_v26  ;;  %v2678_v33 = vpop.eup %2677  ;;  %v2259_v19 = vld [vmem:[#allocation8] sm:$0xff]   ;;  %v2265_v18 = vunpack.c.h.bf16 %v2290_v54 }
 0x462   :  { %742 = vperm.xlu0 %2453, %v722_v17   ;;  %v732_v35 = vmul.f32 %v2678_v33, %v3365_v27  ;;  %v2497_v27 = vld [vmem:[#allocation14 + $0xf4] ss:$12 sps:$4 sm:$0xff]   ;;  %v2260_v24 = vunpack.c.l.bf16 %v2259_v19 }
 0x463   :  { %1277 = vmatpush1.bf16.msra.mxu1 %v2479_v32  ;;  %1061 = vmatprep.subr.bf16.mxu0 %v2497_v27  ;;  %v2532_v17 = vld [vmem:[#allocation15 + $0xa8] ss:$12 sps:$4 sm:$0xff]  }
 0x464   :  { %1278 = vmatprep.subr.bf16.mxu1 %v2480_v6  ;;  %1062 = vmatpush1.bf16.msra.mxu0 %v2495_v45 }
 0x465   :  { %1063 = vmatprep.subr.bf16.mxu0 %v2503_v51 }
 0x466   :  { %747 = vperm.xlu0 %2453, %v724_v20   ;;  %v2261_v20 = vunpack.c.h.bf16 %v2259_v19 }
 0x467   :  { %1279 = vmatpush1.bf16.msra.mxu1 %v2482_v21 }
 0x468   :  { %v2680_v25 = vpop.eup %2679  ;;  %1280 = vmatprep.subr.bf16.mxu1 %v2486_v37  ;;  %1064 = vmatpush1.bf16.msra.mxu0 %v2501_v52 }
 0x469   :  { %v734_v26 = vmul.f32 %v2680_v25, %v3368_v28  ;;  %v2498_v28 = vld [vmem:[#allocation15 + $0x18] ss:$12 sps:$4 sm:$0xff]   ;;  %1065 = vmatprep.subr.bf16.mxu0 %v2509_v56 }
 0x46a   :  { %752 = vperm.xlu0 %2453, %v726_v61   ;;  %v2264_v61 = vunpack.c.l.bf16 %v2290_v54 }
 0x46b   :  { %1281 = vmatpush1.bf16.msra.mxu1 %v2488_v38 }
 0x46c   :  { %1544 = vmatprep.subr.bf16.mxu1 %v2494_v41  ;;  %1066 = vmatpush1.bf16.msra.mxu0 %v2507_v57 }
 0x46d   :  { %1067 = vmatprep.subr.bf16.mxu0 %v2515_v60 }
 0x46e   :  { %757 = vperm.xlu0 %2453, %v728_v2   ;;  %1299 = vmatmul.mubr.bf16.vlgmr.msra.gmra.mrb[0].mxu1 %v3408_v44 }
 0x46f   :  { %1545 = vmatpush1.bf16.msra.mxu1 %v2492_v43  ;;  %1576 = vmatprep.mubr.bf16.mxu1 %v3039_v46  ;;  %v2292_v43 = vld [vmem:[#allocation8 + $0x18] sm:$0xff]  }
 0x470   :  { %1546 = vmatprep.subr.bf16.mxu1 %v2500_v50  ;;  %1068 = vmatpush1.bf16.msra.mxu0 %v2513_v62  ;;  %v2272_v52 = vunpack.c.l.bf16 %v2292_v43 }
 0x471   :  { %1069 = vmatprep.subr.bf16.mxu0 %v2521_v3 }
 0x472   :  { %762 = vperm.xlu0 %2453, %v730_v15   ;;  %v2291_v15 = vld [vmem:[#allocation8 + $0x10] sm:$0xff]  }
 0x473   :  { %1547 = vmatpush1.bf16.msra.mxu1 %v2498_v28  ;;  %v2268_v36 = vunpack.c.l.bf16 %v2291_v15 }
 0x474   :  { %1548 = vmatprep.subr.bf16.mxu1 %v2506_v53  ;;  %1070 = vmatpush1.bf16.msra.mxu0 %v2519_v1  ;;  %v2273_v1 = vunpack.c.h.bf16 %v2292_v43 }
 0x475   :  { %1071 = vmatprep.subr.bf16.mxu0 %v2527_v5 }
 0x476   :  { %767 = vperm.xlu0 %2453, %v732_v35  }
 0x477   :  { %1549 = vmatpush1.bf16.msra.mxu1 %v2504_v55 }
 0x478   :  { %1550 = vmatprep.subr.bf16.mxu1 %v2512_v58  ;;  %1072 = vmatpush1.bf16.msra.mxu0 %v2525_v9 }
 0x479   :  { %2352 = vmatprep.subr.bf16.mxu0 %v3036_v0 }
 0x47a   :  { %772 = vperm.xlu0 %2453, %v734_v26   ;;  %v2269_v26 = vunpack.c.h.bf16 %v2291_v15 }
 0x47b   :  { %1551 = vmatpush1.bf16.msra.mxu1 %v2510_v59 }
 0x47c   :  { %1552 = vmatprep.subr.bf16.mxu1 %v2518_v63 }
 0x47f   :  { %1553 = vmatpush1.bf16.msra.mxu1 %v2516_v23 }
 0x480   :  { %1554 = vmatprep.subr.bf16.mxu1 %v2524_v4 }
 0x483   :  { %1555 = vmatpush1.bf16.msra.mxu1 %v2522_v7 }
 0x484   :  { %1556 = vmatprep.subr.bf16.mxu1 %v2530_v8 }
 0x487   :  { %1557 = vmatpush1.bf16.msra.mxu1 %v2528_v14 }
 0x488   :  { %1558 = vmatprep.subr.bf16.mxu1 %v2534_v16 }
 0x48b   :  { %1559 = vmatpush1.bf16.msra.mxu1 %v2532_v17 }
 0x48e   :  { %1577 = vmatmul.mubr.bf16.vlgmr.msra.gmra.mrb[0].mxu1 %v3281_v10 }
 0x4dd   :  { %v738_v49 = vpop.permute.xlu0 %737 }
 0x4de   :  { %v775_v12 = vmul.f32 %v2260_v24, %v738_v49 }
 0x4e0   :  { %v783_v31 = vrot.slane %v775_v12, 4 }
 0x4e1   :  { %v743_v29 = vpop.permute.xlu0 %742 }
 0x4e2   :  { %v776_v11 = vmul.f32 %v2261_v20, %v743_v29  ;;  %v784_v34 = vadd.f32 %v783_v31, %v775_v12 }
 0x4e4   :  { %v789_v13 = vrot.slane %v776_v11, 4  ;;  %v785_v40 = vrot.slane %v784_v34, 2 }
 0x4e5   :  { %v748_v30 = vpop.permute.xlu0 %747 }
 0x4e6   :  { %v777_v2 = vmul.f32 %v2264_v61, %v748_v30  ;;  %v790_v33 = vadd.f32 %v789_v13, %v776_v11  ;;  %v786_v53 = vadd.f32 %v785_v40, %v784_v34 }
 0x4e8   :  { %v795_v32 = vrot.slane %v777_v2, 4  ;;  %v791_v38 = vrot.slane %v790_v33, 2  ;;  %v787_v3 = vrot.slane %v786_v53, 1 }
 0x4e9   :  { %v753_v6 = vpop.permute.xlu0 %752 }
 0x4ea   :  { %v778_v21 = vmul.f32 %v2265_v18, %v753_v6  ;;  %v796_v35 = vadd.f32 %v795_v32, %v777_v2  ;;  %v792_v28 = vadd.f32 %v791_v38, %v790_v33  ;;  %v788_v24 = vadd.f32 %v787_v3, %v786_v53  ;;  %v2539_v3 = vld [vmem:[#allocation14 + $0x140] ss:$12 sps:$4 sm:$0xff]  }
 0x4ec   :  { %v801_v37 = vrot.slane %v778_v21, 4  ;;  %v797_v41 = vrot.slane %v796_v35, 2  ;;  %v793_v62 = vrot.slane %v792_v28, 1  ;;  %v832_v15 = vpack.c.bf16 %v788_v24, %v788_v24  ;;  %v2551_v24 = vld [vmem:[#allocation15 + $0x20] ss:$12 sps:$4 sm:$0xff]  }
 0x4ed   :  { %v758_v25 = vpop.permute.xlu0 %757 }
 0x4ee   :  { %v802_v39 = vadd.f32 %v801_v37, %v778_v21  ;;  %v779_v42 = vmul.f32 %v2268_v36, %v758_v25  ;;  %v798_v55 = vadd.f32 %v797_v41, %v796_v35  ;;  %v794_v17 = vadd.f32 %v793_v62, %v792_v28  ;;  %v2535_v62 = vld [vmem:[#allocation14 + $0xe0] ss:$12 sps:$4 sm:$0xff]  }
 0x4f0   :  { %v803_v27 = vrot.slane %v802_v39, 2  ;;  %v807_v45 = vrot.slane %v779_v42, 4  ;;  %v799_v4 = vrot.slane %v798_v55, 1  ;;  %v833_v13 = vpack.c.bf16 %v794_v17, %v794_v17  ;;  %v2547_v17 = vld [vmem:[#allocation14 + $0x80] ss:$12 sps:$4 sm:$0xff]  }
 0x4f1   :  { %v763_v50 = vpop.permute.xlu0 %762 }
 0x4f2   :  { %v780_v51 = vmul.f32 %v2269_v26, %v763_v50  ;;  %v808_v56 = vadd.f32 %v807_v45, %v779_v42  ;;  %v804_v57 = vadd.f32 %v803_v27, %v802_v39  ;;  %v800_v54 = vadd.f32 %v799_v4, %v798_v55  ;;  %v2540_v4 = vld [vmem:[#allocation14 + $0x158] ss:$12 sps:$4 sm:$0xff]  }
 0x4f3   :  { %v913_v35 = vunpack.c.l.b16 %v833_v13  ;;  %v912_v39 = vunpack.c.l.b16 %v832_v15  ;;  %v2563_v15 = vld [vmem:[#allocation20 + $0x14] ss:$8 sps:$4 sm:$0xff]  }
 0x4f4   :  { %v813_v58 = vrot.slane %v780_v51, 4  ;;  %v809_v59 = vrot.slane %v808_v56, 2  ;;  %v805_v7 = vrot.slane %v804_v57, 1  ;;  %v834_v32 = vpack.c.bf16 %v800_v54, %v800_v54  ;;  %v2552_v54 = vld [vmem:[#allocation15 + $0x38] ss:$12 sps:$4 sm:$0xff]  }
 0x4f5   :  { %v768_v60 = vpop.permute.xlu0 %767  ;;  %v920_v43 = vsel %vm519_vm1, %v913_v35, %v912_v39  ;;  %v2570_v35 = vld [vmem:[#allocation20 + $0x40] ss:$8 sps:$4 sm:$0xff]   ;;  %v2581_v39 = vld [vmem:[#allocation20 + $0x74] ss:$8 sps:$4 sm:$0xff]  }
 0x4f6   :  { %v814_v63 = vadd.f32 %v813_v58, %v780_v51  ;;  %v781_v23 = vmul.f32 %v2272_v52, %v768_v60  ;;  %v810_v5 = vadd.f32 %v809_v59, %v808_v56  ;;  %v806_v29 = vadd.f32 %v805_v7, %v804_v57  ;;  %v2531_v59 = vld [vmem:[#allocation14 + $0xc8] ss:$12 sps:$4 sm:$0xff]  }
 0x4f7   :  { %v914_v38 = vunpack.c.l.b16 %v834_v32  ;;  %v2542_v7 = vld [vmem:[#allocation14 + $0x8] ss:$12 sps:$4 sm:$0xff]  }
 0x4f8   :  { %v815_v8 = vrot.slane %v814_v63, 2  ;;  %v819_v9 = vrot.slane %v781_v23, 4  ;;  %v811_v14 = vrot.slane %v810_v5, 1  ;;  %v835_v6 = vpack.c.bf16 %v806_v29, %v806_v29  ;;  %v2553_v29 = vld [vmem:[#allocation15 + $0x50] ss:$12 sps:$4 sm:$0xff]  }
 0x4f9   :  { %v773_v16 = vpop.permute.xlu0 %772  ;;  %v921_v50 = vsel %vm521_vm2, %v914_v38, %v920_v43  ;;  %v2560_v32 = vld [vmem:[#allocation20 + $0x4] ss:$8 sps:$4 sm:$0xff]   ;;  %v2576_v38 = vld [vmem:[#allocation20 + $0x60] ss:$8 sps:$4 sm:$0xff]   ;;  %v2585_v43 = vld [vmem:[#allocation20 + $0x90] ss:$8 sps:$4 sm:$0xff]  }
 0x4fa   :  { %v816_v19 = vadd.f32 %v815_v8, %v814_v63  ;;  %v820_v49 = vadd.f32 %v819_v9, %v781_v23  ;;  %v782_v20 = vmul.f32 %v2273_v1, %v773_v16  ;;  %v812_v30 = vadd.f32 %v811_v14, %v810_v5  ;;  %v2536_v63 = vld [vmem:[#allocation14 + $0xf8] ss:$12 sps:$4 sm:$0xff]   ;;  %v2537_v23 = vld [vmem:[#allocation14 + $0x110] ss:$12 sps:$4 sm:$0xff]   ;;  %v2538_v1 = vld [vmem:[#allocation14 + $0x128] ss:$12 sps:$4 sm:$0xff]   ;;  %1989 = vmatprep.subr.bf16.mxu1 %v2560_v32 }
 0x4fb   :  { %v915_v26 = vunpack.c.l.b16 %v835_v6  ;;  %v2541_v5 = vld [vmem:[#allocation14 + $0x170] ss:$12 sps:$4 sm:$0xff]   ;;  %v2543_v8 = vld [vmem:[#allocation14 + $0x20] ss:$12 sps:$4 sm:$0xff]   ;;  %v2544_v9 = vld [vmem:[#allocation14 + $0x38] ss:$12 sps:$4 sm:$0xff]  }
 0x4fc   :  { %v817_v11 = vrot.slane %v816_v19, 1  ;;  %v821_v61 = vrot.slane %v820_v49, 2  ;;  %v825_v12 = vrot.slane %v782_v20, 4  ;;  %v836_v34 = vpack.c.bf16 %v812_v30, %v812_v30  ;;  %v2545_v14 = vld [vmem:[#allocation14 + $0x50] ss:$12 sps:$4 sm:$0xff]  }
 0x4fd   :  { %v922_v51 = vsel %vm523_vm3, %v915_v26, %v921_v50  ;;  %v2546_v16 = vld [vmem:[#allocation14 + $0x68] ss:$12 sps:$4 sm:$0xff]   ;;  %v2561_v6 = vld [vmem:[#allocation20 + $0x10] ss:$8 sps:$4 sm:$0xff]   ;;  %v2593_v50 = vld [vmem:[#allocation20 + $0xb4] ss:$8 sps:$4 sm:$0xff]  }
 0x4fe   :  { %v818_v2 = vadd.f32 %v817_v11, %v816_v19  ;;  %v822_v18 = vadd.f32 %v821_v61, %v820_v49  ;;  %v826_v31 = vadd.f32 %v825_v12, %v782_v20  ;;  %v916_v42 = vunpack.c.l.b16 %v836_v34  ;;  %v2548_v19 = vld [vmem:[#allocation14 + $0x98] ss:$12 sps:$4 sm:$0xff]   ;;  %v2549_v49 = vld [vmem:[#allocation14 + $0xb0] ss:$12 sps:$4 sm:$0xff]   ;;  %v2550_v20 = vld [vmem:[#allocation15 + $0x8] ss:$12 sps:$4 sm:$0xff]  }
 0x4ff   :  { %v2554_v11 = vld [vmem:[#allocation15 + $0x68] ss:$12 sps:$4 sm:$0xff]   ;;  %v2556_v61 = vld [vmem:[#allocation15 + $0x98] ss:$12 sps:$4 sm:$0xff]   ;;  %v2557_v12 = vld [vmem:[#allocation15 + $0xb0] ss:$12 sps:$4 sm:$0xff]  }
 0x500   :  { %v823_v33 = vrot.slane %v822_v18, 1  ;;  %v827_v21 = vrot.slane %v826_v31, 2  ;;  %v837_v36 = vpack.c.bf16 %v818_v2, %v818_v2  ;;  %v923_v53 = vsel %vm525_vm4, %v916_v42, %v922_v51  ;;  %v2567_v34 = vld [vmem:[#allocation20 + $0x30] ss:$8 sps:$4 sm:$0xff]   ;;  %v2587_v42 = vld [vmem:[#allocation20 + $0x94] ss:$8 sps:$4 sm:$0xff]  }
 0x501   :  { %v2579_v26 = vld [vmem:[#allocation20 + $0x70] ss:$8 sps:$4 sm:$0xff]   ;;  %v2596_v51 = vld [vmem:[#allocation20 + $0xc4] ss:$8 sps:$4 sm:$0xff]  }
 0x502   :  { %v824_v37 = vadd.f32 %v823_v33, %v822_v18  ;;  %v828_v25 = vadd.f32 %v827_v21, %v826_v31  ;;  %v917_v27 = vunpack.c.l.b16 %v837_v36  ;;  %v2558_v31 = vld [vmem:[#allocation20] ss:$8 sps:$4 sm:$0xff]   ;;  %v2566_v33 = vld [vmem:[#allocation20 + $0x24] ss:$8 sps:$4 sm:$0xff]   ;;  %v2575_v36 = vld [vmem:[#allocation20 + $0x54] ss:$8 sps:$4 sm:$0xff]  }
 0x503   :  { %1990 = vmatpush1.bf16.msra.mxu1 %v2558_v31  ;;  %v2564_v21 = vld [vmem:[#allocation20 + $0x20] ss:$8 sps:$4 sm:$0xff]  }
 0x504   :  { %v838_v40 = vpack.c.bf16 %v824_v37, %v824_v37  ;;  %v829_v41 = vrot.slane %v828_v25, 1  ;;  %v924_v55 = vsel %vm527_vm5, %v917_v27, %v923_v53  ;;  %1991 = vmatprep.subr.bf16.mxu1 %v2563_v15  ;;  %v2573_v37 = vld [vmem:[#allocation20 + $0x50] ss:$8 sps:$4 sm:$0xff]   ;;  %v2590_v27 = vld [vmem:[#allocation20 + $0xa4] ss:$8 sps:$4 sm:$0xff]  }
 0x505   :  { %v2599_v53 = vld [vmem:[#allocation20 + $0xd4] ss:$8 sps:$4 sm:$0xff]  }
 0x506   :  { %v830_v45 = vadd.f32 %v829_v41, %v828_v25  ;;  %v918_v28 = vunpack.c.l.b16 %v838_v40  ;;  %v2578_v25 = vld [vmem:[#allocation20 + $0x64] ss:$8 sps:$4 sm:$0xff]   ;;  %v2582_v41 = vld [vmem:[#allocation20 + $0x80] ss:$8 sps:$4 sm:$0xff]  }
 0x507   :  { %1992 = vmatpush1.bf16.msra.mxu1 %v2561_v6  ;;  %v2584_v40 = vld [vmem:[#allocation20 + $0x84] ss:$8 sps:$4 sm:$0xff]  }
 0x508   :  { %v839_v52 = vpack.c.bf16 %v830_v45, %v830_v45  ;;  %v925_v57 = vsel %vm529_vm6, %v918_v28, %v924_v55  ;;  %1993 = vmatprep.subr.bf16.mxu1 %v2566_v33  ;;  %v2588_v45 = vld [vmem:[#allocation20 + $0xa0] ss:$8 sps:$4 sm:$0xff]   ;;  %v2591_v28 = vld [vmem:[#allocation20 + $0xb0] ss:$8 sps:$4 sm:$0xff]  }
 0x509   :  { %v2597_v55 = vld [vmem:[#allocation20 + $0xd0] ss:$8 sps:$4 sm:$0xff]  }
 0x50a   :  { %v919_v56 = vunpack.c.l.b16 %v839_v52  ;;  %v2594_v52 = vld [vmem:[#allocation20 + $0xc0] ss:$8 sps:$4 sm:$0xff]  }
 0x50b   :  { %1994 = vmatpush1.bf16.msra.mxu1 %v2564_v21 }
 0x50c   :  { %v926_v58 = vsel %vm531_vm7, %v919_v56, %v925_v57  ;;  %v1347_v56 = vld [vmem:[#allocation17] sm:$0x7]  ;;  %v2602_v57 = vld [vmem:[#allocation20 + $0xe4] ss:$8 sps:$4 sm:$0xff]  }
 0x50d   :  { %v927_v60 = vpack.c.b16 %v926_v58, %v926_v58  ;;  %v1399_v58 = vld [vmem:[#allocation18] sm:$0x7]  ;;  %v1360_v21 = vrot.slane %v1347_v56, %v3327_v48 }
 0x50f   :  { %1090 = vmatmul.mubr.bf16.vlgmr.msra.gmra.mrb[4].mxu0 %v927_v60  ;;  %1674 = vst [vmem:[#allocation2 + $0x4] sm:$0xf] %v927_v60 }
 0x510   :  { %2353 = vmatpush3.bf16.msra.mxu0 %v2531_v59  ;;  %2368 = vmatprep.mubr.msk.bf16.mxu0 %vm3037_vm0, %v3036_v0  ;;  %v1352_v59 = vrot.slane %v1347_v56, %v3289_v22 }
 0x511   :  { %2354 = vmatprep.subr.bf16.mxu0 %v3036_v0 }
 0x514   :  { %2355 = vmatpush3.bf16.msra.mxu0 %v2535_v62  ;;  %v1356_v62 = vrot.slane %v1347_v56, %v3324_v47  ;;  %v2616_v56 = vld [vmem:[#allocation20 + $0x124] ss:$8 sps:$4 sm:$0xff]  }
 0x515   :  { %2356 = vmatprep.subr.bf16.mxu0 %v3036_v0 }
 0x518   :  { %2357 = vmatpush3.bf16.msra.mxu0 %v2536_v63  ;;  %v2605_v63 = vld [vmem:[#allocation20 + $0xf4] ss:$8 sps:$4 sm:$0xff]  }
 0x519   :  { %2358 = vmatprep.subr.bf16.mxu0 %v3036_v0 }
 0x51c   :  { %2359 = vmatpush3.bf16.msra.mxu0 %v2537_v23  ;;  %v1404_v23 = vrot.slane %v1399_v58, %v3289_v22 }
 0x51d   :  { %2360 = vmatprep.subr.bf16.mxu0 %v3036_v0 }
 0x520   :  { %2361 = vmatpush3.bf16.msra.mxu0 %v2538_v1 }
 0x521   :  { %2362 = vmatprep.subr.bf16.mxu0 %v3036_v0 }
 0x524   :  { %2363 = vmatpush3.bf16.msra.mxu0 %v2539_v3  ;;  %v1408_v3 = vrot.slane %v1399_v58, %v3324_v47 }
 0x525   :  { %2364 = vmatprep.subr.bf16.mxu0 %v3036_v0 }
 0x528   :  { %2365 = vmatpush3.bf16.msra.mxu0 %v2540_v4 }
 0x529   :  { %2366 = vmatprep.subr.bf16.mxu0 %v3036_v0 }
 0x52c   :  { %2367 = vmatpush3.bf16.msra.mxu0 %v2541_v5 }
 0x52d   :  { %2372 = vmatprep.subr.bf16.mxu0 %v3036_v0 }
 0x52f   :  { %2369 = vmatmul.mubr.bf16.vlgmr.msra.gmra.mrb[8].mxu0 %v927_v60  ;;  %v2600_v60 = vld [vmem:[#allocation20 + $0xe0] ss:$8 sps:$4 sm:$0xff]  }
 0x530   :  { %2373 = vmatpush3.bf16.msra.mxu0 %v2542_v7  ;;  %2388 = vmatprep.mubr.msk.bf16.mxu0 %vm3037_vm0, %v3036_v0  ;;  %v2603_v7 = vld [vmem:[#allocation20 + $0xf0] ss:$8 sps:$4 sm:$0xff]  }
 0x531   :  { %2374 = vmatprep.subr.bf16.mxu0 %v3036_v0 }
 0x534   :  { %2375 = vmatpush3.bf16.msra.mxu0 %v2543_v8 }
 0x535   :  { %2376 = vmatprep.subr.bf16.mxu0 %v3036_v0 }
 0x538   :  { %2377 = vmatpush3.bf16.msra.mxu0 %v2544_v9 }
 0x539   :  { %2378 = vmatprep.subr.bf16.mxu0 %v3036_v0 }
 0x53c   :  { %2379 = vmatpush3.bf16.msra.mxu0 %v2545_v14  ;;  %v2610_v14 = vld [vmem:[#allocation20 + $0x104] ss:$8 sps:$4 sm:$0xff]  }
 0x53d   :  { %2380 = vmatprep.subr.bf16.mxu0 %v3036_v0 }
 0x540   :  { %2381 = vmatpush3.bf16.msra.mxu0 %v2546_v16 }
 0x541   :  { %2382 = vmatprep.subr.bf16.mxu0 %v3036_v0 }
 0x544   :  { %2383 = vmatpush3.bf16.msra.mxu0 %v2547_v17 }
 0x545   :  { %2384 = vmatprep.subr.bf16.mxu0 %v3036_v0 }
 0x548   :  { %2385 = vmatpush3.bf16.msra.mxu0 %v2548_v19 }
 0x549   :  { %2386 = vmatprep.subr.bf16.mxu0 %v3036_v0 }
 0x54c   :  { %2387 = vmatpush3.bf16.msra.mxu0 %v2549_v49 }
 0x54d   :  { %2392 = vmatprep.subr.bf16.mxu0 %v3036_v0 }
 0x54f   :  { %2389 = vmatmul.mubr.bf16.vlgmr.msra.gmra.mrb[12].mxu0 %v3408_v44  ;;  %v2555_v44 = vld [vmem:[#allocation15 + $0x80] ss:$12 sps:$4 sm:$0xff]  }
 0x550   :  { %2393 = vmatpush3.bf16.msra.mxu0 %v2550_v20  ;;  %2408 = vmatprep.mubr.msk.bf16.mxu0 %vm3037_vm0, %v3036_v0 }
 0x551   :  { %2394 = vmatprep.subr.bf16.mxu0 %v3036_v0 }
 0x554   :  { %2395 = vmatpush3.bf16.msra.mxu0 %v2551_v24 }
 0x555   :  { %2396 = vmatprep.subr.bf16.mxu0 %v3036_v0 }
 0x558   :  { %2397 = vmatpush3.bf16.msra.mxu0 %v2552_v54 }
 0x559   :  { %2398 = vmatprep.subr.bf16.mxu0 %v3036_v0 }
 0x55c   :  { %2399 = vmatpush3.bf16.msra.mxu0 %v2553_v29 }
 0x55d   :  { %2400 = vmatprep.subr.bf16.mxu0 %v3036_v0 }
 0x560   :  { %2401 = vmatpush3.bf16.msra.mxu0 %v2554_v11 }
 0x561   :  { %2402 = vmatprep.subr.bf16.mxu0 %v3036_v0  ;;  %v3452_v30 = vpop.f32.mrb[0].mxu1 }
 0x562   :  { %v3455_v13 = vpop.f32.mrb[1].mxu1 }
 0x563   :  { %v1582_v2 = vpop.f32.mrb[2].mxu1 }
 0x564   :  { %2403 = vmatpush3.bf16.msra.mxu0 %v2555_v44  ;;  %v1583_v18 = vpop.f32.mrb[3].mxu1 }
 0x565   :  { %2404 = vmatprep.subr.bf16.mxu0 %v3036_v0 }
 0x568   :  { %2405 = vmatpush3.bf16.msra.mxu0 %v2556_v61 }
 0x569   :  { %2406 = vmatprep.subr.bf16.mxu0 %v3036_v0  ;;  %v2569_v0 = vld [vmem:[#allocation20 + $0x34] ss:$8 sps:$4 sm:$0xff]  }
 0x56a   :  { %1995 = vmatprep.subr.bf16.mxu1 %v2569_v0 }
 0x56b   :  { %1996 = vmatpush1.bf16.msra.mxu1 %v2567_v34 }
 0x56c   :  { %2407 = vmatpush3.bf16.msra.mxu0 %v2557_v12 }
 0x56f   :  { %2409 = vmatmul.mubr.bf16.vlgmr.msra.gmra.mrb[16].mxu0 %v3281_v10  ;;  %v2572_v10 = vld [vmem:[#allocation20 + $0x44] ss:$8 sps:$4 sm:$0xff]  }
 0x570   :  { %1997 = vmatprep.subr.bf16.mxu1 %v2572_v10 }
 0x571   :  { %1998 = vmatpush1.bf16.msra.mxu1 %v2570_v35 }
 0x572   :  { %1999 = vmatprep.subr.bf16.mxu1 %v2575_v36 }
 0x575   :  { %2000 = vmatpush1.bf16.msra.mxu1 %v2573_v37 }
 0x576   :  { %2001 = vmatprep.subr.bf16.mxu1 %v2578_v25 }
 0x579   :  { %2002 = vmatpush1.bf16.msra.mxu1 %v2576_v38 }
 0x57a   :  { %2003 = vmatprep.subr.bf16.mxu1 %v2581_v39 }
 0x57d   :  { %2004 = vmatpush1.bf16.msra.mxu1 %v2579_v26 }
 0x57e   :  { %2005 = vmatprep.subr.bf16.mxu1 %v2584_v40 }
 0x581   :  { %2006 = vmatpush1.bf16.msra.mxu1 %v2582_v41 }
 0x582   :  { %2007 = vmatprep.subr.bf16.mxu1 %v2587_v42  ;;  %v2691_v42 = vld [vmem:[#allocation6] sm:$0xff] }
 0x585   :  { %2008 = vmatpush1.bf16.msra.mxu1 %v2585_v43 }
 0x586   :  { %2009 = vmatprep.subr.bf16.mxu1 %v2590_v27 }
 0x589   :  { %2010 = vmatpush1.bf16.msra.mxu1 %v2588_v45 }
 0x58a   :  { %2011 = vmatprep.subr.bf16.mxu1 %v2593_v50 }
 0x58d   :  { %2012 = vmatpush1.bf16.msra.mxu1 %v2591_v28 }
 0x58e   :  { %2013 = vmatprep.subr.bf16.mxu1 %v2596_v51 }
 0x591   :  { %2014 = vmatpush1.bf16.msra.mxu1 %v2594_v52  ;;  %v2608_v52 = vld [vmem:[#allocation20 + $0x100] ss:$8 sps:$4 sm:$0xff]  }
 0x592   :  { %2015 = vmatprep.subr.bf16.mxu1 %v2599_v53  ;;  %v2613_v53 = vld [vmem:[#allocation20 + $0x114] ss:$8 sps:$4 sm:$0xff]  }
 0x595   :  { %2016 = vmatpush1.bf16.msra.mxu1 %v2597_v55  ;;  %v2611_v55 = vld [vmem:[#allocation20 + $0x110] ss:$8 sps:$4 sm:$0xff]  }
 0x596   :  { %2017 = vmatprep.subr.bf16.mxu1 %v2602_v57  ;;  %v2614_v57 = vld [vmem:[#allocation20 + $0x120] ss:$8 sps:$4 sm:$0xff]  }
 0x599   :  { %2018 = vmatpush1.bf16.msra.mxu1 %v2600_v60  ;;  %v2622_v60 = vld [vmem:[#allocation20 + $0x144] ss:$8 sps:$4 sm:$0xff]  }
 0x59a   :  { %2019 = vmatprep.subr.bf16.mxu1 %v2605_v63  ;;  %v2625_v63 = vld [vmem:[#allocation20 + $0x154] ss:$8 sps:$4 sm:$0xff]  }
 0x59d   :  { %2020 = vmatpush1.bf16.msra.mxu1 %v2603_v7 }
 0x59e   :  { %2030 = vmatprep.subr.bf16.mxu1 %v2610_v14 }
 0x5e2   :  { %v1091_v1 = vpop.f32.mrb[4].mxu0 }
 0x5e3   :  { %v2412_v4 = vadd.f32 %v1352_v59, %v1091_v1  ;;  %v1093_v5 = vpop.f32.mrb[5].mxu0  ;;  %v2617_v59 = vld [vmem:[#allocation20 + $0x130] ss:$8 sps:$4 sm:$0xff]   ;;  %v2628_v1 = vld [vmem:[#allocation20 + $0x164] ss:$8 sps:$4 sm:$0xff]  }
 0x5e4   :  { %v2415_v8 = vadd.f32 %v1356_v62, %v1093_v5  ;;  %v1095_v9 = vpop.f32.mrb[6].mxu0  ;;  %v2620_v62 = vld [vmem:[#allocation20 + $0x140] ss:$8 sps:$4 sm:$0xff]  }
 0x5e5   :  { %v1096_v16 = vpop.f32.mrb[7].mxu0  ;;  %v2413_v17 = vadd.f32 %v2412_v4, %v1404_v23  ;;  %v2623_v23 = vld [vmem:[#allocation20 + $0x150] ss:$8 sps:$4 sm:$0xff]   ;;  %v2632_v5 = vld [vmem:[#allocation2 + $0x8] ss:$0 sps:$4 sm:$0xff]  }
 0x5e6   :  { %v2416_v19 = vadd.f32 %v2415_v8, %v1408_v3  ;;  %v2631_v3 = vld [vmem:[#allocation20 + $0x174] ss:$8 sps:$4 sm:$0xff]   ;;  %v2629_v4 = vld [vmem:[#allocation20 + $0x170] ss:$8 sps:$4 sm:$0xff]  }
 0x5e7   :  { %v2414_v49 = vadd.f32 %v2413_v17, %v3452_v30 }
 0x5e8   :  { %v2417_v20 = vadd.f32 %v2416_v19, %v3455_v13  ;;  %v1412_v13 = vrot.slane %v1399_v58, %v3327_v48  ;;  %v2619_v58 = vld [vmem:[#allocation20 + $0x134] ss:$8 sps:$4 sm:$0xff]  }
 0x5e9   :  { %v2189_v18 = vmul.f32 -1.442695, %v2414_v49 }
 0x5ea   :  { %v2190_v32 = vmul.f32 -1.442695, %v2417_v20 }
 0x5eb   :  { %2681 = vpow2.f32 %v2189_v18 }
 0x5ec   :  { %2683 = vpow2.f32 %v2190_v32 }
 0x5f5   :  { %v2682_v15 = vpop.eup %2681 }
 0x5f6   :  { %v1629_v6 = vadd.f32 1.0, %v2682_v15  ;;  %v2684_v30 = vpop.eup %2683 }
 0x5f7   :  { %v1636_v33 = vadd.f32 1.0, %v2684_v30 }
 0x5f8   :  { %2685 = vrcp.f32 %v1629_v6 }
 0x5f9   :  { %2687 = vrcp.f32 %v1636_v33 }
 0x602   :  { %v1132_v24 = vpop.f32.mrb[8].mxu0  ;;  %v2686_v35 = vpop.eup %2685 }
 0x603   :  { %v2370_v54 = vpop.f32.mrb[9].mxu0  ;;  %v2688_v26 = vpop.eup %2687 }
 0x604   :  { %v1135_v29 = vpop.f32.mrb[10].mxu0  ;;  %v1642_v40 = vsub.f32 1.0, %v2688_v26  ;;  %v1644_v43 = vmul.f32 %v2691_v42, %v2688_v26 }
 0x605   :  { %v2371_v11 = vpop.f32.mrb[11].mxu0 }
 0x622   :  { %v1341_v44 = vpop.f32.mrb[12].mxu0 }
 0x623   :  { %v1342_v61 = vadd.f32 %v1341_v44, %v1132_v24  ;;  %v2390_v12 = vpop.f32.mrb[13].mxu0 }
 0x624   :  { %v1344_v2 = vpop.f32.mrb[14].mxu0 }
 0x625   :  { %v2391_v31 = vpop.f32.mrb[15].mxu0  ;;  %v1366_v37 = vadd.f32 %v1360_v21, %v1342_v61 }
 0x642   :  { %v1619_v0 = vpop.f32.mrb[16].mxu0 }
 0x643   :  { %v1620_v34 = vadd.f32 %v1619_v0, %v1412_v13  ;;  %v2410_v10 = vpop.f32.mrb[17].mxu0 }
 0x644   :  { %v1622_v36 = vpop.f32.mrb[18].mxu0 }
 0x645   :  { %v1639_v25 = vmul.f32 %v2686_v35, %v1620_v34  ;;  %v2411_v38 = vpop.f32.mrb[19].mxu0 }
 0x647   :  { %v1640_v39 = vadd.f32 %v1639_v25, %v1366_v37 }
 0x649   :  { %2689 = vtanh.f32 %v1640_v39 }
 0x653   :  { %v2690_v41 = vpop.eup %2689 }
 0x654   :  { %v1643_v27 = vmul.f32 %v2690_v41, %v1642_v40 }
 0x656   :  { %v1645_v45 = vadd.f32 %v1644_v43, %v1643_v27 }
 0x658   :  { %v1647_v50 = vpack.c.bf16 %v1645_v45, %v1645_v45  ;;  %1646 = vst [vmem:[#allocation24] sm:$0xff] %v1645_v45 }
 0x65a   :  { %1648 = vst [vmem:[#allocation2] sm:$0xf] %v1647_v50 }
 0x661   :  { %v1676_v48 = vld [vmem:[#allocation2] sm:$0xff] }
 0x662   :  { %v2199_v28 = vcombine.low %v1676_v48, %v1676_v48  ;;  %v2200_v51 = vcombine.high %v1676_v48, %v1676_v48 }
 0x664   :  { %2021 = vmatprep.mubr.bf16.mxu1 %v2200_v51 }
 0x665   :  { %2022 = vmatmul.mubr.bf16.vlgmr.msra.gmra.mrb[4].mxu1 %v2199_v28 }
 0x666   :  { %2031 = vmatpush1.bf16.msra.mxu1 %v2608_v52  ;;  %2062 = vmatprep.mubr.bf16.mxu1 %v3039_v46  ;;  %v2626_v46 = vld [vmem:[#allocation20 + $0x160] ss:$8 sps:$4 sm:$0xff]  }
 0x667   :  { %2032 = vmatprep.subr.bf16.mxu1 %v2613_v53 }
 0x66a   :  { %2033 = vmatpush1.bf16.msra.mxu1 %v2611_v55 }
 0x66b   :  { %2034 = vmatprep.subr.bf16.mxu1 %v2616_v56 }
 0x66e   :  { %2035 = vmatpush1.bf16.msra.mxu1 %v2614_v57 }
 0x66f   :  { %2036 = vmatprep.subr.bf16.mxu1 %v2619_v58 }
 0x672   :  { %2037 = vmatpush1.bf16.msra.mxu1 %v2617_v59 }
 0x673   :  { %2038 = vmatprep.subr.bf16.mxu1 %v2622_v60 }
 0x676   :  { %2039 = vmatpush1.bf16.msra.mxu1 %v2620_v62 }
 0x677   :  { %2040 = vmatprep.subr.bf16.mxu1 %v2625_v63 }
 0x67a   :  { %2041 = vmatpush1.bf16.msra.mxu1 %v2623_v23 }
 0x67b   :  { %2042 = vmatprep.subr.bf16.mxu1 %v2628_v1 }
 0x67e   :  { %2043 = vmatpush1.bf16.msra.mxu1 %v2626_v46 }
 0x67f   :  { %2044 = vmatprep.subr.bf16.mxu1 %v2631_v3 }
 0x682   :  { %2045 = vmatpush1.bf16.msra.mxu1 %v2629_v4 }
 0x685   :  { %2063 = vmatmul.mubr.bf16.vlgmr.msra.gmra.mrb[4].mxu1 %v2632_v5 }
 0x686   :  { %2967 = shalt.err (!%p2964_p2)
}
 0x687   :  { %s2968_s14 = scalar_lea.hbm %s3505_s13, 128 }
 0x688   :  { %p2969_p3 = scmp.ne.s32.totalorder %s3505_s13, %s2968_s14  ;;  %p2972_p4 = scmp.lt.u32.totalorder %s2968_s14, %s3505_s13 }
 0x68a   :  { %p2974_p5 = pnand %p2972_p4, %p2969_p3 }
 0x68c   :  { %2977 = shalt.err (!%p2974_p5)
}
 0x68d   :  { %2092 = dma.vmem_to_hbm [thread:$0]  %s2090_s6, 128, %s3505_s13, [#allocation25]   ;;  %v1726_v7 = vld [vmem:[#allocation21] sm:$0x3] }
 0x68e   :  { %v1731_v8 = vrot.slane %v1726_v7, %v3289_v22  ;;  %v1735_v9 = vrot.slane %v1726_v7, %v3324_v47  ;;  %s3041_s21 = smov [#allocation23]  }
 0x68f   :  { %s2079_s8 = sshll.u32 %s3041_s21, 4  ;;  %s2080_s8 = int_to_ptr.vmem [resolvable:$true] %s2079_s8 }
 0x690   :  { %s2978_s1 = scalar_lea.vmem %s2080_s8, 256  ;;  %p2983_p7 = scmp.lt.s32.totalorder %s2080_s8, %s2080_s8 }
 0x691   :  { %p2979_p6 = scmp.ne.s32.totalorder %s2080_s8, %s2978_s1  ;;  %p2984_p8 = scmp.lt.s32.totalorder %s2978_s1, %s2978_s1 }
 0x693   :  { %p2985_p9 = por %p2984_p8, %p2983_p7 }
 0x695   :  { %p2986_p10 = pnand %p2985_p9, %p2979_p6 }
 0x758   :  { %v2064_v14 = vpop.f32.mrb[4].mxu1 }
 0x759   :  { %v2418_v16 = vadd.f32 %v2064_v14, %v1731_v8  ;;  %v2066_v17 = vpop.f32.mrb[5].mxu1 }
 0x75a   :  { %v2419_v19 = vadd.f32 %v2066_v17, %v1735_v9  ;;  %v2068_v49 = vpop.f32.mrb[6].mxu1 }
 0x75b   :  { %2071 = vst [vmem:[#allocation23] sm:$0xff] %v2418_v16  ;;  %v2069_v20 = vpop.f32.mrb[7].mxu1 }
 0x75c   :  { %2072 = vst [vmem:[#allocation23 + $0x8] sm:$0xff] %v2419_v19 }
 0x75d   :  { %2989 = shalt.err (!%p2986_p10)
}
 0x75e   :  { %s2990_s26 = scalar_lea.hbm %s3504_s12, 256 }
 0x75f   :  { %p2991_p11 = scmp.ne.s32.totalorder %s3504_s12, %s2990_s26  ;;  %p2994_p12 = scmp.lt.u32.totalorder %s2990_s26, %s3504_s12 }
 0x761   :  { %p2996_p13 = pnand %p2994_p12, %p2991_p11 }
 0x763   :  { %2999 = shalt.err (!%p2996_p13)
}
 0x764   :  { %2082 = dma.vmem_to_hbm [thread:$0]  %s2080_s8, 256, %s3504_s12, [#allocation5]  }
 0x765   :  { %3014 = dma.done.wait [#allocation5], 256  }
 0x766   :  { %3015 = vsyncadd [#allocation5], 4294967040 }
 0x767   :  { %3016 = dma.done.wait [#allocation25], 128  }
 0x768   :  { %3017 = vsyncadd [#allocation25], 4294967168 }
 0x769   :  { %2099 = vsyncpa [#allocation4], 1 }
 0x76a   :  { %2100 = vsyncpa [#allocation7], 1 }
 0x76b   :  { %2101 = vsyncpa [#allocation10], 1 }
 0x76c   :  { %2102 = vsyncpa [#allocation13], 1 }
 0x76d   :  { %2103 = vsyncpa [#allocation16], 1 }
 0x76e   :  { %2104 = vsyncpa [#allocation19], 1 }
 0x76f   :  { %2105 = vsyncpa [#allocation22], 1 }
 0x770   :  { %2106 = vsyncpa [#allocation5], 1 }
 0x771   :  { %2107 = vsyncpa [#allocation25], 1 }

// kernel: decoder_forward.1
= control target key start
LH: loop header
LB: loop body
LE: loop exit
PB: predicated region body
PF: predicated region fallthrough
CT: control target
= control target key end

     0   :  { %19 = vsyncpa [#allocation4], 0  ;;  %s3438_s0 = inlined_call_operand.hbm [shape: f32[8,128], index: 0, kind: input, shape index: {}]   ;;  %s3439_s1 = inlined_call_operand.hbm [shape: f32[8,128], index: 1, kind: input, shape index: {}]   ;;  %s3440_s2 = inlined_call_operand.hbm [shape: f32[8,8,128], index: 2, kind: input, shape index: {}]   ;;  %s3441_s3 = inlined_call_operand.hbm [shape: f32[8,8,128], index: 3, kind: input, shape index: {}]   ;;  %s3442_s4 = inlined_call_operand.hbm [shape: bf16[128,128], index: 4, kind: input, shape index: {}]   ;;  %s3443_s5 = inlined_call_operand.hbm [shape: f32[1,128], index: 5, kind: input, shape index: {}]   ;;  %s3444_s6 = inlined_call_operand.hbm [shape: bf16[256,384], index: 6, kind: input, shape index: {}]   ;;  %s3445_s7 = inlined_call_operand.hbm [shape: bf16[128,384], index: 7, kind: input, shape index: {}]   ;;  %s3446_s8 = inlined_call_operand.hbm [shape: f32[1,384], index: 8, kind: input, shape index: {}]   ;;  %s3447_s9 = inlined_call_operand.hbm [shape: f32[1,384], index: 9, kind: input, shape index: {}]   ;;  %s3448_s10 = inlined_call_operand.hbm [shape: bf16[384,256], index: 10, kind: input, shape index: {}]   ;;  %s3449_s11 = inlined_call_operand.hbm [shape: f32[1,256], index: 11, kind: input, shape index: {}]   ;;  %s3450_s12 = inlined_call_operand.hbm [shape: f32[8,256], index: 12, kind: output, shape index: {0}]   ;;  %s3451_s13 = inlined_call_operand.hbm [shape: f32[8,128], index: 13, kind: output, shape index: {1}]  }
   0x1   :  { %20 = vsyncpa [#allocation7], 0 }
   0x2   :  { %21 = vsyncpa [#allocation10], 0 }
   0x3   :  { %22 = vsyncpa [#allocation13], 0 }
   0x4   :  { %23 = vsyncpa [#allocation16], 0 }
   0x5   :  { %24 = vsyncpa [#allocation19], 0 }
   0x6   :  { %25 = vsyncpa [#allocation22], 0 }
   0x7   :  { %26 = vsyncpa [#allocation5], 0 }
   0x8   :  { %27 = vsyncpa [#allocation25], 0  ;;  %s2964_s25 = smov [#allocation6]   ;;  %s2638_s29 = scalar_lea.hbm %s3439_s1, 128 }
   0x9   :  { %s44_s26 = sshll.u32 %s2964_s25, 4  ;;  %p2639_p0 = scmp.ne.s32.totalorder %s3439_s1, %s2638_s29  ;;  %s45_s26 = int_to_ptr.vmem [resolvable:$true] %s44_s26 }
   0xa   :  { %p2642_p1 = scmp.lt.u32.totalorder %s2638_s29, %s3439_s1 }
   0xc   :  { %p2644_p2 = pnand %p2642_p1, %p2639_p0 }
   0xe   :  { %2647 = shalt.err (!%p2644_p2)
}
   0xf   :  { %s2648_s17 = scalar_lea.vmem %s45_s26, 128  ;;  %p2653_p4 = scmp.lt.s32.totalorder %s45_s26, %s45_s26 }
  0x10   :  { %p2649_p3 = scmp.ne.s32.totalorder %s45_s26, %s2648_s17  ;;  %p2654_p5 = scmp.lt.s32.totalorder %s2648_s17, %s2648_s17 }
  0x12   :  { %p2655_p6 = por %p2654_p5, %p2653_p4 }
  0x14   :  { %p2656_p7 = pnand %p2655_p6, %p2649_p3 }
  0x16   :  { %2659 = shalt.err (!%p2656_p7)
}
  0x17   :  { %47 = dma.hbm_to_vmem [thread:$0]  %s3439_s1, 128, %s45_s26, [#allocation7]  }
  0x18   :  { %s2965_s20 = smov [#allocation9]   ;;  %s2966_s22 = smov [#allocation12]  }
  0x19   :  { %s65_s21 = sshll.u32 %s2965_s20, 4  ;;  %s90_s23 = sshll.u32 %s2966_s22, 4  ;;  %s66_s21 = int_to_ptr.vmem [resolvable:$true] %s65_s21  ;;  %s91_s23 = int_to_ptr.vmem [resolvable:$true] %s90_s23 }
  0x1a   :  { %s2660_s27 = scalar_lea.hbm %s3441_s3, 1024 }
  0x1b   :  { %p2661_p8 = scmp.ne.s32.totalorder %s3441_s3, %s2660_s27  ;;  %p2664_p9 = scmp.lt.u32.totalorder %s2660_s27, %s3441_s3 }
  0x1d   :  { %p2666_p10 = pnand %p2664_p9, %p2661_p8 }
  0x1f   :  { %2669 = shalt.err (!%p2666_p10)
}
  0x20   :  { %s2670_s1 = scalar_lea.vmem %s66_s21, 1024  ;;  %p2675_p12 = scmp.lt.s32.totalorder %s66_s21, %s66_s21 }
  0x21   :  { %p2671_p11 = scmp.ne.s32.totalorder %s66_s21, %s2670_s1  ;;  %p2676_p13 = scmp.lt.s32.totalorder %s2670_s1, %s2670_s1 }
  0x23   :  { %p2677_p0 = por %p2676_p13, %p2675_p12 }
  0x25   :  { %p2678_p1 = pnand %p2677_p0, %p2671_p11 }
  0x27   :  { %2681 = shalt.err (!%p2678_p1)
}
  0x28   :  { %s2967_s26 = smov 128   ;;  %s2968_s15 = smov 8  }
  0x29   :  { %71 = dma.hbm_to_vmem [thread:$0]  %s3441_s3, 1024, %s66_s21, [#allocation10], %s2967_s26, %s2967_s26, %s2968_s15  }
  0x2a   :  { %s2682_s20 = scalar_lea.hbm %s3443_s5, 16 }
  0x2b   :  { %p2683_p2 = scmp.ne.s32.totalorder %s3443_s5, %s2682_s20  ;;  %p2686_p3 = scmp.lt.u32.totalorder %s2682_s20, %s3443_s5 }
  0x2d   :  { %p2688_p4 = pnand %p2686_p3, %p2683_p2 }
  0x2f   :  { %2691 = shalt.err (!%p2688_p4)
}
  0x30   :  { %s2692_s28 = scalar_lea.vmem %s91_s23, 16  ;;  %s2696_s29 = scalar_lea.vmem %s91_s23, 32 }
  0x31   :  { %p2693_p5 = scmp.ne.s32.totalorder %s91_s23, %s2692_s28  ;;  %p2697_p6 = scmp.lt.s32.totalorder %s91_s23, %s91_s23 }
  0x32   :  { %p2698_p7 = scmp.lt.s32.totalorder %s2696_s29, %s2692_s28 }
  0x34   :  { %p2699_p8 = por %p2698_p7, %p2697_p6 }
  0x36   :  { %p2700_p9 = pnand %p2699_p8, %p2693_p5 }
  0x38   :  { %2703 = shalt.err (!%p2700_p9)
}
  0x39   :  { %93 = dma.hbm_to_vmem [thread:$0]  %s3443_s5, 16, %s91_s23, [#allocation13]  }
  0x3a   :  { %s2969_s30 = smov [#allocation15]   ;;  %s2970_s1 = smov [#allocation18]  }
  0x3b   :  { %s111_s14 = sshll.u32 %s2969_s30, 4  ;;  %s134_s16 = sshll.u32 %s2970_s1, 4  ;;  %s112_s14 = int_to_ptr.vmem [resolvable:$true] %s111_s14  ;;  %s135_s16 = int_to_ptr.vmem [resolvable:$true] %s134_s16 }
  0x3c   :  { %s2704_s19 = scalar_lea.hbm %s3445_s7, 3072 }
  0x3d   :  { %p2705_p10 = scmp.ne.s32.totalorder %s3445_s7, %s2704_s19  ;;  %p2708_p11 = scmp.lt.u32.totalorder %s2704_s19, %s3445_s7 }
  0x3f   :  { %p2710_p12 = pnand %p2708_p11, %p2705_p10 }
  0x41   :  { %2713 = shalt.err (!%p2710_p12)
}
  0x42   :  { %s2714_s5 = scalar_lea.vmem %s112_s14, 3072  ;;  %p2719_p0 = scmp.lt.s32.totalorder %s112_s14, %s112_s14 }
  0x43   :  { %p2715_p13 = scmp.ne.s32.totalorder %s112_s14, %s2714_s5  ;;  %p2720_p1 = scmp.lt.s32.totalorder %s2714_s5, %s2714_s5 }
  0x45   :  { %p2721_p2 = por %p2720_p1, %p2719_p0 }
  0x47   :  { %p2722_p3 = pnand %p2721_p2, %p2715_p13 }
  0x49   :  { %2725 = shalt.err (!%p2722_p3)
}
  0x4a   :  { %s2971_s23 = smov 192   ;;  %s2972_s27 = smov 12  }
  0x4b   :  { %117 = dma.hbm_to_vmem [thread:$0]  %s3445_s7, 3072, %s112_s14, [#allocation16], %s2971_s23, %s2971_s23, %s2972_s27  }
  0x4c   :  { %s2726_s30 = scalar_lea.hbm %s3447_s9, 48 }
  0x4d   :  { %p2727_p4 = scmp.ne.s32.totalorder %s3447_s9, %s2726_s30  ;;  %p2730_p5 = scmp.lt.u32.totalorder %s2726_s30, %s3447_s9 }
  0x4f   :  { %p2732_p6 = pnand %p2730_p5, %p2727_p4 }
  0x51   :  { %2735 = shalt.err (!%p2732_p6)
}
  0x52   :  { %s2736_s20 = scalar_lea.vmem %s135_s16, 48  ;;  %s2740_s22 = scalar_lea.vmem %s135_s16, 64 }
  0x53   :  { %p2737_p7 = scmp.ne.s32.totalorder %s135_s16, %s2736_s20  ;;  %p2741_p8 = scmp.lt.s32.totalorder %s135_s16, %s135_s16 }
  0x54   :  { %p2742_p9 = scmp.lt.s32.totalorder %s2740_s22, %s2736_s20 }
  0x56   :  { %p2743_p10 = por %p2742_p9, %p2741_p8 }
  0x58   :  { %p2744_p11 = pnand %p2743_p10, %p2737_p7 }
  0x5a   :  { %2747 = shalt.err (!%p2744_p11)
}
  0x5b   :  { %137 = dma.hbm_to_vmem [thread:$0]  %s3447_s9, 48, %s135_s16, [#allocation19]  }
  0x5c   :  { %s2973_s24 = smov [#allocation3]   ;;  %s2974_s5 = smov [#allocation8]  }
  0x5d   :  { %s34_s25 = sshll.u32 %s2973_s24, 4  ;;  %s53_s28 = sshll.u32 %s2974_s5, 4  ;;  %s35_s25 = int_to_ptr.vmem [resolvable:$true] %s34_s25  ;;  %s54_s28 = int_to_ptr.vmem [resolvable:$true] %s53_s28 }
  0x5e   :  { %s2748_s21 = scalar_lea.hbm %s3438_s0, 128 }
  0x5f   :  { %p2749_p12 = scmp.ne.s32.totalorder %s3438_s0, %s2748_s21  ;;  %p2752_p13 = scmp.lt.u32.totalorder %s2748_s21, %s3438_s0 }
  0x61   :  { %p2754_p0 = pnand %p2752_p13, %p2749_p12 }
  0x63   :  { %2757 = shalt.err (!%p2754_p0)
}
  0x64   :  { %s2758_s9 = scalar_lea.vmem %s35_s25, 128  ;;  %p2763_p2 = scmp.lt.s32.totalorder %s35_s25, %s35_s25 }
  0x65   :  { %p2759_p1 = scmp.ne.s32.totalorder %s35_s25, %s2758_s9  ;;  %p2764_p3 = scmp.lt.s32.totalorder %s2758_s9, %s2758_s9 }
  0x67   :  { %p2765_p4 = por %p2764_p3, %p2763_p2 }
  0x69   :  { %p2766_p5 = pnand %p2765_p4, %p2759_p1 }
  0x6b   :  { %2769 = shalt.err (!%p2766_p5)
}
  0x6c   :  { %37 = dma.hbm_to_vmem [thread:$0]  %s3438_s0, 128, %s35_s25, [#allocation4]  }
  0x6d   :  { %s2770_s7 = scalar_lea.hbm %s3440_s2, 1024 }
  0x6e   :  { %p2771_p6 = scmp.ne.s32.totalorder %s3440_s2, %s2770_s7  ;;  %p2774_p7 = scmp.lt.u32.totalorder %s2770_s7, %s3440_s2 }
  0x70   :  { %p2776_p8 = pnand %p2774_p7, %p2771_p6 }
  0x72   :  { %2779 = shalt.err (!%p2776_p8)
}
  0x73   :  { %s2780_s3 = scalar_lea.vmem %s54_s28, 1024  ;;  %p2785_p10 = scmp.lt.s32.totalorder %s54_s28, %s54_s28 }
  0x74   :  { %p2781_p9 = scmp.ne.s32.totalorder %s54_s28, %s2780_s3  ;;  %p2786_p11 = scmp.lt.s32.totalorder %s2780_s3, %s2780_s3 }
  0x76   :  { %p2787_p12 = por %p2786_p11, %p2785_p10 }
  0x78   :  { %p2788_p13 = pnand %p2787_p12, %p2781_p9 }
  0x7a   :  { %2791 = shalt.err (!%p2788_p13)
}
  0x7b   :  { %59 = dma.hbm_to_vmem [thread:$0]  %s3440_s2, 1024, %s54_s28, [#allocation7], %s2967_s26, %s2967_s26, %s2968_s15  }
  0x7c   :  { %s2975_s21 = smov [#allocation11]   ;;  %s2792_s18 = scalar_lea.hbm %s3442_s4, 1024 }
  0x7d   :  { %s77_s30 = sshll.u32 %s2975_s21, 4  ;;  %p2793_p0 = scmp.ne.s32.totalorder %s3442_s4, %s2792_s18  ;;  %s78_s30 = int_to_ptr.vmem [resolvable:$true] %s77_s30 }
  0x7e   :  { %p2796_p1 = scmp.lt.u32.totalorder %s2792_s18, %s3442_s4 }
  0x80   :  { %p2798_p2 = pnand %p2796_p1, %p2793_p0 }
  0x82   :  { %2801 = shalt.err (!%p2798_p2)
}
  0x83   :  { %s2802_s22 = scalar_lea.vmem %s78_s30, 1024  ;;  %p2807_p4 = scmp.lt.s32.totalorder %s78_s30, %s78_s30 }
  0x84   :  { %p2803_p3 = scmp.ne.s32.totalorder %s78_s30, %s2802_s22  ;;  %p2808_p5 = scmp.lt.s32.totalorder %s2802_s22, %s2802_s22 }
  0x86   :  { %p2809_p6 = por %p2808_p5, %p2807_p4 }
  0x88   :  { %p2810_p7 = pnand %p2809_p6, %p2803_p3 }
  0x8a   :  { %2813 = shalt.err (!%p2810_p7)
}
  0x8b   :  { %s2976_s2 = smov 64   ;;  %s2977_s28 = smov 4  }
  0x8c   :  { %83 = dma.hbm_to_vmem [thread:$0]  %s3442_s4, 1024, %s78_s30, [#allocation10], %s2976_s2, %s2976_s2, %s2977_s28  }
  0x8d   :  { %s2978_s24 = smov [#allocation14]   ;;  %s2979_s29 = smov [#allocation17]  }
  0x8e   :  { %s99_s5 = sshll.u32 %s2978_s24, 4  ;;  %s124_s3 = sshll.u32 %s2979_s29, 4  ;;  %s100_s5 = int_to_ptr.vmem [resolvable:$true] %s99_s5  ;;  %s125_s3 = int_to_ptr.vmem [resolvable:$true] %s124_s3 }
  0x8f   :  { %s2814_s21 = scalar_lea.hbm %s3444_s6, 6144 }
  0x90   :  { %p2815_p8 = scmp.ne.s32.totalorder %s3444_s6, %s2814_s21  ;;  %p2818_p9 = scmp.lt.u32.totalorder %s2814_s21, %s3444_s6 }
  0x92   :  { %p2820_p10 = pnand %p2818_p9, %p2815_p8 }
  0x94   :  { %2823 = shalt.err (!%p2820_p10)
}
  0x95   :  { %s2824_s4 = scalar_lea.vmem %s100_s5, 6144  ;;  %p2829_p12 = scmp.lt.s32.totalorder %s100_s5, %s100_s5 }
  0x96   :  { %p2825_p11 = scmp.ne.s32.totalorder %s100_s5, %s2824_s4  ;;  %p2830_p13 = scmp.lt.s32.totalorder %s2824_s4, %s2824_s4 }
  0x98   :  { %p2831_p0 = por %p2830_p13, %p2829_p12 }
  0x9a   :  { %p2832_p1 = pnand %p2831_p0, %p2825_p11 }
  0x9c   :  { %2835 = shalt.err (!%p2832_p1)
}
  0x9d   :  { %105 = dma.hbm_to_vmem [thread:$0]  %s3444_s6, 6144, %s100_s5, [#allocation13], %s2971_s23, %s2971_s23, %s2972_s27  }
  0x9e   :  { %s2836_s22 = scalar_lea.hbm %s3446_s8, 48 }
  0x9f   :  { %p2837_p2 = scmp.ne.s32.totalorder %s3446_s8, %s2836_s22  ;;  %p2840_p3 = scmp.lt.u32.totalorder %s2836_s22, %s3446_s8 }
  0xa1   :  { %p2842_p4 = pnand %p2840_p3, %p2837_p2 }
  0xa3   :  { %2845 = shalt.err (!%p2842_p4)
}
  0xa4   :  { %s2846_s24 = scalar_lea.vmem %s125_s3, 48  ;;  %s2850_s29 = scalar_lea.vmem %s125_s3, 64 }
  0xa5   :  { %p2847_p5 = scmp.ne.s32.totalorder %s125_s3, %s2846_s24  ;;  %p2851_p6 = scmp.lt.s32.totalorder %s125_s3, %s125_s3 }
  0xa6   :  { %p2852_p7 = scmp.lt.s32.totalorder %s2850_s29, %s2846_s24 }
  0xa8   :  { %p2853_p8 = por %p2852_p7, %p2851_p6 }
  0xaa   :  { %p2854_p9 = pnand %p2853_p8, %p2847_p5 }
  0xac   :  { %2857 = shalt.err (!%p2854_p9)
}
  0xad   :  { %127 = dma.hbm_to_vmem [thread:$0]  %s3446_s8, 48, %s125_s3, [#allocation16]  }
  0xae   :  { %s2980_s27 = smov [#allocation20]   ;;  %s2981_s0 = smov [#allocation21]  }
  0xaf   :  { %s143_s5 = sshll.u32 %s2980_s27, 4  ;;  %s156_s25 = sshll.u32 %s2981_s0, 4  ;;  %s144_s5 = int_to_ptr.vmem [resolvable:$true] %s143_s5  ;;  %s157_s25 = int_to_ptr.vmem [resolvable:$true] %s156_s25 }
  0xb0   :  { %s2858_s17 = scalar_lea.hbm %s3448_s10, 6144 }
  0xb1   :  { %p2859_p10 = scmp.ne.s32.totalorder %s3448_s10, %s2858_s17  ;;  %p2862_p11 = scmp.lt.u32.totalorder %s2858_s17, %s3448_s10 }
  0xb3   :  { %p2864_p12 = pnand %p2862_p11, %p2859_p10 }
  0xb5   :  { %2867 = shalt.err (!%p2864_p12)
}
  0xb6   :  { %s2868_s8 = scalar_lea.vmem %s144_s5, 6144  ;;  %p2873_p0 = scmp.lt.s32.totalorder %s144_s5, %s144_s5 }
  0xb7   :  { %p2869_p13 = scmp.ne.s32.totalorder %s144_s5, %s2868_s8  ;;  %p2874_p1 = scmp.lt.s32.totalorder %s2868_s8, %s2868_s8 }
  0xb9   :  { %p2875_p2 = por %p2874_p1, %p2873_p0 }
  0xbb   :  { %p2876_p3 = pnand %p2875_p2, %p2869_p13 }
  0xbd   :  { %2879 = shalt.err (!%p2876_p3)
}
  0xbe   :  { %149 = dma.hbm_to_vmem [thread:$0]  %s3448_s10, 6144, %s144_s5, [#allocation19], %s2967_s26, %s2967_s26, %s2968_s15  }
  0xbf   :  { %s2880_s22 = scalar_lea.hbm %s3449_s11, 32 }
  0xc0   :  { %p2881_p4 = scmp.ne.s32.totalorder %s3449_s11, %s2880_s22  ;;  %p2884_p5 = scmp.lt.u32.totalorder %s2880_s22, %s3449_s11 }
  0xc2   :  { %p2886_p6 = pnand %p2884_p5, %p2881_p4 }
  0xc4   :  { %2889 = shalt.err (!%p2886_p6)
}
  0xc5   :  { %s2890_s24 = scalar_lea.vmem %s157_s25, 32  ;;  %p2895_p8 = scmp.lt.s32.totalorder %s157_s25, %s157_s25 }
  0xc6   :  { %p2891_p7 = scmp.ne.s32.totalorder %s157_s25, %s2890_s24  ;;  %p2896_p9 = scmp.lt.s32.totalorder %s2890_s24, %s2890_s24 }
  0xc8   :  { %p2897_p10 = por %p2896_p9, %p2895_p8 }
  0xca   :  { %p2898_p11 = pnand %p2897_p10, %p2891_p7 }
  0xcc   :  { %2901 = shalt.err (!%p2898_p11)
}
  0xcd   :  { %159 = dma.hbm_to_vmem [thread:$0]  %s3449_s11, 32, %s157_s25, [#allocation22]  }
  0xce   :  { %2946 = dma.done.wait [#allocation4], 128  }
  0xcf   :  { %2947 = vsyncadd [#allocation4], 4294967168 }
  0xd0   :  { %2948 = dma.done.wait [#allocation7], 1152  }
  0xd1   :  { %2949 = vsyncadd [#allocation7], 4294966144 }
  0xd2   :  { %2950 = dma.done.wait [#allocation10], 2048  }
  0xd3   :  { %2951 = vsyncadd [#allocation10], 4294965248 }
  0xd4   :  { %2952 = dma.done.wait [#allocation13], 6160  }
  0xd5   :  { %2953 = vsyncadd [#allocation13], 4294961136 }
  0xd6   :  { %2954 = dma.done.wait [#allocation16], 3120  }
  0xd7   :  { %2955 = vsyncadd [#allocation16], 4294964176 }
  0xd8   :  { %2956 = dma.done.wait [#allocation19], 6192  }
  0xd9   :  { %2957 = vsyncadd [#allocation19], 4294961104 }
  0xda   :  { %2958 = dma.done.wait [#allocation22], 32  }
  0xdb   :  { %2959 = vsyncadd [#allocation22], 4294967264  ;;  %v2982_v0 = vmov 0.0   ;;  %vm2983_vm0 = vmmov 0   ;;  %v2400_v1 = vld [vmem:[#allocation11] sm:$0xff]   ;;  %v2401_v2 = vld [vmem:[#allocation11 + $0x8] sm:$0xff]   ;;  %v329_v13 = vlaneseq }
  0xdc   :  { %2278 = vmatprep.subr.bf16.mxu0 %v2982_v0  ;;  %2294 = vmatprep.mubr.msk.bf16.mxu0 %vm2983_vm0, %v2982_v0  ;;  %v2402_v3 = vld [vmem:[#allocation11 + $0x10] sm:$0xff]   ;;  %v2403_v4 = vld [vmem:[#allocation11 + $0x18] sm:$0xff]   ;;  %v2404_v5 = vld [vmem:[#allocation11 + $0x20] sm:$0xff]   ;;  %v2984_v11 = vmov 1966171168   ;;  %vm503_vm1 = vcmask 1041409  }
  0xdd   :  { %2279 = vmatpush3.bf16.msra.mxu0 %v2400_v1  ;;  %v2405_v6 = vld [vmem:[#allocation11 + $0x28] sm:$0xff]   ;;  %v2406_v7 = vld [vmem:[#allocation11 + $0x30] sm:$0xff]   ;;  %v2407_v8 = vld [vmem:[#allocation11 + $0x38] sm:$0xff]   ;;  %v327_v12 = vunpack.c.l.s4 %v2984_v11  ;;  %v3231_v15 = vshrl.u32 %v329_v13, 7  ;;  %vm505_vm2 = vcmask 1042434   ;;  %vm507_vm3 = vcmask 1043459  }
  0xde   :  { %2280 = vmatprep.subr.bf16.mxu0 %v2982_v0  ;;  %v202_v9 = vld [vmem:[#allocation6] sm:$0xff]  ;;  %v211_v27 = vld [vmem:[#allocation9] sm:$0xff]  ;;  %v212_v33 = vld [vmem:[#allocation9 + $0x8] sm:$0xff]  ;;  %vm509_vm4 = vcmask 1044484   ;;  %vm511_vm5 = vcmask 1045509   ;;  %vm513_vm6 = vcmask 1046534  }
  0xdf   :  { %v3227_v10 = vpack.c.bf16 %v202_v9, %v202_v9  ;;  %v328_v14 = vunpack.c.0.s8 %v327_v12  ;;  %v3235_v21 = vsub.s32 0, %v3231_v15  ;;  %v213_v34 = vld [vmem:[#allocation9 + $0x10] sm:$0xff]  ;;  %v214_v38 = vld [vmem:[#allocation9 + $0x18] sm:$0xff]  ;;  %v215_v43 = vld [vmem:[#allocation9 + $0x20] sm:$0xff]  ;;  %vm515_vm7 = vcmask 1047559   ;;  %s2986_s11 = smov [#allocation24]  }
  0xe0   :  { %v216_v50 = vld [vmem:[#allocation9 + $0x28] sm:$0xff]  ;;  %v217_v53 = vld [vmem:[#allocation9 + $0x30] sm:$0xff]  ;;  %v218_v57 = vld [vmem:[#allocation9 + $0x38] sm:$0xff]  ;;  %vm518_vm8 = vcmask 64512   ;;  %s2073_s15 = sshll.u32 %s2986_s11, 4  ;;  %s2074_s15 = int_to_ptr.vmem [resolvable:$true] %s2073_s15 }
  0xe1   :  { %2281 = vmatpush3.bf16.msra.mxu0 %v2401_v2  ;;  %v331_v16 = vsub.s32 %v328_v14, %v3231_v15  ;;  %v2100_v58 = vld [vmem:[#allocation12] ss:$0 sm:$0xff]  ;;  %s2902_s29 = scalar_lea.vmem %s2074_s15, 128  ;;  %p2907_p13 = scmp.lt.s32.totalorder %s2074_s15, %s2074_s15 }
  0xe2   :  { %2282 = vmatprep.subr.bf16.mxu0 %v2982_v0  ;;  %p2903_p12 = scmp.ne.s32.totalorder %s2074_s15, %s2902_s29  ;;  %p2908_p0 = scmp.lt.s32.totalorder %s2902_s29, %s2902_s29 }
  0xe4   :  { %p2909_p1 = por %p2908_p0, %p2907_p13 }
  0xe5   :  { %2283 = vmatpush3.bf16.msra.mxu0 %v2402_v3 }
  0xe6   :  { %2284 = vmatprep.subr.bf16.mxu0 %v2982_v0  ;;  %p2910_p2 = pnand %p2909_p1, %p2903_p12 }
  0xe9   :  { %2285 = vmatpush3.bf16.msra.mxu0 %v2403_v4 }
  0xea   :  { %2286 = vmatprep.subr.bf16.mxu0 %v2982_v0 }
  0xed   :  { %2287 = vmatpush3.bf16.msra.mxu0 %v2404_v5 }
  0xee   :  { %2288 = vmatprep.subr.bf16.mxu0 %v2982_v0 }
  0xf1   :  { %2289 = vmatpush3.bf16.msra.mxu0 %v2405_v6 }
  0xf2   :  { %2290 = vmatprep.subr.bf16.mxu0 %v2982_v0 }
  0xf5   :  { %2291 = vmatpush3.bf16.msra.mxu0 %v2406_v7 }
  0xf6   :  { %2292 = vmatprep.subr.bf16.mxu0 %v2982_v0 }
  0xf9   :  { %2293 = vmatpush3.bf16.msra.mxu0 %v2407_v8 }
  0xfc   :  { %2295 = vmatmul.mubr.bf16.vlgmr.msra.gmra.mrb[0].mxu0 %v3227_v10 }
 0x1cf   :  { %v318_v17 = vpop.f32.mrb[0].mxu0 }
 0x1d0   :  { %v325_v18 = vcombine.high %v318_v17, %v318_v17  ;;  %v332_v19 = vrot.slane %v318_v17, %v331_v16  ;;  %v2296_v20 = vpop.f32.mrb[1].mxu0 }
 0x1d1   :  { %v321_v22 = vpop.f32.mrb[2].mxu0 }
 0x1d2   :  { %v339_v23 = vrot.slane %v325_v18, %v331_v16  ;;  %v340_v24 = vcombine.high %v332_v19, %v332_v19  ;;  %v348_v25 = vrot.slane %v332_v19, %v331_v16  ;;  %v2297_v26 = vpop.f32.mrb[3].mxu0 }
 0x1d4   :  { %v341_v28 = vcombine.high %v339_v23, %v339_v23  ;;  %v355_v29 = vrot.slane %v339_v23, %v331_v16  ;;  %v362_v30 = vrot.slane %v340_v24, %v331_v16  ;;  %v370_v31 = vcombine.high %v348_v25, %v348_v25 }
 0x1d5   :  { %v377_v32 = vrot.slane %v348_v25, %v3235_v21 }
 0x1d6   :  { %v369_v35 = vrot.slane %v341_v28, %v331_v16  ;;  %v372_v36 = vcombine.high %v362_v30, %v362_v30  ;;  %v381_v37 = vrot.slane %v362_v30, %v3235_v21  ;;  %v371_v39 = vcombine.high %v355_v29, %v355_v29 }
 0x1d7   :  { %v385_v40 = vrot.slane %v370_v31, %v3235_v21  ;;  %v393_v41 = vrot.slane %v355_v29, %v3235_v21  ;;  %v414_v42 = vadd.f32 %v377_v32, %v211_v27  ;;  %v470_v16 = vand.u32 127, %v329_v13 }
 0x1d8   :  { %v389_v44 = vrot.slane %v372_v36, %v3235_v21  ;;  %v415_v45 = vadd.f32 %v381_v37, %v212_v33  ;;  %v373_v47 = vcombine.high %v369_v35, %v369_v35  ;;  %v397_v48 = vrot.slane %v369_v35, %v3235_v21 }
 0x1d9   :  { %v416_v46 = vadd.f32 %v385_v40, %v213_v34  ;;  %2579 = vtanh.f32 %v414_v42  ;;  %v401_v51 = vrot.slane %v371_v39, %v3235_v21  ;;  %v418_v52 = vadd.f32 %v393_v41, %v215_v43 }
 0x1da   :  { %v417_v49 = vadd.f32 %v389_v44, %v214_v38  ;;  %2581 = vtanh.f32 %v415_v45  ;;  %v405_v54 = vrot.slane %v373_v47, %v3235_v21  ;;  %v419_v55 = vadd.f32 %v397_v48, %v216_v50 }
 0x1db   :  { %2583 = vtanh.f32 %v416_v46  ;;  %v420_v56 = vadd.f32 %v401_v51, %v217_v53  ;;  %v3247_v18 = vsub.s32 %v470_v16, %v3231_v15  ;;  %v2985_v42 = vmov 0  }
 0x1dc   :  { %2585 = vtanh.f32 %v417_v49  ;;  %v421_v59 = vadd.f32 %v405_v54, %v218_v57  ;;  %2399 = vset.pattern.permute.xlu0 %v2985_v42  ;;  %2398 = vset.pattern.permute.xlu1 %v2985_v42  ;;  %v3270_v43 = vsub.s32 1, %v3231_v15  ;;  %v3273_v44 = vsub.s32 2, %v3231_v15 }
 0x1dd   :  { %2587 = vtanh.f32 %v418_v52  ;;  %1282 = vmatprep.mubr.bf16.mxu1 %v2985_v42  ;;  %1073 = vmatprep.mubr.bf16.mxu0 %v2985_v42  ;;  %v537_v45 = vsub.s32 3, %v3231_v15  ;;  %v541_v50 = vsub.s32 4, %v3231_v15  ;;  %v545_v57 = vsub.s32 5, %v3231_v15 }
 0x1de   :  { %2589 = vtanh.f32 %v419_v55 }
 0x1df   :  { %2591 = vtanh.f32 %v420_v56 }
 0x1e0   :  { %2593 = vtanh.f32 %v421_v59 }
 0x1e3   :  { %v2580_v60 = vpop.eup %2579 }
 0x1e4   :  { %v437_v61 = vmul.f32 %v2580_v60, %v2100_v58  ;;  %v2582_v62 = vpop.eup %2581 }
 0x1e5   :  { %v2584_v63 = vpop.eup %2583  ;;  %v438_v3 = vmul.f32 %v2582_v62, %v2100_v58 }
 0x1e6   :  { %445 = vadd.xlane.f32.xlu0 %v437_v61  ;;  %v439_v1 = vmul.f32 %v2584_v63, %v2100_v58  ;;  %v2586_v2 = vpop.eup %2585  ;;  %v549_v61 = vsub.s32 6, %v3231_v15 }
 0x1e7   :  { %v2588_v4 = vpop.eup %2587  ;;  %v440_v5 = vmul.f32 %v2586_v2, %v2100_v58  ;;  %v553_v2 = vsub.s32 7, %v3231_v15 }
 0x1e8   :  { %449 = vadd.xlane.f32.xlu1 %v439_v1  ;;  %v2590_v6 = vpop.eup %2589  ;;  %v441_v7 = vmul.f32 %v2588_v4, %v2100_v58 }
 0x1e9   :  { %v2592_v8 = vpop.eup %2591  ;;  %v442_v9 = vmul.f32 %v2590_v6, %v2100_v58 }
 0x1ea   :  { %447 = vadd.xlane.f32.xlu0 %v438_v3  ;;  %v2594_v11 = vpop.eup %2593  ;;  %v443_v12 = vmul.f32 %v2592_v8, %v2100_v58 }
 0x1eb   :  { %v444_v14 = vmul.f32 %v2594_v11, %v2100_v58 }
 0x1ec   :  { %451 = vadd.xlane.f32.xlu1 %v440_v5 }
 0x1ee   :  { %453 = vadd.xlane.f32.xlu0 %v441_v7 }
 0x1f0   :  { %455 = vadd.xlane.f32.xlu1 %v442_v9 }
 0x1f2   :  { %457 = vadd.xlane.f32.xlu0 %v443_v12 }
 0x1f4   :  { %459 = vadd.xlane.f32.xlu1 %v444_v14 }
 0x273   :  { %v446_v17 = vpop.xlane.xlu0 %445 }
 0x274   :  { %v474_v22 = vrot.slane %v446_v17, %v3247_v18 }
 0x275   :  { %v450_v19 = vpop.xlane.xlu1 %449 }
 0x276   :  { %v482_v24 = vrot.slane %v450_v19, %v3247_v18 }
 0x277   :  { %v448_v20 = vpop.xlane.xlu0 %447 }
 0x278   :  { %v478_v23 = vrot.slane %v448_v20, %v3247_v18 }
 0x279   :  { %v452_v26 = vpop.xlane.xlu1 %451 }
 0x27a   :  { %v504_v25 = vsel %vm503_vm1, %v478_v23, %v474_v22  ;;  %v486_v27 = vrot.slane %v452_v26, %v3247_v18 }
 0x27b   :  { %v506_v13 = vsel %vm505_vm2, %v482_v24, %v504_v25  ;;  %v454_v28 = vpop.xlane.xlu0 %453 }
 0x27c   :  { %v490_v29 = vrot.slane %v454_v28, %v3247_v18  ;;  %v508_v30 = vsel %vm507_vm3, %v486_v27, %v506_v13 }
 0x27d   :  { %v456_v32 = vpop.xlane.xlu1 %455 }
 0x27e   :  { %v510_v31 = vsel %vm509_vm4, %v490_v29, %v508_v30  ;;  %v494_v33 = vrot.slane %v456_v32, %v3247_v18 }
 0x27f   :  { %v458_v34 = vpop.xlane.xlu0 %457 }
 0x280   :  { %v498_v35 = vrot.slane %v458_v34, %v3247_v18  ;;  %v512_v36 = vsel %vm511_vm5, %v494_v33, %v510_v31 }
 0x281   :  { %v460_v37 = vpop.xlane.xlu1 %459 }
 0x282   :  { %v514_v38 = vsel %vm513_vm6, %v498_v35, %v512_v36  ;;  %v502_v39 = vrot.slane %v460_v37, %v3247_v18 }
 0x284   :  { %v516_v40 = vsel %vm515_vm7, %v502_v39, %v514_v38 }
 0x285   :  { %v519_v41 = vsel %vm518_vm8, %v516_v40, -inf }
 0x286   :  { %520 = vmax.xlane.f32.xlu0 %v519_v41 }
 0x313   :  { %v521_v46 = vpop.xlane.xlu0 %520 }
 0x314   :  { %v526_v47 = vrot.slane %v521_v46, %v3235_v21  ;;  %v530_v48 = vrot.slane %v521_v46, %v3270_v43  ;;  %v534_v49 = vrot.slane %v521_v46, %v3273_v44  ;;  %v538_v51 = vrot.slane %v521_v46, %v537_v45 }
 0x315   :  { %v542_v58 = vrot.slane %v521_v46, %v541_v50  ;;  %v546_v62 = vrot.slane %v521_v46, %v545_v57  ;;  %v550_v3 = vrot.slane %v521_v46, %v549_v61  ;;  %v554_v8 = vrot.slane %v521_v46, %v553_v2 }
 0x316   :  { %v563_v52 = vsub.f32 %v446_v17, %v526_v47  ;;  %v564_v53 = vsub.f32 %v448_v20, %v530_v48  ;;  %v565_v54 = vsub.f32 %v450_v19, %v534_v49  ;;  %v566_v59 = vsub.f32 %v452_v26, %v538_v51 }
 0x317   :  { %v567_v63 = vsub.f32 %v454_v28, %v542_v58  ;;  %v568_v4 = vsub.f32 %v456_v32, %v546_v62  ;;  %v569_v9 = vsub.f32 %v458_v34, %v550_v3  ;;  %v570_v14 = vsub.f32 %v460_v37, %v554_v8  ;;  %v2414_v58 = vld [vmem:[#allocation14 + $0x34] ss:$12 sps:$4 sm:$0xff]  }
 0x318   :  { %v571_v55 = vmul.f32 1.442695, %v563_v52  ;;  %v573_v56 = vmul.f32 1.442695, %v564_v53  ;;  %v575_v60 = vmul.f32 1.442695, %v565_v54 }
 0x319   :  { %v577_v1 = vmul.f32 1.442695, %v566_v59  ;;  %v579_v5 = vmul.f32 1.442695, %v567_v63  ;;  %v581_v11 = vmul.f32 1.442695, %v568_v4 }
 0x31a   :  { %2595 = vpow2.f32 %v571_v55  ;;  %v583_v16 = vmul.f32 1.442695, %v569_v9  ;;  %v585_v19 = vmul.f32 1.442695, %v570_v14  ;;  %v2408_v53 = vld [vmem:[#allocation14 + $0x4] ss:$12 sps:$4 sm:$0xff]  }
 0x31b   :  { %2597 = vpow2.f32 %v573_v56  ;;  %v2410_v54 = vld [vmem:[#allocation14] ss:$12 sps:$4 sm:$0xff]   ;;  %v2411_v55 = vld [vmem:[#allocation14 + $0x1c] ss:$12 sps:$4 sm:$0xff]   ;;  %1250 = vmatprep.subr.bf16.mxu1 %v2408_v53  ;;  %v2413_v56 = vld [vmem:[#allocation14 + $0x18] ss:$12 sps:$4 sm:$0xff]  }
 0x31c   :  { %2599 = vpow2.f32 %v575_v60  ;;  %1251 = vmatpush1.bf16.msra.mxu1 %v2410_v54  ;;  %v2416_v59 = vld [vmem:[#allocation14 + $0x30] ss:$12 sps:$4 sm:$0xff]   ;;  %v2453_v53 = vld [vmem:[#allocation14 + $0x120] ss:$12 sps:$4 sm:$0xff]  }
 0x31d   :  { %2601 = vpow2.f32 %v577_v1  ;;  %1252 = vmatprep.subr.bf16.mxu1 %v2411_v55  ;;  %v2458_v54 = vld [vmem:[#allocation15 + $0x4c] ss:$12 sps:$4 sm:$0xff]   ;;  %v2456_v55 = vld [vmem:[#allocation15 + $0x48] ss:$12 sps:$4 sm:$0xff]  }
 0x31e   :  { %2603 = vpow2.f32 %v579_v5 }
 0x31f   :  { %2605 = vpow2.f32 %v581_v11 }
 0x320   :  { %2607 = vpow2.f32 %v583_v16  ;;  %1253 = vmatpush1.bf16.msra.mxu1 %v2413_v56  ;;  %v2461_v56 = vld [vmem:[#allocation14 + $0x13c] ss:$12 sps:$4 sm:$0xff]  }
 0x321   :  { %2609 = vpow2.f32 %v585_v19  ;;  %1254 = vmatprep.subr.bf16.mxu1 %v2414_v58  ;;  %v2417_v19 = vld [vmem:[#allocation14 + $0x4c] ss:$12 sps:$4 sm:$0xff]  }
 0x322   :  { %v2459_v58 = vld [vmem:[#allocation14 + $0x138] ss:$12 sps:$4 sm:$0xff]  }
 0x324   :  { %v3291_v6 = vpop.eup %2595  ;;  %1255 = vmatpush1.bf16.msra.mxu1 %v2416_v59  ;;  %v2464_v59 = vld [vmem:[#allocation15 + $0x64] ss:$12 sps:$4 sm:$0xff]  }
 0x325   :  { %v3293_v7 = vpop.eup %2597  ;;  %596 = vperm.xlu1 %2398, %v3291_v6   ;;  %1256 = vmatprep.subr.bf16.mxu1 %v2417_v19 }
 0x326   :  { %599 = vperm.xlu0 %2399, %v3293_v7   ;;  %v3299_v12 = vpop.eup %2599 }
 0x327   :  { %v3302_v17 = vpop.eup %2601 }
 0x328   :  { %v3305_v20 = vpop.eup %2603 }
 0x329   :  { %602 = vperm.xlu1 %2398, %v3299_v12   ;;  %v3308_v22 = vpop.eup %2605 }
 0x32a   :  { %v3311_v23 = vpop.eup %2607 }
 0x32b   :  { %v3314_v24 = vpop.eup %2609 }
 0x32d   :  { %605 = vperm.xlu1 %2398, %v3302_v17  }
 0x331   :  { %608 = vperm.xlu1 %2398, %v3305_v20  }
 0x335   :  { %611 = vperm.xlu1 %2398, %v3308_v22  }
 0x339   :  { %614 = vperm.xlu1 %2398, %v3311_v23  }
 0x33d   :  { %617 = vperm.xlu1 %2398, %v3314_v24  }
 0x3a4   :  { %v597_v25 = vpop.permute.xlu1 %596 }
 0x3a5   :  { %v600_v28 = vpop.permute.xlu0 %599  ;;  %v622_v31 = vrot.slane %v597_v25, %v3247_v18  ;;  %v2419_v25 = vld [vmem:[#allocation14 + $0x48] ss:$12 sps:$4 sm:$0xff]  }
 0x3a6   :  { %v626_v30 = vrot.slane %v600_v28, %v3247_v18  ;;  %1257 = vmatpush1.bf16.msra.mxu1 %v2419_v25  ;;  %v2425_v28 = vld [vmem:[#allocation14 + $0x78] ss:$12 sps:$4 sm:$0xff]  }
 0x3a8   :  { %v603_v26 = vpop.permute.xlu1 %602  ;;  %v651_v36 = vsel %vm503_vm1, %v626_v30, %v622_v31  ;;  %v2431_v30 = vld [vmem:[#allocation14 + $0xc4] ss:$12 sps:$4 sm:$0xff]  }
 0x3a9   :  { %v630_v32 = vrot.slane %v603_v26, %v3247_v18  ;;  %1041 = vmatprep.subr.bf16.mxu0 %v2431_v30  ;;  %v207_v30 = vld [vmem:[#allocation8 + $0x20] sm:$0xff] }
 0x3ab   :  { %v652_v38 = vsel %vm505_vm2, %v630_v32, %v651_v36  ;;  %v2429_v32 = vld [vmem:[#allocation14 + $0xc0] ss:$12 sps:$4 sm:$0xff]   ;;  %v2435_v36 = vld [vmem:[#allocation14 + $0xd8] ss:$12 sps:$4 sm:$0xff]  }
 0x3ac   :  { %v606_v13 = vpop.permute.xlu1 %605  ;;  %1042 = vmatpush1.bf16.msra.mxu0 %v2429_v32 }
 0x3ad   :  { %v634_v33 = vrot.slane %v606_v13, %v3247_v18  ;;  %v2422_v13 = vld [vmem:[#allocation14 + $0x60] ss:$12 sps:$4 sm:$0xff]  }
 0x3af   :  { %v653_v40 = vsel %vm507_vm3, %v634_v33, %v652_v38  ;;  %v2432_v33 = vld [vmem:[#allocation14 + $0xac] ss:$12 sps:$4 sm:$0xff]  }
 0x3b0   :  { %v609_v27 = vpop.permute.xlu1 %608  ;;  %v2438_v38 = vld [vmem:[#allocation15] ss:$12 sps:$4 sm:$0xff]  }
 0x3b1   :  { %v638_v34 = vrot.slane %v609_v27, %v3247_v18 }
 0x3b3   :  { %v654_v41 = vsel %vm509_vm4, %v638_v34, %v653_v40  ;;  %v2434_v34 = vld [vmem:[#allocation14 + $0xa8] ss:$12 sps:$4 sm:$0xff]  }
 0x3b4   :  { %v612_v29 = vpop.permute.xlu1 %611  ;;  %v2443_v40 = vld [vmem:[#allocation14 + $0xf4] ss:$12 sps:$4 sm:$0xff]  }
 0x3b5   :  { %v642_v37 = vrot.slane %v612_v29, %v3247_v18 }
 0x3b7   :  { %v655_v47 = vsel %vm511_vm5, %v642_v37, %v654_v41  ;;  %v2440_v37 = vld [vmem:[#allocation15 + $0x4] ss:$12 sps:$4 sm:$0xff]  }
 0x3b8   :  { %v615_v35 = vpop.permute.xlu1 %614  ;;  %v2441_v41 = vld [vmem:[#allocation14 + $0xf0] ss:$12 sps:$4 sm:$0xff]  }
 0x3b9   :  { %v646_v39 = vrot.slane %v615_v35, %v3247_v18  ;;  %v2437_v35 = vld [vmem:[#allocation14 + $0xdc] ss:$12 sps:$4 sm:$0xff]  }
 0x3ba   :  { %1043 = vmatprep.subr.bf16.mxu0 %v2437_v35 }
 0x3bb   :  { %v656_v49 = vsel %vm513_vm6, %v646_v39, %v655_v47  ;;  %v201_v39 = vld [vmem:[#allocation3] sm:$0xff]  ;;  %1044 = vmatpush1.bf16.msra.mxu0 %v2435_v36 }
 0x3bc   :  { %v618_v46 = vpop.permute.xlu1 %617  ;;  %1045 = vmatprep.subr.bf16.mxu0 %v2443_v40  ;;  %v2449_v47 = vld [vmem:[#allocation14 + $0x10c] ss:$12 sps:$4 sm:$0xff]  }
 0x3bd   :  { %v650_v48 = vrot.slane %v618_v46, %v3247_v18  ;;  %v2446_v46 = vld [vmem:[#allocation15 + $0x1c] ss:$12 sps:$4 sm:$0xff]  }
 0x3bf   :  { %v657_v51 = vsel %vm515_vm7, %v650_v48, %v656_v49  ;;  %1046 = vmatpush1.bf16.msra.mxu0 %v2441_v41  ;;  %v2447_v48 = vld [vmem:[#allocation14 + $0x108] ss:$12 sps:$4 sm:$0xff]  }
 0x3c0   :  { %v659_v52 = vsel %vm518_vm8, %v657_v51, 0.0  ;;  %v2452_v49 = vld [vmem:[#allocation15 + $0x34] ss:$12 sps:$4 sm:$0xff]   ;;  %1047 = vmatprep.subr.bf16.mxu0 %v2449_v47  ;;  %v2450_v51 = vld [vmem:[#allocation15 + $0x30] ss:$12 sps:$4 sm:$0xff]  }
 0x3c1   :  { %660 = vadd.xlane.f32.xlu1 %v659_v52  ;;  %v2455_v52 = vld [vmem:[#allocation14 + $0x124] ss:$12 sps:$4 sm:$0xff]  }
 0x3c2   :  { %v209_v47 = vld [vmem:[#allocation8 + $0x30] sm:$0xff] }
 0x3c3   :  { %1048 = vmatpush1.bf16.msra.mxu0 %v2447_v48 }
 0x3c4   :  { %1049 = vmatprep.subr.bf16.mxu0 %v2455_v52 }
 0x3c7   :  { %1050 = vmatpush1.bf16.msra.mxu0 %v2453_v53 }
 0x3c8   :  { %1051 = vmatprep.subr.bf16.mxu0 %v2461_v56 }
 0x3cb   :  { %1052 = vmatpush1.bf16.msra.mxu0 %v2459_v58 }
 0x44e   :  { %v661_v18 = vpop.xlane.xlu1 %660 }
 0x44f   :  { %v666_v60 = vrot.slane %v661_v18, %v3235_v21  ;;  %v670_v62 = vrot.slane %v661_v18, %v3270_v43  ;;  %v674_v63 = vrot.slane %v661_v18, %v3273_v44  ;;  %v678_v1 = vrot.slane %v661_v18, %v537_v45 }
 0x450   :  { %v682_v4 = vrot.slane %v661_v18, %v541_v50  ;;  %v686_v9 = vrot.slane %v661_v18, %v545_v57  ;;  %v690_v45 = vrot.slane %v661_v18, %v549_v61 }
 0x451   :  { %2611 = vrcp.f32 %v666_v60  ;;  %v2465_v60 = vld [vmem:[#allocation14 + $0x150] ss:$12 sps:$4 sm:$0xff]  }
 0x452   :  { %2613 = vrcp.f32 %v670_v62  ;;  %v2467_v62 = vld [vmem:[#allocation14 + $0x154] ss:$12 sps:$4 sm:$0xff]  }
 0x453   :  { %2615 = vrcp.f32 %v674_v63  ;;  %v2470_v63 = vld [vmem:[#allocation15 + $0x7c] ss:$12 sps:$4 sm:$0xff]   ;;  %1053 = vmatprep.subr.bf16.mxu0 %v2467_v62 }
 0x454   :  { %2617 = vrcp.f32 %v678_v1  ;;  %v2473_v1 = vld [vmem:[#allocation14 + $0x16c] ss:$12 sps:$4 sm:$0xff]   ;;  %1054 = vmatpush1.bf16.msra.mxu0 %v2465_v60 }
 0x455   :  { %2619 = vrcp.f32 %v682_v4  ;;  %v2471_v4 = vld [vmem:[#allocation14 + $0x168] ss:$12 sps:$4 sm:$0xff]   ;;  %1055 = vmatprep.subr.bf16.mxu0 %v2473_v1 }
 0x456   :  { %2621 = vrcp.f32 %v686_v9  ;;  %v2480_v9 = vld [vmem:[#allocation15 + $0xac] ss:$12 sps:$4 sm:$0xff]  }
 0x457   :  { %2623 = vrcp.f32 %v690_v45  ;;  %v204_v45 = vld [vmem:[#allocation8 + $0x8] sm:$0xff] }
 0x458   :  { %1056 = vmatpush1.bf16.msra.mxu0 %v2471_v4 }
 0x459   :  { %2298 = vmatprep.subr.bf16.mxu0 %v2982_v0 }
 0x45b   :  { %v2612_v3 = vpop.eup %2611 }
 0x45c   :  { %v704_v5 = vmul.f32 %v2612_v3, %v3291_v6  ;;  %v2614_v8 = vpop.eup %2613  ;;  %v694_v6 = vrot.slane %v661_v18, %v553_v2  ;;  %v2426_v2 = vld [vmem:[#allocation14 + $0x94] ss:$12 sps:$4 sm:$0xff]   ;;  %v2468_v3 = vld [vmem:[#allocation15 + $0x78] ss:$12 sps:$4 sm:$0xff]  }
 0x45d   :  { %v706_v11 = vmul.f32 %v2614_v8, %v3293_v7  ;;  %v2616_v14 = vpop.eup %2615  ;;  %v2420_v7 = vld [vmem:[#allocation14 + $0x64] ss:$12 sps:$4 sm:$0xff]   ;;  %v2462_v18 = vld [vmem:[#allocation15 + $0x60] ss:$12 sps:$4 sm:$0xff]  }
 0x45e   :  { %721 = vperm.xlu0 %2399, %v704_v5   ;;  %v708_v16 = vmul.f32 %v2616_v14, %v3299_v12  ;;  %v2618_v50 = vpop.eup %2617  ;;  %1258 = vmatprep.subr.bf16.mxu1 %v2420_v7  ;;  %2625 = vrcp.f32 %v694_v6  ;;  %v2423_v12 = vld [vmem:[#allocation14 + $0x7c] ss:$12 sps:$4 sm:$0xff]   ;;  %v2476_v5 = vld [vmem:[#allocation15 + $0x94] ss:$12 sps:$4 sm:$0xff]  }
 0x45f   :  { %v710_v57 = vmul.f32 %v2618_v50, %v3302_v17  ;;  %v2620_v26 = vpop.eup %2619  ;;  %1259 = vmatpush1.bf16.msra.mxu1 %v2422_v13  ;;  %v2428_v17 = vld [vmem:[#allocation14 + $0x90] ss:$12 sps:$4 sm:$0xff]  }
 0x460   :  { %v712_v61 = vmul.f32 %v2620_v26, %v3305_v20  ;;  %v2622_v27 = vpop.eup %2621  ;;  %1260 = vmatprep.subr.bf16.mxu1 %v2423_v12  ;;  %v2474_v8 = vld [vmem:[#allocation15 + $0x90] ss:$12 sps:$4 sm:$0xff]  }
 0x461   :  { %v714_v15 = vmul.f32 %v2622_v27, %v3308_v22  ;;  %v2624_v29 = vpop.eup %2623  ;;  %v205_v6 = vld [vmem:[#allocation8 + $0x10] sm:$0xff] }
 0x462   :  { %726 = vperm.xlu0 %2399, %v706_v11   ;;  %v716_v31 = vmul.f32 %v2624_v29, %v3311_v23  ;;  %v3354_v23 = vpack.c.bf16 %v201_v39, %v201_v39  ;;  %v2478_v11 = vld [vmem:[#allocation15 + $0xa8] ss:$12 sps:$4 sm:$0xff]  }
 0x463   :  { %1261 = vmatpush1.bf16.msra.mxu1 %v2425_v28 }
 0x464   :  { %1262 = vmatprep.subr.bf16.mxu1 %v2426_v2  ;;  %1659 = vst [vmem:[#allocation2 + $0x8] sm:$0xf] %v3354_v23 }
 0x466   :  { %731 = vperm.xlu0 %2399, %v708_v16   ;;  %v203_v16 = vld [vmem:[#allocation8] sm:$0xff] }
 0x467   :  { %1263 = vmatpush1.bf16.msra.mxu1 %v2428_v17 }
 0x468   :  { %v2626_v20 = vpop.eup %2625  ;;  %1264 = vmatprep.subr.bf16.mxu1 %v2432_v33 }
 0x469   :  { %v718_v22 = vmul.f32 %v2626_v20, %v3314_v24  ;;  %v2444_v24 = vld [vmem:[#allocation15 + $0x18] ss:$12 sps:$4 sm:$0xff]  }
 0x46a   :  { %736 = vperm.xlu0 %2399, %v710_v57  }
 0x46b   :  { %1265 = vmatpush1.bf16.msra.mxu1 %v2434_v34 }
 0x46c   :  { %1528 = vmatprep.subr.bf16.mxu1 %v2440_v37 }
 0x46e   :  { %741 = vperm.xlu0 %2399, %v712_v61   ;;  %1283 = vmatmul.mubr.bf16.vlgmr.msra.gmra.mrb[0].mxu1 %v3354_v23  ;;  %v206_v61 = vld [vmem:[#allocation8 + $0x18] sm:$0xff] }
 0x46f   :  { %1529 = vmatpush1.bf16.msra.mxu1 %v2438_v38  ;;  %1560 = vmatprep.mubr.bf16.mxu1 %v2985_v42 }
 0x470   :  { %1530 = vmatprep.subr.bf16.mxu1 %v2446_v46 }
 0x472   :  { %746 = vperm.xlu0 %2399, %v714_v15  }
 0x473   :  { %1531 = vmatpush1.bf16.msra.mxu1 %v2444_v24 }
 0x474   :  { %1532 = vmatprep.subr.bf16.mxu1 %v2452_v49 }
 0x476   :  { %751 = vperm.xlu0 %2399, %v716_v31  }
 0x477   :  { %1533 = vmatpush1.bf16.msra.mxu1 %v2450_v51 }
 0x478   :  { %1534 = vmatprep.subr.bf16.mxu1 %v2458_v54 }
 0x47a   :  { %756 = vperm.xlu0 %2399, %v718_v22   ;;  %v208_v22 = vld [vmem:[#allocation8 + $0x28] sm:$0xff] }
 0x47b   :  { %1535 = vmatpush1.bf16.msra.mxu1 %v2456_v55 }
 0x47c   :  { %1536 = vmatprep.subr.bf16.mxu1 %v2464_v59 }
 0x47f   :  { %1537 = vmatpush1.bf16.msra.mxu1 %v2462_v18  ;;  %v210_v18 = vld [vmem:[#allocation8 + $0x38] sm:$0xff] }
 0x480   :  { %1538 = vmatprep.subr.bf16.mxu1 %v2470_v63 }
 0x483   :  { %1539 = vmatpush1.bf16.msra.mxu1 %v2468_v3 }
 0x484   :  { %1540 = vmatprep.subr.bf16.mxu1 %v2476_v5 }
 0x487   :  { %1541 = vmatpush1.bf16.msra.mxu1 %v2474_v8 }
 0x488   :  { %1542 = vmatprep.subr.bf16.mxu1 %v2480_v9 }
 0x48b   :  { %1543 = vmatpush1.bf16.msra.mxu1 %v2478_v11 }
 0x48e   :  { %1561 = vmatmul.mubr.bf16.vlgmr.msra.gmra.mrb[0].mxu1 %v3227_v10 }
 0x4dd   :  { %v722_v14 = vpop.permute.xlu0 %721 }
 0x4de   :  { %v759_v25 = vmul.f32 %v722_v14, %v203_v16 }
 0x4e0   :  { %v767_v13 = vrot.slane %v759_v25, 4 }
 0x4e1   :  { %v727_v19 = vpop.permute.xlu0 %726 }
 0x4e2   :  { %v760_v50 = vmul.f32 %v727_v19, %v204_v45  ;;  %v768_v2 = vadd.f32 %v767_v13, %v759_v25 }
 0x4e4   :  { %v773_v7 = vrot.slane %v760_v50, 4  ;;  %v769_v20 = vrot.slane %v768_v2, 2 }
 0x4e5   :  { %v732_v57 = vpop.permute.xlu0 %731 }
 0x4e6   :  { %v761_v26 = vmul.f32 %v732_v57, %v205_v6  ;;  %v774_v28 = vadd.f32 %v773_v7, %v760_v50  ;;  %v770_v41 = vadd.f32 %v769_v20, %v768_v2 }
 0x4e8   :  { %v779_v12 = vrot.slane %v761_v26, 4  ;;  %v775_v32 = vrot.slane %v774_v28, 2  ;;  %v771_v56 = vrot.slane %v770_v41, 1 }
 0x4e9   :  { %v737_v27 = vpop.permute.xlu0 %736 }
 0x4ea   :  { %v762_v15 = vmul.f32 %v737_v27, %v206_v61  ;;  %v780_v29 = vadd.f32 %v779_v12, %v761_v26  ;;  %v776_v39 = vadd.f32 %v775_v32, %v774_v28  ;;  %v772_v11 = vadd.f32 %v771_v56, %v770_v41  ;;  %v2484_v56 = vld [vmem:[#allocation14 + $0x128] ss:$12 sps:$4 sm:$0xff]  }
 0x4ec   :  { %v785_v17 = vrot.slane %v762_v15, 4  ;;  %v781_v34 = vrot.slane %v780_v29, 2  ;;  %v777_v53 = vrot.slane %v776_v39, 1  ;;  %v816_v61 = vpack.c.bf16 %v772_v11, %v772_v11  ;;  %v2497_v11 = vld [vmem:[#allocation15 + $0x20] ss:$12 sps:$4 sm:$0xff]  }
 0x4ed   :  { %v742_v31 = vpop.permute.xlu0 %741 }
 0x4ee   :  { %v786_v33 = vadd.f32 %v785_v17, %v762_v15  ;;  %v763_v35 = vmul.f32 %v742_v31, %v207_v30  ;;  %v782_v46 = vadd.f32 %v781_v34, %v780_v29  ;;  %v778_v4 = vadd.f32 %v777_v53, %v776_v39  ;;  %v2481_v53 = vld [vmem:[#allocation14 + $0xe0] ss:$12 sps:$4 sm:$0xff]  }
 0x4ef   :  { %v896_v32 = vunpack.c.l.b16 %v816_v61  ;;  %v2509_v61 = vld [vmem:[#allocation20 + $0x14] ss:$8 sps:$4 sm:$0xff]  }
 0x4f0   :  { %v787_v36 = vrot.slane %v786_v33, 2  ;;  %v791_v37 = vrot.slane %v763_v35, 4  ;;  %v783_v58 = vrot.slane %v782_v46, 1  ;;  %v817_v6 = vpack.c.bf16 %v778_v4, %v778_v4  ;;  %v2493_v4 = vld [vmem:[#allocation14 + $0x80] ss:$12 sps:$4 sm:$0xff]  }
 0x4f1   :  { %v747_v38 = vpop.permute.xlu0 %746 }
 0x4f2   :  { %v764_v40 = vmul.f32 %v747_v38, %v208_v22  ;;  %v792_v24 = vadd.f32 %v791_v37, %v763_v35  ;;  %v788_v48 = vadd.f32 %v787_v36, %v786_v33  ;;  %v784_v14 = vadd.f32 %v783_v58, %v782_v46  ;;  %v2485_v58 = vld [vmem:[#allocation14 + $0x140] ss:$12 sps:$4 sm:$0xff]  }
 0x4f3   :  { %v897_v2 = vunpack.c.l.b16 %v817_v6 }
 0x4f4   :  { %v797_v49 = vrot.slane %v764_v40, 4  ;;  %v793_v51 = vrot.slane %v792_v24, 2  ;;  %v789_v60 = vrot.slane %v788_v48, 1  ;;  %v818_v13 = vpack.c.bf16 %v784_v14, %v784_v14  ;;  %v2498_v14 = vld [vmem:[#allocation15 + $0x38] ss:$12 sps:$4 sm:$0xff]  }
 0x4f5   :  { %v752_v52 = vpop.permute.xlu0 %751  ;;  %v904_v22 = vsel %vm503_vm1, %v897_v2, %v896_v32  ;;  %v2516_v2 = vld [vmem:[#allocation20 + $0x40] ss:$8 sps:$4 sm:$0xff]   ;;  %v2527_v32 = vld [vmem:[#allocation20 + $0x74] ss:$8 sps:$4 sm:$0xff]  }
 0x4f6   :  { %v798_v54 = vadd.f32 %v797_v49, %v764_v40  ;;  %v765_v55 = vmul.f32 %v752_v52, %v209_v47  ;;  %v794_v59 = vadd.f32 %v793_v51, %v792_v24  ;;  %v790_v45 = vadd.f32 %v789_v60, %v788_v48  ;;  %v2477_v51 = vld [vmem:[#allocation14 + $0xc8] ss:$12 sps:$4 sm:$0xff]  }
 0x4f7   :  { %v898_v31 = vunpack.c.l.b16 %v818_v13  ;;  %v2488_v60 = vld [vmem:[#allocation14 + $0x8] ss:$12 sps:$4 sm:$0xff]  }
 0x4f8   :  { %v799_v62 = vrot.slane %v798_v54, 2  ;;  %v803_v63 = vrot.slane %v765_v55, 4  ;;  %v795_v1 = vrot.slane %v794_v59, 1  ;;  %v819_v12 = vpack.c.bf16 %v790_v45, %v790_v45  ;;  %v2499_v45 = vld [vmem:[#allocation15 + $0x50] ss:$12 sps:$4 sm:$0xff]  }
 0x4f9   :  { %v757_v3 = vpop.permute.xlu0 %756  ;;  %v905_v38 = vsel %vm505_vm2, %v898_v31, %v904_v22  ;;  %v2506_v13 = vld [vmem:[#allocation20 + $0x4] ss:$8 sps:$4 sm:$0xff]   ;;  %v2522_v31 = vld [vmem:[#allocation20 + $0x60] ss:$8 sps:$4 sm:$0xff]   ;;  %v2531_v22 = vld [vmem:[#allocation20 + $0x90] ss:$8 sps:$4 sm:$0xff]  }
 0x4fa   :  { %v800_v5 = vadd.f32 %v799_v62, %v798_v54  ;;  %v804_v8 = vadd.f32 %v803_v63, %v765_v55  ;;  %v766_v9 = vmul.f32 %v757_v3, %v210_v18  ;;  %v796_v25 = vadd.f32 %v795_v1, %v794_v59  ;;  %v2482_v54 = vld [vmem:[#allocation14 + $0xf8] ss:$12 sps:$4 sm:$0xff]   ;;  %v2483_v55 = vld [vmem:[#allocation14 + $0x110] ss:$12 sps:$4 sm:$0xff]   ;;  %v2489_v62 = vld [vmem:[#allocation14 + $0x20] ss:$12 sps:$4 sm:$0xff]   ;;  %1973 = vmatprep.subr.bf16.mxu1 %v2506_v13 }
 0x4fb   :  { %v899_v33 = vunpack.c.l.b16 %v819_v12  ;;  %v2486_v59 = vld [vmem:[#allocation14 + $0x158] ss:$12 sps:$4 sm:$0xff]   ;;  %v2487_v18 = vld [vmem:[#allocation14 + $0x170] ss:$12 sps:$4 sm:$0xff]   ;;  %v2492_v3 = vld [vmem:[#allocation14 + $0x68] ss:$12 sps:$4 sm:$0xff]  }
 0x4fc   :  { %v801_v16 = vrot.slane %v800_v5, 1  ;;  %v805_v19 = vrot.slane %v804_v8, 2  ;;  %v809_v50 = vrot.slane %v766_v9, 4  ;;  %v820_v15 = vpack.c.bf16 %v796_v25, %v796_v25  ;;  %v2490_v63 = vld [vmem:[#allocation14 + $0x38] ss:$12 sps:$4 sm:$0xff]  }
 0x4fd   :  { %v906_v40 = vsel %vm507_vm3, %v899_v33, %v905_v38  ;;  %v2491_v1 = vld [vmem:[#allocation14 + $0x50] ss:$12 sps:$4 sm:$0xff]   ;;  %v2507_v12 = vld [vmem:[#allocation20 + $0x10] ss:$8 sps:$4 sm:$0xff]  }
 0x4fe   :  { %v802_v57 = vadd.f32 %v801_v16, %v800_v5  ;;  %v806_v7 = vadd.f32 %v805_v19, %v804_v8  ;;  %v810_v26 = vadd.f32 %v809_v50, %v766_v9  ;;  %v900_v35 = vunpack.c.l.b16 %v820_v15  ;;  %v2494_v5 = vld [vmem:[#allocation14 + $0x98] ss:$12 sps:$4 sm:$0xff]   ;;  %v2495_v8 = vld [vmem:[#allocation14 + $0xb0] ss:$12 sps:$4 sm:$0xff]   ;;  %v2496_v9 = vld [vmem:[#allocation15 + $0x8] ss:$12 sps:$4 sm:$0xff]  }
 0x4ff   :  { %v2500_v16 = vld [vmem:[#allocation15 + $0x68] ss:$12 sps:$4 sm:$0xff]   ;;  %v2502_v19 = vld [vmem:[#allocation15 + $0x98] ss:$12 sps:$4 sm:$0xff]   ;;  %v2503_v50 = vld [vmem:[#allocation15 + $0xb0] ss:$12 sps:$4 sm:$0xff]  }
 0x500   :  { %v807_v27 = vrot.slane %v806_v7, 1  ;;  %v811_v28 = vrot.slane %v810_v26, 2  ;;  %v821_v29 = vpack.c.bf16 %v802_v57, %v802_v57  ;;  %v907_v46 = vsel %vm509_vm4, %v900_v35, %v906_v40  ;;  %v2518_v15 = vld [vmem:[#allocation20 + $0x44] ss:$8 sps:$4 sm:$0xff]   ;;  %v2525_v33 = vld [vmem:[#allocation20 + $0x70] ss:$8 sps:$4 sm:$0xff]  }
 0x501   :  { %v2533_v35 = vld [vmem:[#allocation20 + $0x94] ss:$8 sps:$4 sm:$0xff]   ;;  %v2542_v40 = vld [vmem:[#allocation20 + $0xc4] ss:$8 sps:$4 sm:$0xff]  }
 0x502   :  { %v808_v17 = vadd.f32 %v807_v27, %v806_v7  ;;  %v812_v30 = vadd.f32 %v811_v28, %v810_v26  ;;  %v901_v36 = vunpack.c.l.b16 %v821_v29  ;;  %v2504_v26 = vld [vmem:[#allocation20] ss:$8 sps:$4 sm:$0xff]   ;;  %v2512_v27 = vld [vmem:[#allocation20 + $0x24] ss:$8 sps:$4 sm:$0xff]   ;;  %v2521_v29 = vld [vmem:[#allocation20 + $0x54] ss:$8 sps:$4 sm:$0xff]  }
 0x503   :  { %1974 = vmatpush1.bf16.msra.mxu1 %v2504_v26  ;;  %v2510_v28 = vld [vmem:[#allocation20 + $0x20] ss:$8 sps:$4 sm:$0xff]   ;;  %v2539_v38 = vld [vmem:[#allocation20 + $0xb4] ss:$8 sps:$4 sm:$0xff]  }
 0x504   :  { %v822_v20 = vpack.c.bf16 %v808_v17, %v808_v17  ;;  %v813_v34 = vrot.slane %v812_v30, 1  ;;  %v908_v24 = vsel %vm511_vm5, %v901_v36, %v907_v46  ;;  %1975 = vmatprep.subr.bf16.mxu1 %v2509_v61  ;;  %v2519_v17 = vld [vmem:[#allocation20 + $0x50] ss:$8 sps:$4 sm:$0xff]   ;;  %v2536_v36 = vld [vmem:[#allocation20 + $0xa4] ss:$8 sps:$4 sm:$0xff]  }
 0x505   :  { %v2545_v46 = vld [vmem:[#allocation20 + $0xd4] ss:$8 sps:$4 sm:$0xff]  }
 0x506   :  { %v814_v37 = vadd.f32 %v813_v34, %v812_v30  ;;  %v902_v39 = vunpack.c.l.b16 %v822_v20  ;;  %v2524_v30 = vld [vmem:[#allocation20 + $0x64] ss:$8 sps:$4 sm:$0xff]   ;;  %v2528_v34 = vld [vmem:[#allocation20 + $0x80] ss:$8 sps:$4 sm:$0xff]  }
 0x507   :  { %1976 = vmatpush1.bf16.msra.mxu1 %v2507_v12  ;;  %v2530_v20 = vld [vmem:[#allocation20 + $0x84] ss:$8 sps:$4 sm:$0xff]  }
 0x508   :  { %v823_v41 = vpack.c.bf16 %v814_v37, %v814_v37  ;;  %v909_v48 = vsel %vm513_vm6, %v902_v39, %v908_v24  ;;  %1977 = vmatprep.subr.bf16.mxu1 %v2512_v27  ;;  %v2534_v37 = vld [vmem:[#allocation20 + $0xa0] ss:$8 sps:$4 sm:$0xff]   ;;  %v2537_v39 = vld [vmem:[#allocation20 + $0xb0] ss:$8 sps:$4 sm:$0xff]  }
 0x509   :  { %v2543_v24 = vld [vmem:[#allocation20 + $0xd0] ss:$8 sps:$4 sm:$0xff]  }
 0x50a   :  { %v903_v47 = vunpack.c.l.b16 %v823_v41  ;;  %v2540_v41 = vld [vmem:[#allocation20 + $0xc0] ss:$8 sps:$4 sm:$0xff]  }
 0x50b   :  { %1978 = vmatpush1.bf16.msra.mxu1 %v2510_v28 }
 0x50c   :  { %v910_v49 = vsel %vm515_vm7, %v903_v47, %v909_v48  ;;  %v1331_v47 = vld [vmem:[#allocation17] sm:$0x7]  ;;  %v2548_v48 = vld [vmem:[#allocation20 + $0xe4] ss:$8 sps:$4 sm:$0xff]  }
 0x50d   :  { %v911_v52 = vpack.c.b16 %v910_v49, %v910_v49  ;;  %v1383_v49 = vld [vmem:[#allocation18] sm:$0x7]  ;;  %v1344_v28 = vrot.slane %v1331_v47, %v3273_v44 }
 0x50f   :  { %1074 = vmatmul.mubr.bf16.vlgmr.msra.gmra.mrb[4].mxu0 %v911_v52  ;;  %1658 = vst [vmem:[#allocation2 + $0x4] sm:$0xf] %v911_v52 }
 0x510   :  { %2299 = vmatpush3.bf16.msra.mxu0 %v2477_v51  ;;  %2314 = vmatprep.mubr.msk.bf16.mxu0 %vm2983_vm0, %v2982_v0  ;;  %v1336_v51 = vrot.slane %v1331_v47, %v3235_v21 }
 0x511   :  { %2300 = vmatprep.subr.bf16.mxu0 %v2982_v0 }
 0x514   :  { %2301 = vmatpush3.bf16.msra.mxu0 %v2481_v53  ;;  %v1340_v53 = vrot.slane %v1331_v47, %v3270_v43  ;;  %v2562_v47 = vld [vmem:[#allocation20 + $0x124] ss:$8 sps:$4 sm:$0xff]  }
 0x515   :  { %2302 = vmatprep.subr.bf16.mxu0 %v2982_v0 }
 0x518   :  { %2303 = vmatpush3.bf16.msra.mxu0 %v2482_v54  ;;  %v2551_v54 = vld [vmem:[#allocation20 + $0xf4] ss:$8 sps:$4 sm:$0xff]  }
 0x519   :  { %2304 = vmatprep.subr.bf16.mxu0 %v2982_v0 }
 0x51c   :  { %2305 = vmatpush3.bf16.msra.mxu0 %v2483_v55  ;;  %v1388_v55 = vrot.slane %v1383_v49, %v3235_v21 }
 0x51d   :  { %2306 = vmatprep.subr.bf16.mxu0 %v2982_v0 }
 0x520   :  { %2307 = vmatpush3.bf16.msra.mxu0 %v2484_v56 }
 0x521   :  { %2308 = vmatprep.subr.bf16.mxu0 %v2982_v0 }
 0x524   :  { %2309 = vmatpush3.bf16.msra.mxu0 %v2485_v58  ;;  %v1392_v58 = vrot.slane %v1383_v49, %v3270_v43 }
 0x525   :  { %2310 = vmatprep.subr.bf16.mxu0 %v2982_v0 }
 0x528   :  { %2311 = vmatpush3.bf16.msra.mxu0 %v2486_v59 }
 0x529   :  { %2312 = vmatprep.subr.bf16.mxu0 %v2982_v0 }
 0x52c   :  { %2313 = vmatpush3.bf16.msra.mxu0 %v2487_v18 }
 0x52d   :  { %2318 = vmatprep.subr.bf16.mxu0 %v2982_v0 }
 0x52f   :  { %2315 = vmatmul.mubr.bf16.vlgmr.msra.gmra.mrb[8].mxu0 %v911_v52  ;;  %v2546_v52 = vld [vmem:[#allocation20 + $0xe0] ss:$8 sps:$4 sm:$0xff]  }
 0x530   :  { %2319 = vmatpush3.bf16.msra.mxu0 %v2488_v60  ;;  %2334 = vmatprep.mubr.msk.bf16.mxu0 %vm2983_vm0, %v2982_v0  ;;  %v2549_v60 = vld [vmem:[#allocation20 + $0xf0] ss:$8 sps:$4 sm:$0xff]  }
 0x531   :  { %2320 = vmatprep.subr.bf16.mxu0 %v2982_v0 }
 0x534   :  { %2321 = vmatpush3.bf16.msra.mxu0 %v2489_v62 }
 0x535   :  { %2322 = vmatprep.subr.bf16.mxu0 %v2982_v0 }
 0x538   :  { %2323 = vmatpush3.bf16.msra.mxu0 %v2490_v63 }
 0x539   :  { %2324 = vmatprep.subr.bf16.mxu0 %v2982_v0 }
 0x53c   :  { %2325 = vmatpush3.bf16.msra.mxu0 %v2491_v1  ;;  %v2556_v1 = vld [vmem:[#allocation20 + $0x104] ss:$8 sps:$4 sm:$0xff]  }
 0x53d   :  { %2326 = vmatprep.subr.bf16.mxu0 %v2982_v0 }
 0x540   :  { %2327 = vmatpush3.bf16.msra.mxu0 %v2492_v3 }
 0x541   :  { %2328 = vmatprep.subr.bf16.mxu0 %v2982_v0 }
 0x544   :  { %2329 = vmatpush3.bf16.msra.mxu0 %v2493_v4 }
 0x545   :  { %2330 = vmatprep.subr.bf16.mxu0 %v2982_v0 }
 0x548   :  { %2331 = vmatpush3.bf16.msra.mxu0 %v2494_v5 }
 0x549   :  { %2332 = vmatprep.subr.bf16.mxu0 %v2982_v0 }
 0x54c   :  { %2333 = vmatpush3.bf16.msra.mxu0 %v2495_v8 }
 0x54d   :  { %2338 = vmatprep.subr.bf16.mxu0 %v2982_v0 }
 0x54f   :  { %2335 = vmatmul.mubr.bf16.vlgmr.msra.gmra.mrb[12].mxu0 %v3354_v23  ;;  %v2501_v23 = vld [vmem:[#allocation15 + $0x80] ss:$12 sps:$4 sm:$0xff]  }
 0x550   :  { %2339 = vmatpush3.bf16.msra.mxu0 %v2496_v9  ;;  %2354 = vmatprep.mubr.msk.bf16.mxu0 %vm2983_vm0, %v2982_v0 }
 0x551   :  { %2340 = vmatprep.subr.bf16.mxu0 %v2982_v0 }
 0x554   :  { %2341 = vmatpush3.bf16.msra.mxu0 %v2497_v11 }
 0x555   :  { %2342 = vmatprep.subr.bf16.mxu0 %v2982_v0 }
 0x558   :  { %2343 = vmatpush3.bf16.msra.mxu0 %v2498_v14 }
 0x559   :  { %2344 = vmatprep.subr.bf16.mxu0 %v2982_v0 }
 0x55c   :  { %2345 = vmatpush3.bf16.msra.mxu0 %v2499_v45 }
 0x55d   :  { %2346 = vmatprep.subr.bf16.mxu0 %v2982_v0 }
 0x560   :  { %2347 = vmatpush3.bf16.msra.mxu0 %v2500_v16 }
 0x561   :  { %2348 = vmatprep.subr.bf16.mxu0 %v2982_v0  ;;  %v3399_v25 = vpop.f32.mrb[0].mxu1 }
 0x562   :  { %v3401_v6 = vpop.f32.mrb[1].mxu1 }
 0x563   :  { %v1566_v57 = vpop.f32.mrb[2].mxu1 }
 0x564   :  { %2349 = vmatpush3.bf16.msra.mxu0 %v2501_v23  ;;  %v1567_v7 = vpop.f32.mrb[3].mxu1 }
 0x565   :  { %2350 = vmatprep.subr.bf16.mxu0 %v2982_v0 }
 0x568   :  { %2351 = vmatpush3.bf16.msra.mxu0 %v2502_v19 }
 0x569   :  { %2352 = vmatprep.subr.bf16.mxu0 %v2982_v0  ;;  %v2515_v0 = vld [vmem:[#allocation20 + $0x34] ss:$8 sps:$4 sm:$0xff]  }
 0x56a   :  { %1979 = vmatprep.subr.bf16.mxu1 %v2515_v0 }
 0x56c   :  { %2353 = vmatpush3.bf16.msra.mxu0 %v2503_v50 }
 0x56f   :  { %2355 = vmatmul.mubr.bf16.vlgmr.msra.gmra.mrb[16].mxu0 %v3227_v10  ;;  %v2513_v10 = vld [vmem:[#allocation20 + $0x30] ss:$8 sps:$4 sm:$0xff]  }
 0x570   :  { %1980 = vmatpush1.bf16.msra.mxu1 %v2513_v10 }
 0x571   :  { %1981 = vmatprep.subr.bf16.mxu1 %v2518_v15 }
 0x574   :  { %1982 = vmatpush1.bf16.msra.mxu1 %v2516_v2 }
 0x575   :  { %1983 = vmatprep.subr.bf16.mxu1 %v2521_v29 }
 0x578   :  { %1984 = vmatpush1.bf16.msra.mxu1 %v2519_v17 }
 0x579   :  { %1985 = vmatprep.subr.bf16.mxu1 %v2524_v30 }
 0x57c   :  { %1986 = vmatpush1.bf16.msra.mxu1 %v2522_v31 }
 0x57d   :  { %1987 = vmatprep.subr.bf16.mxu1 %v2527_v32 }
 0x580   :  { %1988 = vmatpush1.bf16.msra.mxu1 %v2525_v33 }
 0x581   :  { %1989 = vmatprep.subr.bf16.mxu1 %v2530_v20 }
 0x584   :  { %1990 = vmatpush1.bf16.msra.mxu1 %v2528_v34 }
 0x585   :  { %1991 = vmatprep.subr.bf16.mxu1 %v2533_v35  ;;  %v2637_v35 = vld [vmem:[#allocation6] sm:$0xff] }
 0x588   :  { %1992 = vmatpush1.bf16.msra.mxu1 %v2531_v22 }
 0x589   :  { %1993 = vmatprep.subr.bf16.mxu1 %v2536_v36 }
 0x58c   :  { %1994 = vmatpush1.bf16.msra.mxu1 %v2534_v37 }
 0x58d   :  { %1995 = vmatprep.subr.bf16.mxu1 %v2539_v38 }
 0x590   :  { %1996 = vmatpush1.bf16.msra.mxu1 %v2537_v39 }
 0x591   :  { %1997 = vmatprep.subr.bf16.mxu1 %v2542_v40 }
 0x594   :  { %1998 = vmatpush1.bf16.msra.mxu1 %v2540_v41  ;;  %v2554_v41 = vld [vmem:[#allocation20 + $0x100] ss:$8 sps:$4 sm:$0xff]  }
 0x595   :  { %1999 = vmatprep.subr.bf16.mxu1 %v2545_v46  ;;  %v2559_v46 = vld [vmem:[#allocation20 + $0x114] ss:$8 sps:$4 sm:$0xff]  }
 0x598   :  { %2000 = vmatpush1.bf16.msra.mxu1 %v2543_v24  ;;  %v2557_v24 = vld [vmem:[#allocation20 + $0x110] ss:$8 sps:$4 sm:$0xff]  }
 0x599   :  { %2001 = vmatprep.subr.bf16.mxu1 %v2548_v48  ;;  %v2560_v48 = vld [vmem:[#allocation20 + $0x120] ss:$8 sps:$4 sm:$0xff]  }
 0x59c   :  { %2002 = vmatpush1.bf16.msra.mxu1 %v2546_v52  ;;  %v2568_v52 = vld [vmem:[#allocation20 + $0x144] ss:$8 sps:$4 sm:$0xff]  }
 0x59d   :  { %2003 = vmatprep.subr.bf16.mxu1 %v2551_v54  ;;  %v2571_v54 = vld [vmem:[#allocation20 + $0x154] ss:$8 sps:$4 sm:$0xff]  }
 0x5a0   :  { %2004 = vmatpush1.bf16.msra.mxu1 %v2549_v60 }
 0x5a1   :  { %2014 = vmatprep.subr.bf16.mxu1 %v2556_v1 }
 0x5e2   :  { %v1075_v56 = vpop.f32.mrb[4].mxu0 }
 0x5e3   :  { %v2358_v59 = vadd.f32 %v1336_v51, %v1075_v56  ;;  %v1077_v18 = vpop.f32.mrb[5].mxu0  ;;  %v2563_v51 = vld [vmem:[#allocation20 + $0x130] ss:$8 sps:$4 sm:$0xff]   ;;  %v2574_v56 = vld [vmem:[#allocation20 + $0x164] ss:$8 sps:$4 sm:$0xff]  }
 0x5e4   :  { %v2361_v62 = vadd.f32 %v1340_v53, %v1077_v18  ;;  %v1079_v63 = vpop.f32.mrb[6].mxu0  ;;  %v2566_v53 = vld [vmem:[#allocation20 + $0x140] ss:$8 sps:$4 sm:$0xff]  }
 0x5e5   :  { %v1080_v3 = vpop.f32.mrb[7].mxu0  ;;  %v2359_v4 = vadd.f32 %v2358_v59, %v1388_v55  ;;  %v2569_v55 = vld [vmem:[#allocation20 + $0x150] ss:$8 sps:$4 sm:$0xff]   ;;  %v2578_v18 = vld [vmem:[#allocation2 + $0x8] ss:$0 sps:$4 sm:$0xff]  }
 0x5e6   :  { %v2362_v5 = vadd.f32 %v2361_v62, %v1392_v58  ;;  %v2577_v58 = vld [vmem:[#allocation20 + $0x174] ss:$8 sps:$4 sm:$0xff]   ;;  %v2575_v59 = vld [vmem:[#allocation20 + $0x170] ss:$8 sps:$4 sm:$0xff]  }
 0x5e7   :  { %v2360_v8 = vadd.f32 %v2359_v4, %v3399_v25 }
 0x5e8   :  { %v2363_v9 = vadd.f32 %v2362_v5, %v3401_v6  ;;  %v1396_v6 = vrot.slane %v1383_v49, %v3273_v44  ;;  %v2565_v49 = vld [vmem:[#allocation20 + $0x134] ss:$8 sps:$4 sm:$0xff]  }
 0x5e9   :  { %v2173_v7 = vmul.f32 -1.442695, %v2360_v8 }
 0x5ea   :  { %v2174_v13 = vmul.f32 -1.442695, %v2363_v9 }
 0x5eb   :  { %2627 = vpow2.f32 %v2173_v7 }
 0x5ec   :  { %2629 = vpow2.f32 %v2174_v13 }
 0x5f5   :  { %v2628_v61 = vpop.eup %2627 }
 0x5f6   :  { %v1613_v12 = vadd.f32 1.0, %v2628_v61  ;;  %v2630_v25 = vpop.eup %2629 }
 0x5f7   :  { %v1620_v27 = vadd.f32 1.0, %v2630_v25 }
 0x5f8   :  { %2631 = vrcp.f32 %v1613_v12 }
 0x5f9   :  { %2633 = vrcp.f32 %v1620_v27 }
 0x602   :  { %v1116_v11 = vpop.f32.mrb[8].mxu0  ;;  %v2632_v2 = vpop.eup %2631 }
 0x603   :  { %v2316_v14 = vpop.f32.mrb[9].mxu0  ;;  %v2634_v33 = vpop.eup %2633 }
 0x604   :  { %v1119_v45 = vpop.f32.mrb[10].mxu0  ;;  %v1626_v20 = vsub.f32 1.0, %v2634_v33  ;;  %v1628_v22 = vmul.f32 %v2637_v35, %v2634_v33 }
 0x605   :  { %v2317_v16 = vpop.f32.mrb[11].mxu0 }
 0x622   :  { %v1325_v23 = vpop.f32.mrb[12].mxu0 }
 0x623   :  { %v1326_v19 = vadd.f32 %v1325_v23, %v1116_v11  ;;  %v2336_v50 = vpop.f32.mrb[13].mxu0 }
 0x624   :  { %v1328_v57 = vpop.f32.mrb[14].mxu0 }
 0x625   :  { %v2337_v26 = vpop.f32.mrb[15].mxu0  ;;  %v1350_v17 = vadd.f32 %v1344_v28, %v1326_v19 }
 0x642   :  { %v1603_v0 = vpop.f32.mrb[16].mxu0 }
 0x643   :  { %v1604_v10 = vadd.f32 %v1603_v0, %v1396_v6  ;;  %v2356_v15 = vpop.f32.mrb[17].mxu0 }
 0x644   :  { %v1606_v29 = vpop.f32.mrb[18].mxu0 }
 0x645   :  { %v1623_v30 = vmul.f32 %v2632_v2, %v1604_v10  ;;  %v2357_v31 = vpop.f32.mrb[19].mxu0 }
 0x647   :  { %v1624_v32 = vadd.f32 %v1623_v30, %v1350_v17 }
 0x649   :  { %2635 = vtanh.f32 %v1624_v32 }
 0x653   :  { %v2636_v34 = vpop.eup %2635 }
 0x654   :  { %v1627_v36 = vmul.f32 %v2636_v34, %v1626_v20 }
 0x656   :  { %v1629_v37 = vadd.f32 %v1628_v22, %v1627_v36 }
 0x658   :  { %v1631_v38 = vpack.c.bf16 %v1629_v37, %v1629_v37  ;;  %1630 = vst [vmem:[#allocation24] sm:$0xff] %v1629_v37 }
 0x65a   :  { %1632 = vst [vmem:[#allocation2] sm:$0xf] %v1631_v38 }
 0x661   :  { %v1660_v44 = vld [vmem:[#allocation2] sm:$0xff] }
 0x662   :  { %v2183_v39 = vcombine.low %v1660_v44, %v1660_v44  ;;  %v2184_v40 = vcombine.high %v1660_v44, %v1660_v44 }
 0x664   :  { %2005 = vmatprep.mubr.bf16.mxu1 %v2184_v40 }
 0x665   :  { %2006 = vmatmul.mubr.bf16.vlgmr.msra.gmra.mrb[4].mxu1 %v2183_v39 }
 0x666   :  { %2015 = vmatpush1.bf16.msra.mxu1 %v2554_v41  ;;  %2046 = vmatprep.mubr.bf16.mxu1 %v2985_v42  ;;  %v2572_v42 = vld [vmem:[#allocation20 + $0x160] ss:$8 sps:$4 sm:$0xff]  }
 0x667   :  { %2016 = vmatprep.subr.bf16.mxu1 %v2559_v46 }
 0x66a   :  { %2017 = vmatpush1.bf16.msra.mxu1 %v2557_v24 }
 0x66b   :  { %2018 = vmatprep.subr.bf16.mxu1 %v2562_v47 }
 0x66e   :  { %2019 = vmatpush1.bf16.msra.mxu1 %v2560_v48 }
 0x66f   :  { %2020 = vmatprep.subr.bf16.mxu1 %v2565_v49 }
 0x672   :  { %2021 = vmatpush1.bf16.msra.mxu1 %v2563_v51 }
 0x673   :  { %2022 = vmatprep.subr.bf16.mxu1 %v2568_v52 }
 0x676   :  { %2023 = vmatpush1.bf16.msra.mxu1 %v2566_v53 }
 0x677   :  { %2024 = vmatprep.subr.bf16.mxu1 %v2571_v54 }
 0x67a   :  { %2025 = vmatpush1.bf16.msra.mxu1 %v2569_v55 }
 0x67b   :  { %2026 = vmatprep.subr.bf16.mxu1 %v2574_v56 }
 0x67e   :  { %2027 = vmatpush1.bf16.msra.mxu1 %v2572_v42 }
 0x67f   :  { %2028 = vmatprep.subr.bf16.mxu1 %v2577_v58 }
 0x682   :  { %2029 = vmatpush1.bf16.msra.mxu1 %v2575_v59 }
 0x685   :  { %2047 = vmatmul.mubr.bf16.vlgmr.msra.gmra.mrb[4].mxu1 %v2578_v18 }
 0x686   :  { %2913 = shalt.err (!%p2910_p2)
}
 0x687   :  { %s2914_s27 = scalar_lea.hbm %s3451_s13, 128 }
 0x688   :  { %p2915_p3 = scmp.ne.s32.totalorder %s3451_s13, %s2914_s27  ;;  %p2918_p4 = scmp.lt.u32.totalorder %s2914_s27, %s3451_s13 }
 0x68a   :  { %p2920_p5 = pnand %p2918_p4, %p2915_p3 }
 0x68c   :  { %2923 = shalt.err (!%p2920_p5)
}
 0x68d   :  { %2076 = dma.vmem_to_hbm [thread:$0]  %s2074_s15, 128, %s3451_s13, [#allocation25]   ;;  %v1710_v60 = vld [vmem:[#allocation21] sm:$0x3] }
 0x68e   :  { %v1715_v62 = vrot.slane %v1710_v60, %v3235_v21  ;;  %v1719_v63 = vrot.slane %v1710_v60, %v3270_v43  ;;  %s2987_s18 = smov [#allocation23]  }
 0x68f   :  { %s2063_s9 = sshll.u32 %s2987_s18, 4  ;;  %s2064_s9 = int_to_ptr.vmem [resolvable:$true] %s2063_s9 }
 0x690   :  { %s2924_s4 = scalar_lea.vmem %s2064_s9, 256  ;;  %p2929_p7 = scmp.lt.s32.totalorder %s2064_s9, %s2064_s9 }
 0x691   :  { %p2925_p6 = scmp.ne.s32.totalorder %s2064_s9, %s2924_s4  ;;  %p2930_p8 = scmp.lt.s32.totalorder %s2924_s4, %s2924_s4 }
 0x693   :  { %p2931_p9 = por %p2930_p8, %p2929_p7 }
 0x695   :  { %p2932_p10 = pnand %p2931_p9, %p2925_p6 }
 0x758   :  { %v2048_v1 = vpop.f32.mrb[4].mxu1 }
 0x759   :  { %v2364_v3 = vadd.f32 %v2048_v1, %v1715_v62  ;;  %v2050_v4 = vpop.f32.mrb[5].mxu1 }
 0x75a   :  { %v2365_v5 = vadd.f32 %v2050_v4, %v1719_v63  ;;  %v2052_v8 = vpop.f32.mrb[6].mxu1 }
 0x75b   :  { %2055 = vst [vmem:[#allocation23] sm:$0xff] %v2364_v3  ;;  %v2053_v9 = vpop.f32.mrb[7].mxu1 }
 0x75c   :  { %2056 = vst [vmem:[#allocation23 + $0x8] sm:$0xff] %v2365_v5 }
 0x75d   :  { %2935 = shalt.err (!%p2932_p10)
}
 0x75e   :  { %s2936_s8 = scalar_lea.hbm %s3450_s12, 256 }
 0x75f   :  { %p2937_p11 = scmp.ne.s32.totalorder %s3450_s12, %s2936_s8  ;;  %p2940_p12 = scmp.lt.u32.totalorder %s2936_s8, %s3450_s12 }
 0x761   :  { %p2942_p13 = pnand %p2940_p12, %p2937_p11 }
 0x763   :  { %2945 = shalt.err (!%p2942_p13)
}
 0x764   :  { %2066 = dma.vmem_to_hbm [thread:$0]  %s2064_s9, 256, %s3450_s12, [#allocation5]  }
 0x765   :  { %2960 = dma.done.wait [#allocation5], 256  }
 0x766   :  { %2961 = vsyncadd [#allocation5], 4294967040 }
 0x767   :  { %2962 = dma.done.wait [#allocation25], 128  }
 0x768   :  { %2963 = vsyncadd [#allocation25], 4294967168 }
 0x769   :  { %2083 = vsyncpa [#allocation4], 1 }
 0x76a   :  { %2084 = vsyncpa [#allocation7], 1 }
 0x76b   :  { %2085 = vsyncpa [#allocation10], 1 }
 0x76c   :  { %2086 = vsyncpa [#allocation13], 1 }
 0x76d   :  { %2087 = vsyncpa [#allocation16], 1 }
 0x76e   :  { %2088 = vsyncpa [#allocation19], 1 }
 0x76f   :  { %2089 = vsyncpa [#allocation22], 1 }
 0x770   :  { %2090 = vsyncpa [#allocation5], 1 }
 0x771   :  { %2091 = vsyncpa [#allocation25], 1 }

</bundles_post_ra>
